<compile_context>
chip_gen: v7x
topology: tpu7x:2x2x1
jax: 0.10.0
libtpu: 0.0.40
codegen_flags: <defaults>
</compile_context>

<pallas_src>
import numpy as np
import jax
import jax.numpy as jnp
from jax.experimental import pallas as pl
from jax.experimental.pallas import tpu as pltpu

KERNEL_SIZE = 5
K = KERNEL_SIZE * KERNEL_SIZE  # 25 spline kernel weight matrices (dim=2, kernel_size=5)
COUT_PAD = 128                 # lane-dense output width (pad Cout -> 128, slice after)
VMEM_LIMIT = 32 * 1024 * 1024  # explicit scoped-VMEM limit (safe on v5e/v6e/v7x)


def _round_up(v, m):
    return ((v + m - 1) // m) * m


# ----------------------------- Pallas kernels -------------------------------

def spline_msg_kernel(b_ref, xsrc_ref, w_ref, o_ref):
    # b_ref:    (TILE_E, K)          bf16 spline basis weights
    # xsrc_ref: (TILE_E, Cin)        bf16 gathered source features
    # w_ref:    (K, Cin, COUT_PAD)   f32 spline weights (zero-padded to 128 lanes)
    # o_ref:    (TILE_E, COUT_PAD)   f32 messages (lane-dense, unmasked stores)
    # The (TILE_E, K*Cin) operand is never materialized in HBM: it is formed
    # per-k inside VMEM right before each MXU dot / VPU broadcast.
    x = xsrc_ref[...].astype(jnp.float32)
    b = b_ref[...].astype(jnp.float32)
    cin = x.shape[1]
    for k in range(K):
        xk = b[:, k:k + 1] * x                       # (TILE_E, Cin)
        if cin == 1:
            term = xk * w_ref[k]                     # (TILE_E,1)*(1,128) VPU broadcast
        else:
            term = jnp.dot(xk, w_ref[k],             # (TILE_E,Cin)@(Cin,128) on MXU
                           preferred_element_type=jnp.float32)
        if k == 0:
            o_ref[...] = term
        else:
            o_ref[...] += term


def spline_combine_elu_kernel(agg_ref, deg_ref, x_ref, root_ref, bias_ref, o_ref):
    # out = agg / deg + x @ root + bias ; then ELU (alpha=1), overflow-safe.
    inv_deg = pl.reciprocal(jnp.maximum(deg_ref[...], 1.0), approx=True)  # EUP, ~free
    out = agg_ref[...] * inv_deg
    out = out + jnp.dot(x_ref[...], root_ref[...], preferred_element_type=jnp.float32)
    out = out + bias_ref[...]                                             # (1,128) bcast
    o_ref[...] = jnp.where(out > 0, out, jnp.exp(jnp.minimum(out, 0.0)) - 1.0)


def head_kernel(onehot_ref, x_ref, cnt_ref, w1_ref, b1_ref, w2_ref, b2_ref, o_ref):
    # scatter_mean over batch as one-hot matmul, then fc1 -> ELU -> fc2 -> log_softmax
    pooled = jnp.dot(onehot_ref[...], x_ref[...], preferred_element_type=jnp.float32)
    pooled = pooled * pl.reciprocal(jnp.maximum(cnt_ref[...], 1.0), approx=True)
    h = jnp.dot(pooled, w1_ref[...], preferred_element_type=jnp.float32) + b1_ref[...]
    h = jnp.where(h > 0, h, jnp.exp(jnp.minimum(h, 0.0)) - 1.0)          # ELU
    # TODO(synk): F.dropout(training=True) omitted; eval-mode (identity) semantics used.
    logits = jnp.dot(h, w2_ref[...], preferred_element_type=jnp.float32) + b2_ref[...]
    m = jnp.max(logits, axis=1, keepdims=True)
    lse = jnp.log(jnp.sum(jnp.exp(logits - m), axis=1, keepdims=True)) + m
    o_ref[...] = logits - lse                                            # log_softmax(dim=1)


def _vmem_call(kernel, out_shape, *args):
    # Whole-array VMEM call for the tiny head (G x 10 output).
    return pl.pallas_call(
        kernel,
        out_shape=out_shape,
        in_specs=[pl.BlockSpec(memory_space=pltpu.MemorySpace.VMEM) for _ in args],
        out_specs=pl.BlockSpec(memory_space=pltpu.MemorySpace.VMEM),
    )(*args)


# --------------------------- tiled kernel wrappers ---------------------------

def spline_messages(B, xsrc, W):
    """Gridded, pipelined message matmul. B:(E,K), xsrc:(E,Cin), W:(K,Cin,Cout) -> (E,Cout)."""
    E, Cin = xsrc.shape
    Cout = W.shape[-1]
    # Edge tile: big enough for pipelining, small enough for v7x's 64 MiB VMEM.
    TILE_E = min(512, _round_up(E, 16))
    E_pad = _round_up(E, TILE_E)
    # Edge streams in bf16 (halves HBM/DMA bytes); weights stay f32 (small, VMEM-resident).
    Bp = jnp.pad(B, ((0, E_pad - E), (0, 0))).astype(jnp.bfloat16)
    xp = jnp.pad(xsrc, ((0, E_pad - E), (0, 0))).astype(jnp.bfloat16)
    Wp = jnp.pad(W, ((0, 0), (0, 0), (0, COUT_PAD - Cout))).astype(jnp.float32)

    out = pl.pallas_call(
        spline_msg_kernel,
        out_shape=jax.ShapeDtypeStruct((E_pad, COUT_PAD), jnp.float32),
        grid=(E_pad // TILE_E,),
        in_specs=[
            pl.BlockSpec((TILE_E, K), lambda i: (i, 0)),
            pl.BlockSpec((TILE_E, Cin), lambda i: (i, 0)),
            pl.BlockSpec((K, Cin, COUT_PAD), lambda i: (0, 0, 0)),   # weights resident
        ],
        out_specs=pl.BlockSpec((TILE_E, COUT_PAD), lambda i: (i, 0)),
        compiler_params=pltpu.CompilerParams(
            dimension_semantics=("parallel",),        # shard edge tiles across v7x's 2 TCs
            vmem_limit_bytes=VMEM_LIMIT),
        cost_estimate=pl.CostEstimate(
            flops=2 * E_pad * K * Cin * COUT_PAD,
            transcendentals=0,
            bytes_accessed=2 * E_pad * (K + Cin)
                           + 4 * (K * Cin * COUT_PAD + E_pad * COUT_PAD)),
    )(Bp, xp, Wp)
    return out[:E, :Cout]


def spline_combine(agg, deg, x, root, bias):
    """Gridded combine: mean-norm + root matmul + bias + ELU. Lane-dense padded output."""
    N, Cout = agg.shape
    Cin = x.shape[1]
    TILE_N = min(256, _round_up(N, 8))
    N_pad = _round_up(N, TILE_N)
    agg_p = jnp.pad(agg, ((0, N_pad - N), (0, COUT_PAD - Cout)))
    deg_p = jnp.pad(deg, ((0, N_pad - N), (0, 0)))
    x_p = jnp.pad(x, ((0, N_pad - N), (0, 0)))
    root_p = jnp.pad(root, ((0, 0), (0, COUT_PAD - Cout))).astype(jnp.float32)
    bias_p = jnp.pad(bias.reshape(1, Cout), ((0, 0), (0, COUT_PAD - Cout))).astype(jnp.float32)

    out = pl.pallas_call(
        spline_combine_elu_kernel,
        out_shape=jax.ShapeDtypeStruct((N_pad, COUT_PAD), jnp.float32),
        grid=(N_pad // TILE_N,),
        in_specs=[
            pl.BlockSpec((TILE_N, COUT_PAD), lambda i: (i, 0)),
            pl.BlockSpec((TILE_N, 1), lambda i: (i, 0)),
            pl.BlockSpec((TILE_N, Cin), lambda i: (i, 0)),
            pl.BlockSpec((Cin, COUT_PAD), lambda i: (0, 0)),
            pl.BlockSpec((1, COUT_PAD), lambda i: (0, 0)),
        ],
        out_specs=pl.BlockSpec((TILE_N, COUT_PAD), lambda i: (i, 0)),
        compiler_params=pltpu.CompilerParams(
            dimension_semantics=("parallel",),
            vmem_limit_bytes=VMEM_LIMIT),
    )(agg_p, deg_p, x_p, root_p, bias_p)
    return out[:N, :Cout]


# ------------------------------ JAX glue -------------------------------------

def spline_basis_dense(pseudo):
    """Degree-1 open B-spline basis; dense (E, K) with 4 non-zeros per edge."""
    E = pseudo.shape[0]
    v = pseudo * (KERNEL_SIZE - 1)
    i0 = jnp.clip(jnp.floor(v), 0, KERNEL_SIZE - 2).astype(jnp.int32)
    f = v - i0.astype(v.dtype)
    B = jnp.zeros((E, K), dtype=jnp.float32)
    e_idx = jnp.arange(E)
    for a in (0, 1):
        for b in (0, 1):
            k = (i0[:, 0] + a) + KERNEL_SIZE * (i0[:, 1] + b)
            wa = f[:, 0] if a else 1.0 - f[:, 0]
            wb = f[:, 1] if b else 1.0 - f[:, 1]
            B = B.at[e_idx, k].add(wa * wb)
    return B


def spline_conv_elu(x, edge_index, pseudo, W, root, bias):
    """SplineConv (mean aggregation + root weight + bias) fused with ELU."""
    N, Cin = x.shape
    row, col = edge_index[0], edge_index[1]
    E = row.shape[0]
    B = spline_basis_dense(pseudo)                                 # (E, K)
    xsrc = x[col]                                                  # (E, Cin) gather (glue)
    msgs = spline_messages(B, xsrc, W)                             # (E, Cout) Pallas
    # TODO(synk): fuse this segment-sum into the message kernel via row-sorted edges +
    # PrefetchScalarGridSpec offsets to drop the (E, Cout) HBM round trip.
    agg = jax.ops.segment_sum(msgs, row, num_segments=N)           # scatter-add (glue)
    deg = jax.ops.segment_sum(jnp.ones((E,), jnp.float32), row,
                              num_segments=N).reshape(N, 1)
    return spline_combine(agg, deg, x, root, bias)                 # (N, Cout) Pallas


def normalized_cut_2d(edge_index, pos):
    row, col = edge_index[0], edge_index[1]
    edge_attr = jnp.linalg.norm(pos[row] - pos[col], axis=1)
    deg = jax.ops.segment_sum(jnp.ones_like(edge_attr), row, num_segments=pos.shape[0])
    deg = jnp.maximum(deg, 1.0)
    return edge_attr * (1.0 / deg[row] + 1.0 / deg[col])


def cartesian_adj(pos, edge_index):
    """CartesianAdj transform: pseudo-coords in [0, 1]."""
    row, col = edge_index[0], edge_index[1]
    cart = pos[col] - pos[row]
    m = jnp.maximum(jnp.abs(cart).max(), 1e-8)
    return jnp.clip(cart / (2.0 * m) + 0.5, 0.0, 1.0)


def graclus_pool(x, pos, edge_index, batch, weight):
    """Graclus greedy matching + max pooling + edge coalescing (host-side glue)."""
    # TODO(synk): host-side O(E) matching + np.unique force device<->host syncs per
    # forward; precompute clusters in the data loader (or re-express with device
    # segment ops) so the whole forward can be jitted end-to-end.
    row = np.asarray(edge_index[0]); col = np.asarray(edge_index[1])
    w = np.asarray(weight)
    N = x.shape[0]
    adj = [[] for _ in range(N)]
    for e in range(row.shape[0]):
        adj[int(row[e])].append((int(col[e]), float(w[e])))
    cluster = -np.ones(N, dtype=np.int64)
    cid = 0
    # TODO(synk): real graclus visits nodes in random order; deterministic order used here.
    for i in range(N):
        if cluster[i] >= 0:
            continue
        best, bw = -1, -np.inf
        for j, wj in adj[i]:
            if j != i and cluster[j] < 0 and wj > bw:
                best, bw = j, wj
        cluster[i] = cid
        if best >= 0:
            cluster[best] = cid
        cid += 1
    ncl = cid
    cl = jnp.asarray(cluster, dtype=jnp.int32)

    x_new = jax.ops.segment_max(x, cl, num_segments=ncl)           # max pooling of features
    cnt = jax.ops.segment_sum(jnp.ones((N, 1), jnp.float32), cl, num_segments=ncl)
    pos_new = jax.ops.segment_sum(pos, cl, num_segments=ncl) / cnt

    batch_np = np.asarray(batch)
    batch_new = np.zeros(ncl, dtype=np.int64)
    batch_new[cluster] = batch_np

    r2, c2 = cluster[row], cluster[col]
    mask = r2 != c2
    r2, c2 = r2[mask], c2[mask]
    keys = np.unique(r2 * ncl + c2)
    edge_new = jnp.asarray(np.stack([keys // ncl, keys % ncl]), dtype=jnp.int32)
    return x_new, pos_new, edge_new, jnp.asarray(batch_new, jnp.int32)


def net_forward(params, x, pos, edge_index, batch, num_graphs):
    # data.weight = CartesianAdj() (dataset transform)
    weight = cartesian_adj(pos, edge_index)
    # conv1 + ELU
    x = spline_conv_elu(x, edge_index, weight,
                        params["conv1_w"], params["conv1_root"], params["conv1_b"])
    # graclus pooling 1
    w_cut = normalized_cut_2d(edge_index, pos)
    x, pos, edge_index, batch = graclus_pool(x, pos, edge_index, batch, w_cut)
    weight = cartesian_adj(pos, edge_index)
    # conv2 + ELU
    x = spline_conv_elu(x, edge_index, weight,
                        params["conv2_w"], params["conv2_root"], params["conv2_b"])
    # graclus pooling 2
    w_cut = normalized_cut_2d(edge_index, pos)
    x, pos, edge_index, batch = graclus_pool(x, pos, edge_index, batch, w_cut)
    # scatter_mean over batch + fc1/ELU/dropout/fc2/log_softmax (single Pallas kernel)
    onehot = (batch[None, :] == jnp.arange(num_graphs, dtype=batch.dtype)[:, None]
              ).astype(jnp.float32)                                # (G, Nf)
    counts = onehot.sum(axis=1, keepdims=True)
    return _vmem_call(head_kernel,
                      jax.ShapeDtypeStruct((num_graphs, 10), jnp.float32),
                      onehot, x, counts,
                      params["fc1_w"], params["fc1_b"].reshape(1, -1),
                      params["fc2_w"], params["fc2_b"].reshape(1, -1))


# ------------------------------ example data ---------------------------------

def make_grid_graph(h, w):
    idx = np.arange(h * w).reshape(h, w)
    edges = []
    for i in range(h):
        for j in range(w):
            if j + 1 < w:
                edges += [(idx[i, j], idx[i, j + 1]), (idx[i, j + 1], idx[i, j])]
            if i + 1 < h:
                edges += [(idx[i, j], idx[i + 1, j]), (idx[i + 1, j], idx[i, j])]
    e = np.array(edges, dtype=np.int64).T
    pos = np.stack(np.meshgrid(np.arange(h), np.arange(w), indexing="ij"),
                   axis=-1).reshape(-1, 2).astype(np.float32)
    return e, pos


if __name__ == "__main__":
    key = jax.random.PRNGKey(0)
    ks = jax.random.split(key, 12)

    # two graphs, each a 4x4 grid of "superpixel" nodes -> N = 32, E = 96
    H = W_ = 4
    e0, p0 = make_grid_graph(H, W_)
    n_per = H * W_
    edge_index = np.concatenate([e0, e0 + n_per], axis=1)
    pos = np.concatenate([p0, p0], axis=0)
    batch = np.concatenate([np.zeros(n_per), np.ones(n_per)]).astype(np.int64)
    N = pos.shape[0]

    pos = jnp.asarray(pos) + 0.1 * jax.random.uniform(ks[0], (N, 2), jnp.float32)
    edge_index = jnp.asarray(edge_index, dtype=jnp.int32)
    batch = jnp.asarray(batch, dtype=jnp.int32)
    x = jax.random.uniform(ks[1], (N, 1), jnp.float32)            # MNIST-like intensities

    # deterministic parameters (shapes from Net.__init__)
    params = {
        "conv1_w":    0.3 * jax.random.normal(ks[2], (K, 1, 32), jnp.float32),
        "conv1_root": 0.3 * jax.random.normal(ks[3], (1, 32), jnp.float32),
        "conv1_b":    jnp.zeros((32,), jnp.float32),
        "conv2_w":    0.1 * jax.random.normal(ks[4], (K, 32, 64), jnp.float32),
        "conv2_root": 0.1 * jax.random.normal(ks[5], (32, 64), jnp.float32),
        "conv2_b":    jnp.zeros((64,), jnp.float32),
        "fc1_w":      (1.0 / np.sqrt(64)) * jax.random.normal(ks[6], (64, 128), jnp.float32),
        "fc1_b":      jnp.zeros((128,), jnp.float32),
        "fc2_w":      (1.0 / np.sqrt(128)) * jax.random.normal(ks[7], (128, 10), jnp.float32),
        "fc2_b":      jnp.zeros((10,), jnp.float32),
    }

    out = net_forward(params, x, pos, edge_index, batch, num_graphs=2)
    out = jax.block_until_ready(out)

    assert out.shape == (2, 10) and out.dtype == jnp.float32
    assert bool(jnp.all(jnp.isfinite(out)))
    # rows of log_softmax must exponentiate-sum to ~1
    assert bool(jnp.allclose(jnp.exp(out).sum(axis=1), 1.0, atol=1e-4))
    print("KERNEL_OK")
</pallas_src>

<mosaic_0001>
module attributes {stable_mosaic.version = 11 : i64} {
  func.func @spline_msg_kernel(%arg0: i32, %arg1: memref<96x25xbf16, #tpu.memory_space<vmem>>, %arg2: memref<96x1xbf16, #tpu.memory_space<vmem>>, %arg3: memref<25x1x128xf32, #tpu.memory_space<vmem>>, %arg4: memref<96x128xf32, #tpu.memory_space<vmem>>) attributes {dimension_semantics = [#tpu.dimension_semantics<parallel>], iteration_bounds = array<i64: 1>, scalar_prefetch = 0 : i64, scratch_operands = 0 : i64, tpu.core_type = #tpu.core_type<tc>, window_params = [{transform_indices = @transform_0, window_bounds = array<i64: 96, 25>}, {transform_indices = @transform_1, window_bounds = array<i64: 96, 1>}, {pipeline_mode = #tpu.pipeline_mode<synchronous>, transform_indices = @transform_2, window_bounds = array<i64: 25, 1, 128>}, {transform_indices = @transform_3, window_bounds = array<i64: 96, 128>}]} {
    %c0 = arith.constant 0 : index
    %c0_0 = arith.constant 0 : index
    %0 = vector.load %arg2[%c0, %c0_0] : memref<96x1xbf16, #tpu.memory_space<vmem>>, vector<96x1xbf16>
    %1 = arith.extf %0 : vector<96x1xbf16> to vector<96x1xf32>
    %c0_1 = arith.constant 0 : index
    %c0_2 = arith.constant 0 : index
    %2 = vector.load %arg1[%c0_1, %c0_2] : memref<96x25xbf16, #tpu.memory_space<vmem>>, vector<96x25xbf16>
    %3 = arith.extf %2 : vector<96x25xbf16> to vector<96x25xf32>
    %4 = vector.extract_strided_slice %3 {offsets = [0, 0], sizes = [96, 1], strides = [1, 1]} : vector<96x25xf32> to vector<96x1xf32>
    %5 = arith.mulf %4, %1 : vector<96x1xf32>
    %c0_3 = arith.constant 0 : index
    %c0_4 = arith.constant 0 : index
    %c0_5 = arith.constant 0 : index
    %6 = vector.load %arg3[%c0_3, %c0_4, %c0_5] : memref<25x1x128xf32, #tpu.memory_space<vmem>>, vector<1x1x128xf32>
    %7 = vector.shape_cast %6 : vector<1x1x128xf32> to vector<1x128xf32>
    %8 = vector.broadcast %5 : vector<96x1xf32> to vector<96x128xf32>
    %9 = vector.broadcast %7 : vector<1x128xf32> to vector<96x128xf32>
    %10 = arith.mulf %8, %9 : vector<96x128xf32>
    %c0_6 = arith.constant 0 : index
    %c0_7 = arith.constant 0 : index
    %11 = vector.load %arg4[%c0_6, %c0_7] : memref<96x128xf32, #tpu.memory_space<vmem>>, vector<96x128xf32>
    tpu.vector_store %arg4[%c0_6, %c0_7], %10 {strides = array<i32>} : memref<96x128xf32, #tpu.memory_space<vmem>>, vector<96x128xf32>,
    %12 = vector.extract_strided_slice %3 {offsets = [0, 1], sizes = [96, 1], strides = [1, 1]} : vector<96x25xf32> to vector<96x1xf32>
    %13 = arith.mulf %12, %1 : vector<96x1xf32>
    %c1 = arith.constant 1 : index
    %c0_8 = arith.constant 0 : index
    %c0_9 = arith.constant 0 : index
    %14 = vector.load %arg3[%c1, %c0_8, %c0_9] : memref<25x1x128xf32, #tpu.memory_space<vmem>>, vector<1x1x128xf32>
    %15 = vector.shape_cast %14 : vector<1x1x128xf32> to vector<1x128xf32>
    %16 = vector.broadcast %13 : vector<96x1xf32> to vector<96x128xf32>
    %17 = vector.broadcast %15 : vector<1x128xf32> to vector<96x128xf32>
    %18 = arith.mulf %16, %17 : vector<96x128xf32>
    %c0_10 = arith.constant 0 : index
    %c0_11 = arith.constant 0 : index
    %19 = vector.load %arg4[%c0_10, %c0_11] : memref<96x128xf32, #tpu.memory_space<vmem>>, vector<96x128xf32>
    %20 = arith.addf %19, %18 : vector<96x128xf32>
    %c0_12 = arith.constant 0 : index
    %c0_13 = arith.constant 0 : index
    %21 = vector.load %arg4[%c0_12, %c0_13] : memref<96x128xf32, #tpu.memory_space<vmem>>, vector<96x128xf32>
    tpu.vector_store %arg4[%c0_12, %c0_13], %20 {strides = array<i32>} : memref<96x128xf32, #tpu.memory_space<vmem>>, vector<96x128xf32>,
    %22 = vector.extract_strided_slice %3 {offsets = [0, 2], sizes = [96, 1], strides = [1, 1]} : vector<96x25xf32> to vector<96x1xf32>
    %23 = arith.mulf %22, %1 : vector<96x1xf32>
    %c2 = arith.constant 2 : index
    %c0_14 = arith.constant 0 : index
    %c0_15 = arith.constant 0 : index
    %24 = vector.load %arg3[%c2, %c0_14, %c0_15] : memref<25x1x128xf32, #tpu.memory_space<vmem>>, vector<1x1x128xf32>
    %25 = vector.shape_cast %24 : vector<1x1x128xf32> to vector<1x128xf32>
    %26 = vector.broadcast %23 : vector<96x1xf32> to vector<96x128xf32>
    %27 = vector.broadcast %25 : vector<1x128xf32> to vector<96x128xf32>
    %28 = arith.mulf %26, %27 : vector<96x128xf32>
    %c0_16 = arith.constant 0 : index
    %c0_17 = arith.constant 0 : index
    %29 = vector.load %arg4[%c0_16, %c0_17] : memref<96x128xf32, #tpu.memory_space<vmem>>, vector<96x128xf32>
    %30 = arith.addf %29, %28 : vector<96x128xf32>
    %c0_18 = arith.constant 0 : index
    %c0_19 = arith.constant 0 : index
    %31 = vector.load %arg4[%c0_18, %c0_19] : memref<96x128xf32, #tpu.memory_space<vmem>>, vector<96x128xf32>
    tpu.vector_store %arg4[%c0_18, %c0_19], %30 {strides = array<i32>} : memref<96x128xf32, #tpu.memory_space<vmem>>, vector<96x128xf32>,
    %32 = vector.extract_strided_slice %3 {offsets = [0, 3], sizes = [96, 1], strides = [1, 1]} : vector<96x25xf32> to vector<96x1xf32>
    %33 = arith.mulf %32, %1 : vector<96x1xf32>
    %c3 = arith.constant 3 : index
    %c0_20 = arith.constant 0 : index
    %c0_21 = arith.constant 0 : index
    %34 = vector.load %arg3[%c3, %c0_20, %c0_21] : memref<25x1x128xf32, #tpu.memory_space<vmem>>, vector<1x1x128xf32>
    %35 = vector.shape_cast %34 : vector<1x1x128xf32> to vector<1x128xf32>
    %36 = vector.broadcast %33 : vector<96x1xf32> to vector<96x128xf32>
    %37 = vector.broadcast %35 : vector<1x128xf32> to vector<96x128xf32>
    %38 = arith.mulf %36, %37 : vector<96x128xf32>
    %c0_22 = arith.constant 0 : index
    %c0_23 = arith.constant 0 : index
    %39 = vector.load %arg4[%c0_22, %c0_23] : memref<96x128xf32, #tpu.memory_space<vmem>>, vector<96x128xf32>
    %40 = arith.addf %39, %38 : vector<96x128xf32>
    %c0_24 = arith.constant 0 : index
    %c0_25 = arith.constant 0 : index
    %41 = vector.load %arg4[%c0_24, %c0_25] : memref<96x128xf32, #tpu.memory_space<vmem>>, vector<96x128xf32>
    tpu.vector_store %arg4[%c0_24, %c0_25], %40 {strides = array<i32>} : memref<96x128xf32, #tpu.memory_space<vmem>>, vector<96x128xf32>,
    %42 = vector.extract_strided_slice %3 {offsets = [0, 4], sizes = [96, 1], strides = [1, 1]} : vector<96x25xf32> to vector<96x1xf32>
    %43 = arith.mulf %42, %1 : vector<96x1xf32>
    %c4 = arith.constant 4 : index
    %c0_26 = arith.constant 0 : index
    %c0_27 = arith.constant 0 : index
    %44 = vector.load %arg3[%c4, %c0_26, %c0_27] : memref<25x1x128xf32, #tpu.memory_space<vmem>>, vector<1x1x128xf32>
    %45 = vector.shape_cast %44 : vector<1x1x128xf32> to vector<1x128xf32>
    %46 = vector.broadcast %43 : vector<96x1xf32> to vector<96x128xf32>
    %47 = vector.broadcast %45 : vector<1x128xf32> to vector<96x128xf32>
    %48 = arith.mulf %46, %47 : vector<96x128xf32>
    %c0_28 = arith.constant 0 : index
    %c0_29 = arith.constant 0 : index
    %49 = vector.load %arg4[%c0_28, %c0_29] : memref<96x128xf32, #tpu.memory_space<vmem>>, vector<96x128xf32>
    %50 = arith.addf %49, %48 : vector<96x128xf32>
    %c0_30 = arith.constant 0 : index
    %c0_31 = arith.constant 0 : index
    %51 = vector.load %arg4[%c0_30, %c0_31] : memref<96x128xf32, #tpu.memory_space<vmem>>, vector<96x128xf32>
    tpu.vector_store %arg4[%c0_30, %c0_31], %50 {strides = array<i32>} : memref<96x128xf32, #tpu.memory_space<vmem>>, vector<96x128xf32>,
    %52 = vector.extract_strided_slice %3 {offsets = [0, 5], sizes = [96, 1], strides = [1, 1]} : vector<96x25xf32> to vector<96x1xf32>
    %53 = arith.mulf %52, %1 : vector<96x1xf32>
    %c5 = arith.constant 5 : index
    %c0_32 = arith.constant 0 : index
    %c0_33 = arith.constant 0 : index
    %54 = vector.load %arg3[%c5, %c0_32, %c0_33] : memref<25x1x128xf32, #tpu.memory_space<vmem>>, vector<1x1x128xf32>
    %55 = vector.shape_cast %54 : vector<1x1x128xf32> to vector<1x128xf32>
    %56 = vector.broadcast %53 : vector<96x1xf32> to vector<96x128xf32>
    %57 = vector.broadcast %55 : vector<1x128xf32> to vector<96x128xf32>
    %58 = arith.mulf %56, %57 : vector<96x128xf32>
    %c0_34 = arith.constant 0 : index
    %c0_35 = arith.constant 0 : index
    %59 = vector.load %arg4[%c0_34, %c0_35] : memref<96x128xf32, #tpu.memory_space<vmem>>, vector<96x128xf32>
    %60 = arith.addf %59, %58 : vector<96x128xf32>
    %c0_36 = arith.constant 0 : index
    %c0_37 = arith.constant 0 : index
    %61 = vector.load %arg4[%c0_36, %c0_37] : memref<96x128xf32, #tpu.memory_space<vmem>>, vector<96x128xf32>
    tpu.vector_store %arg4[%c0_36, %c0_37], %60 {strides = array<i32>} : memref<96x128xf32, #tpu.memory_space<vmem>>, vector<96x128xf32>,
    %62 = vector.extract_strided_slice %3 {offsets = [0, 6], sizes = [96, 1], strides = [1, 1]} : vector<96x25xf32> to vector<96x1xf32>
    %63 = arith.mulf %62, %1 : vector<96x1xf32>
    %c6 = arith.constant 6 : index
    %c0_38 = arith.constant 0 : index
    %c0_39 = arith.constant 0 : index
    %64 = vector.load %arg3[%c6, %c0_38, %c0_39] : memref<25x1x128xf32, #tpu.memory_space<vmem>>, vector<1x1x128xf32>
    %65 = vector.shape_cast %64 : vector<1x1x128xf32> to vector<1x128xf32>
    %66 = vector.broadcast %63 : vector<96x1xf32> to vector<96x128xf32>
    %67 = vector.broadcast %65 : vector<1x128xf32> to vector<96x128xf32>
    %68 = arith.mulf %66, %67 : vector<96x128xf32>
    %c0_40 = arith.constant 0 : index
    %c0_41 = arith.constant 0 : index
    %69 = vector.load %arg4[%c0_40, %c0_41] : memref<96x128xf32, #tpu.memory_space<vmem>>, vector<96x128xf32>
    %70 = arith.addf %69, %68 : vector<96x128xf32>
    %c0_42 = arith.constant 0 : index
    %c0_43 = arith.constant 0 : index
    %71 = vector.load %arg4[%c0_42, %c0_43] : memref<96x128xf32, #tpu.memory_space<vmem>>, vector<96x128xf32>
    tpu.vector_store %arg4[%c0_42, %c0_43], %70 {strides = array<i32>} : memref<96x128xf32, #tpu.memory_space<vmem>>, vector<96x128xf32>,
    %72 = vector.extract_strided_slice %3 {offsets = [0, 7], sizes = [96, 1], strides = [1, 1]} : vector<96x25xf32> to vector<96x1xf32>
    %73 = arith.mulf %72, %1 : vector<96x1xf32>
    %c7 = arith.constant 7 : index
    %c0_44 = arith.constant 0 : index
    %c0_45 = arith.constant 0 : index
    %74 = vector.load %arg3[%c7, %c0_44, %c0_45] : memref<25x1x128xf32, #tpu.memory_space<vmem>>, vector<1x1x128xf32>
    %75 = vector.shape_cast %74 : vector<1x1x128xf32> to vector<1x128xf32>
    %76 = vector.broadcast %73 : vector<96x1xf32> to vector<96x128xf32>
    %77 = vector.broadcast %75 : vector<1x128xf32> to vector<96x128xf32>
    %78 = arith.mulf %76, %77 : vector<96x128xf32>
    %c0_46 = arith.constant 0 : index
    %c0_47 = arith.constant 0 : index
    %79 = vector.load %arg4[%c0_46, %c0_47] : memref<96x128xf32, #tpu.memory_space<vmem>>, vector<96x128xf32>
    %80 = arith.addf %79, %78 : vector<96x128xf32>
    %c0_48 = arith.constant 0 : index
    %c0_49 = arith.constant 0 : index
    %81 = vector.load %arg4[%c0_48, %c0_49] : memref<96x128xf32, #tpu.memory_space<vmem>>, vector<96x128xf32>
    tpu.vector_store %arg4[%c0_48, %c0_49], %80 {strides = array<i32>} : memref<96x128xf32, #tpu.memory_space<vmem>>, vector<96x128xf32>,
    %82 = vector.extract_strided_slice %3 {offsets = [0, 8], sizes = [96, 1], strides = [1, 1]} : vector<96x25xf32> to vector<96x1xf32>
    %83 = arith.mulf %82, %1 : vector<96x1xf32>
    %c8 = arith.constant 8 : index
    %c0_50 = arith.constant 0 : index
    %c0_51 = arith.constant 0 : index
    %84 = vector.load %arg3[%c8, %c0_50, %c0_51] : memref<25x1x128xf32, #tpu.memory_space<vmem>>, vector<1x1x128xf32>
    %85 = vector.shape_cast %84 : vector<1x1x128xf32> to vector<1x128xf32>
    %86 = vector.broadcast %83 : vector<96x1xf32> to vector<96x128xf32>
    %87 = vector.broadcast %85 : vector<1x128xf32> to vector<96x128xf32>
    %88 = arith.mulf %86, %87 : vector<96x128xf32>
    %c0_52 = arith.constant 0 : index
    %c0_53 = arith.constant 0 : index
    %89 = vector.load %arg4[%c0_52, %c0_53] : memref<96x128xf32, #tpu.memory_space<vmem>>, vector<96x128xf32>
    %90 = arith.addf %89, %88 : vector<96x128xf32>
    %c0_54 = arith.constant 0 : index
    %c0_55 = arith.constant 0 : index
    %91 = vector.load %arg4[%c0_54, %c0_55] : memref<96x128xf32, #tpu.memory_space<vmem>>, vector<96x128xf32>
    tpu.vector_store %arg4[%c0_54, %c0_55], %90 {strides = array<i32>} : memref<96x128xf32, #tpu.memory_space<vmem>>, vector<96x128xf32>,
    %92 = vector.extract_strided_slice %3 {offsets = [0, 9], sizes = [96, 1], strides = [1, 1]} : vector<96x25xf32> to vector<96x1xf32>
    %93 = arith.mulf %92, %1 : vector<96x1xf32>
    %c9 = arith.constant 9 : index
    %c0_56 = arith.constant 0 : index
    %c0_57 = arith.constant 0 : index
    %94 = vector.load %arg3[%c9, %c0_56, %c0_57] : memref<25x1x128xf32, #tpu.memory_space<vmem>>, vector<1x1x128xf32>
    %95 = vector.shape_cast %94 : vector<1x1x128xf32> to vector<1x128xf32>
    %96 = vector.broadcast %93 : vector<96x1xf32> to vector<96x128xf32>
    %97 = vector.broadcast %95 : vector<1x128xf32> to vector<96x128xf32>
    %98 = arith.mulf %96, %97 : vector<96x128xf32>
    %c0_58 = arith.constant 0 : index
    %c0_59 = arith.constant 0 : index
    %99 = vector.load %arg4[%c0_58, %c0_59] : memref<96x128xf32, #tpu.memory_space<vmem>>, vector<96x128xf32>
    %100 = arith.addf %99, %98 : vector<96x128xf32>
    %c0_60 = arith.constant 0 : index
    %c0_61 = arith.constant 0 : index
    %101 = vector.load %arg4[%c0_60, %c0_61] : memref<96x128xf32, #tpu.memory_space<vmem>>, vector<96x128xf32>
    tpu.vector_store %arg4[%c0_60, %c0_61], %100 {strides = array<i32>} : memref<96x128xf32, #tpu.memory_space<vmem>>, vector<96x128xf32>,
    %102 = vector.extract_strided_slice %3 {offsets = [0, 10], sizes = [96, 1], strides = [1, 1]} : vector<96x25xf32> to vector<96x1xf32>
    %103 = arith.mulf %102, %1 : vector<96x1xf32>
    %c10 = arith.constant 10 : index
    %c0_62 = arith.constant 0 : index
    %c0_63 = arith.constant 0 : index
    %104 = vector.load %arg3[%c10, %c0_62, %c0_63] : memref<25x1x128xf32, #tpu.memory_space<vmem>>, vector<1x1x128xf32>
    %105 = vector.shape_cast %104 : vector<1x1x128xf32> to vector<1x128xf32>
    %106 = vector.broadcast %103 : vector<96x1xf32> to vector<96x128xf32>
    %107 = vector.broadcast %105 : vector<1x128xf32> to vector<96x128xf32>
    %108 = arith.mulf %106, %107 : vector<96x128xf32>
    %c0_64 = arith.constant 0 : index
    %c0_65 = arith.constant 0 : index
    %109 = vector.load %arg4[%c0_64, %c0_65] : memref<96x128xf32, #tpu.memory_space<vmem>>, vector<96x128xf32>
    %110 = arith.addf %109, %108 : vector<96x128xf32>
    %c0_66 = arith.constant 0 : index
    %c0_67 = arith.constant 0 : index
    %111 = vector.load %arg4[%c0_66, %c0_67] : memref<96x128xf32, #tpu.memory_space<vmem>>, vector<96x128xf32>
    tpu.vector_store %arg4[%c0_66, %c0_67], %110 {strides = array<i32>} : memref<96x128xf32, #tpu.memory_space<vmem>>, vector<96x128xf32>,
    %112 = vector.extract_strided_slice %3 {offsets = [0, 11], sizes = [96, 1], strides = [1, 1]} : vector<96x25xf32> to vector<96x1xf32>
    %113 = arith.mulf %112, %1 : vector<96x1xf32>
    %c11 = arith.constant 11 : index
    %c0_68 = arith.constant 0 : index
    %c0_69 = arith.constant 0 : index
    %114 = vector.load %arg3[%c11, %c0_68, %c0_69] : memref<25x1x128xf32, #tpu.memory_space<vmem>>, vector<1x1x128xf32>
    %115 = vector.shape_cast %114 : vector<1x1x128xf32> to vector<1x128xf32>
    %116 = vector.broadcast %113 : vector<96x1xf32> to vector<96x128xf32>
    %117 = vector.broadcast %115 : vector<1x128xf32> to vector<96x128xf32>
    %118 = arith.mulf %116, %117 : vector<96x128xf32>
    %c0_70 = arith.constant 0 : index
    %c0_71 = arith.constant 0 : index
    %119 = vector.load %arg4[%c0_70, %c0_71] : memref<96x128xf32, #tpu.memory_space<vmem>>, vector<96x128xf32>
    %120 = arith.addf %119, %118 : vector<96x128xf32>
    %c0_72 = arith.constant 0 : index
    %c0_73 = arith.constant 0 : index
    %121 = vector.load %arg4[%c0_72, %c0_73] : memref<96x128xf32, #tpu.memory_space<vmem>>, vector<96x128xf32>
    tpu.vector_store %arg4[%c0_72, %c0_73], %120 {strides = array<i32>} : memref<96x128xf32, #tpu.memory_space<vmem>>, vector<96x128xf32>,
    %122 = vector.extract_strided_slice %3 {offsets = [0, 12], sizes = [96, 1], strides = [1, 1]} : vector<96x25xf32> to vector<96x1xf32>
    %123 = arith.mulf %122, %1 : vector<96x1xf32>
    %c12 = arith.constant 12 : index
    %c0_74 = arith.constant 0 : index
    %c0_75 = arith.constant 0 : index
    %124 = vector.load %arg3[%c12, %c0_74, %c0_75] : memref<25x1x128xf32, #tpu.memory_space<vmem>>, vector<1x1x128xf32>
    %125 = vector.shape_cast %124 : vector<1x1x128xf32> to vector<1x128xf32>
    %126 = vector.broadcast %123 : vector<96x1xf32> to vector<96x128xf32>
    %127 = vector.broadcast %125 : vector<1x128xf32> to vector<96x128xf32>
    %128 = arith.mulf %126, %127 : vector<96x128xf32>
    %c0_76 = arith.constant 0 : index
    %c0_77 = arith.constant 0 : index
    %129 = vector.load %arg4[%c0_76, %c0_77] : memref<96x128xf32, #tpu.memory_space<vmem>>, vector<96x128xf32>
    %130 = arith.addf %129, %128 : vector<96x128xf32>
    %c0_78 = arith.constant 0 : index
    %c0_79 = arith.constant 0 : index
    %131 = vector.load %arg4[%c0_78, %c0_79] : memref<96x128xf32, #tpu.memory_space<vmem>>, vector<96x128xf32>
    tpu.vector_store %arg4[%c0_78, %c0_79], %130 {strides = array<i32>} : memref<96x128xf32, #tpu.memory_space<vmem>>, vector<96x128xf32>,
    %132 = vector.extract_strided_slice %3 {offsets = [0, 13], sizes = [96, 1], strides = [1, 1]} : vector<96x25xf32> to vector<96x1xf32>
    %133 = arith.mulf %132, %1 : vector<96x1xf32>
    %c13 = arith.constant 13 : index
    %c0_80 = arith.constant 0 : index
    %c0_81 = arith.constant 0 : index
    %134 = vector.load %arg3[%c13, %c0_80, %c0_81] : memref<25x1x128xf32, #tpu.memory_space<vmem>>, vector<1x1x128xf32>
    %135 = vector.shape_cast %134 : vector<1x1x128xf32> to vector<1x128xf32>
    %136 = vector.broadcast %133 : vector<96x1xf32> to vector<96x128xf32>
    %137 = vector.broadcast %135 : vector<1x128xf32> to vector<96x128xf32>
    %138 = arith.mulf %136, %137 : vector<96x128xf32>
    %c0_82 = arith.constant 0 : index
    %c0_83 = arith.constant 0 : index
    %139 = vector.load %arg4[%c0_82, %c0_83] : memref<96x128xf32, #tpu.memory_space<vmem>>, vector<96x128xf32>
    %140 = arith.addf %139, %138 : vector<96x128xf32>
    %c0_84 = arith.constant 0 : index
    %c0_85 = arith.constant 0 : index
    %141 = vector.load %arg4[%c0_84, %c0_85] : memref<96x128xf32, #tpu.memory_space<vmem>>, vector<96x128xf32>
    tpu.vector_store %arg4[%c0_84, %c0_85], %140 {strides = array<i32>} : memref<96x128xf32, #tpu.memory_space<vmem>>, vector<96x128xf32>,
    %142 = vector.extract_strided_slice %3 {offsets = [0, 14], sizes = [96, 1], strides = [1, 1]} : vector<96x25xf32> to vector<96x1xf32>
    %143 = arith.mulf %142, %1 : vector<96x1xf32>
    %c14 = arith.constant 14 : index
    %c0_86 = arith.constant 0 : index
    %c0_87 = arith.constant 0 : index
    %144 = vector.load %arg3[%c14, %c0_86, %c0_87] : memref<25x1x128xf32, #tpu.memory_space<vmem>>, vector<1x1x128xf32>
    %145 = vector.shape_cast %144 : vector<1x1x128xf32> to vector<1x128xf32>
    %146 = vector.broadcast %143 : vector<96x1xf32> to vector<96x128xf32>
    %147 = vector.broadcast %145 : vector<1x128xf32> to vector<96x128xf32>
    %148 = arith.mulf %146, %147 : vector<96x128xf32>
    %c0_88 = arith.constant 0 : index
    %c0_89 = arith.constant 0 : index
    %149 = vector.load %arg4[%c0_88, %c0_89] : memref<96x128xf32, #tpu.memory_space<vmem>>, vector<96x128xf32>
    %150 = arith.addf %149, %148 : vector<96x128xf32>
    %c0_90 = arith.constant 0 : index
    %c0_91 = arith.constant 0 : index
    %151 = vector.load %arg4[%c0_90, %c0_91] : memref<96x128xf32, #tpu.memory_space<vmem>>, vector<96x128xf32>
    tpu.vector_store %arg4[%c0_90, %c0_91], %150 {strides = array<i32>} : memref<96x128xf32, #tpu.memory_space<vmem>>, vector<96x128xf32>,
    %152 = vector.extract_strided_slice %3 {offsets = [0, 15], sizes = [96, 1], strides = [1, 1]} : vector<96x25xf32> to vector<96x1xf32>
    %153 = arith.mulf %152, %1 : vector<96x1xf32>
    %c15 = arith.constant 15 : index
    %c0_92 = arith.constant 0 : index
    %c0_93 = arith.constant 0 : index
    %154 = vector.load %arg3[%c15, %c0_92, %c0_93] : memref<25x1x128xf32, #tpu.memory_space<vmem>>, vector<1x1x128xf32>
    %155 = vector.shape_cast %154 : vector<1x1x128xf32> to vector<1x128xf32>
    %156 = vector.broadcast %153 : vector<96x1xf32> to vector<96x128xf32>
    %157 = vector.broadcast %155 : vector<1x128xf32> to vector<96x128xf32>
    %158 = arith.mulf %156, %157 : vector<96x128xf32>
    %c0_94 = arith.constant 0 : index
    %c0_95 = arith.constant 0 : index
    %159 = vector.load %arg4[%c0_94, %c0_95] : memref<96x128xf32, #tpu.memory_space<vmem>>, vector<96x128xf32>
    %160 = arith.addf %159, %158 : vector<96x128xf32>
    %c0_96 = arith.constant 0 : index
    %c0_97 = arith.constant 0 : index
    %161 = vector.load %arg4[%c0_96, %c0_97] : memref<96x128xf32, #tpu.memory_space<vmem>>, vector<96x128xf32>
    tpu.vector_store %arg4[%c0_96, %c0_97], %160 {strides = array<i32>} : memref<96x128xf32, #tpu.memory_space<vmem>>, vector<96x128xf32>,
    %162 = vector.extract_strided_slice %3 {offsets = [0, 16], sizes = [96, 1], strides = [1, 1]} : vector<96x25xf32> to vector<96x1xf32>
    %163 = arith.mulf %162, %1 : vector<96x1xf32>
    %c16 = arith.constant 16 : index
    %c0_98 = arith.constant 0 : index
    %c0_99 = arith.constant 0 : index
    %164 = vector.load %arg3[%c16, %c0_98, %c0_99] : memref<25x1x128xf32, #tpu.memory_space<vmem>>, vector<1x1x128xf32>
    %165 = vector.shape_cast %164 : vector<1x1x128xf32> to vector<1x128xf32>
    %166 = vector.broadcast %163 : vector<96x1xf32> to vector<96x128xf32>
    %167 = vector.broadcast %165 : vector<1x128xf32> to vector<96x128xf32>
    %168 = arith.mulf %166, %167 : vector<96x128xf32>
    %c0_100 = arith.constant 0 : index
    %c0_101 = arith.constant 0 : index
    %169 = vector.load %arg4[%c0_100, %c0_101] : memref<96x128xf32, #tpu.memory_space<vmem>>, vector<96x128xf32>
    %170 = arith.addf %169, %168 : vector<96x128xf32>
    %c0_102 = arith.constant 0 : index
    %c0_103 = arith.constant 0 : index
    %171 = vector.load %arg4[%c0_102, %c0_103] : memref<96x128xf32, #tpu.memory_space<vmem>>, vector<96x128xf32>
    tpu.vector_store %arg4[%c0_102, %c0_103], %170 {strides = array<i32>} : memref<96x128xf32, #tpu.memory_space<vmem>>, vector<96x128xf32>,
    %172 = vector.extract_strided_slice %3 {offsets = [0, 17], sizes = [96, 1], strides = [1, 1]} : vector<96x25xf32> to vector<96x1xf32>
    %173 = arith.mulf %172, %1 : vector<96x1xf32>
    %c17 = arith.constant 17 : index
    %c0_104 = arith.constant 0 : index
    %c0_105 = arith.constant 0 : index
    %174 = vector.load %arg3[%c17, %c0_104, %c0_105] : memref<25x1x128xf32, #tpu.memory_space<vmem>>, vector<1x1x128xf32>
    %175 = vector.shape_cast %174 : vector<1x1x128xf32> to vector<1x128xf32>
    %176 = vector.broadcast %173 : vector<96x1xf32> to vector<96x128xf32>
    %177 = vector.broadcast %175 : vector<1x128xf32> to vector<96x128xf32>
    %178 = arith.mulf %176, %177 : vector<96x128xf32>
    %c0_106 = arith.constant 0 : index
    %c0_107 = arith.constant 0 : index
    %179 = vector.load %arg4[%c0_106, %c0_107] : memref<96x128xf32, #tpu.memory_space<vmem>>, vector<96x128xf32>
    %180 = arith.addf %179, %178 : vector<96x128xf32>
    %c0_108 = arith.constant 0 : index
    %c0_109 = arith.constant 0 : index
    %181 = vector.load %arg4[%c0_108, %c0_109] : memref<96x128xf32, #tpu.memory_space<vmem>>, vector<96x128xf32>
    tpu.vector_store %arg4[%c0_108, %c0_109], %180 {strides = array<i32>} : memref<96x128xf32, #tpu.memory_space<vmem>>, vector<96x128xf32>,
    %182 = vector.extract_strided_slice %3 {offsets = [0, 18], sizes = [96, 1], strides = [1, 1]} : vector<96x25xf32> to vector<96x1xf32>
    %183 = arith.mulf %182, %1 : vector<96x1xf32>
    %c18 = arith.constant 18 : index
    %c0_110 = arith.constant 0 : index
    %c0_111 = arith.constant 0 : index
    %184 = vector.load %arg3[%c18, %c0_110, %c0_111] : memref<25x1x128xf32, #tpu.memory_space<vmem>>, vector<1x1x128xf32>
    %185 = vector.shape_cast %184 : vector<1x1x128xf32> to vector<1x128xf32>
    %186 = vector.broadcast %183 : vector<96x1xf32> to vector<96x128xf32>
    %187 = vector.broadcast %185 : vector<1x128xf32> to vector<96x128xf32>
    %188 = arith.mulf %186, %187 : vector<96x128xf32>
    %c0_112 = arith.constant 0 : index
    %c0_113 = arith.constant 0 : index
    %189 = vector.load %arg4[%c0_112, %c0_113] : memref<96x128xf32, #tpu.memory_space<vmem>>, vector<96x128xf32>
    %190 = arith.addf %189, %188 : vector<96x128xf32>
    %c0_114 = arith.constant 0 : index
    %c0_115 = arith.constant 0 : index
    %191 = vector.load %arg4[%c0_114, %c0_115] : memref<96x128xf32, #tpu.memory_space<vmem>>, vector<96x128xf32>
    tpu.vector_store %arg4[%c0_114, %c0_115], %190 {strides = array<i32>} : memref<96x128xf32, #tpu.memory_space<vmem>>, vector<96x128xf32>,
    %192 = vector.extract_strided_slice %3 {offsets = [0, 19], sizes = [96, 1], strides = [1, 1]} : vector<96x25xf32> to vector<96x1xf32>
    %193 = arith.mulf %192, %1 : vector<96x1xf32>
    %c19 = arith.constant 19 : index
    %c0_116 = arith.constant 0 : index
    %c0_117 = arith.constant 0 : index
    %194 = vector.load %arg3[%c19, %c0_116, %c0_117] : memref<25x1x128xf32, #tpu.memory_space<vmem>>, vector<1x1x128xf32>
    %195 = vector.shape_cast %194 : vector<1x1x128xf32> to vector<1x128xf32>
    %196 = vector.broadcast %193 : vector<96x1xf32> to vector<96x128xf32>
    %197 = vector.broadcast %195 : vector<1x128xf32> to vector<96x128xf32>
    %198 = arith.mulf %196, %197 : vector<96x128xf32>
    %c0_118 = arith.constant 0 : index
    %c0_119 = arith.constant 0 : index
    %199 = vector.load %arg4[%c0_118, %c0_119] : memref<96x128xf32, #tpu.memory_space<vmem>>, vector<96x128xf32>
    %200 = arith.addf %199, %198 : vector<96x128xf32>
    %c0_120 = arith.constant 0 : index
    %c0_121 = arith.constant 0 : index
    %201 = vector.load %arg4[%c0_120, %c0_121] : memref<96x128xf32, #tpu.memory_space<vmem>>, vector<96x128xf32>
    tpu.vector_store %arg4[%c0_120, %c0_121], %200 {strides = array<i32>} : memref<96x128xf32, #tpu.memory_space<vmem>>, vector<96x128xf32>,
    %202 = vector.extract_strided_slice %3 {offsets = [0, 20], sizes = [96, 1], strides = [1, 1]} : vector<96x25xf32> to vector<96x1xf32>
    %203 = arith.mulf %202, %1 : vector<96x1xf32>
    %c20 = arith.constant 20 : index
    %c0_122 = arith.constant 0 : index
    %c0_123 = arith.constant 0 : index
    %204 = vector.load %arg3[%c20, %c0_122, %c0_123] : memref<25x1x128xf32, #tpu.memory_space<vmem>>, vector<1x1x128xf32>
    %205 = vector.shape_cast %204 : vector<1x1x128xf32> to vector<1x128xf32>
    %206 = vector.broadcast %203 : vector<96x1xf32> to vector<96x128xf32>
    %207 = vector.broadcast %205 : vector<1x128xf32> to vector<96x128xf32>
    %208 = arith.mulf %206, %207 : vector<96x128xf32>
    %c0_124 = arith.constant 0 : index
    %c0_125 = arith.constant 0 : index
    %209 = vector.load %arg4[%c0_124, %c0_125] : memref<96x128xf32, #tpu.memory_space<vmem>>, vector<96x128xf32>
    %210 = arith.addf %209, %208 : vector<96x128xf32>
    %c0_126 = arith.constant 0 : index
    %c0_127 = arith.constant 0 : index
    %211 = vector.load %arg4[%c0_126, %c0_127] : memref<96x128xf32, #tpu.memory_space<vmem>>, vector<96x128xf32>
    tpu.vector_store %arg4[%c0_126, %c0_127], %210 {strides = array<i32>} : memref<96x128xf32, #tpu.memory_space<vmem>>, vector<96x128xf32>,
    %212 = vector.extract_strided_slice %3 {offsets = [0, 21], sizes = [96, 1], strides = [1, 1]} : vector<96x25xf32> to vector<96x1xf32>
    %213 = arith.mulf %212, %1 : vector<96x1xf32>
    %c21 = arith.constant 21 : index
    %c0_128 = arith.constant 0 : index
    %c0_129 = arith.constant 0 : index
    %214 = vector.load %arg3[%c21, %c0_128, %c0_129] : memref<25x1x128xf32, #tpu.memory_space<vmem>>, vector<1x1x128xf32>
    %215 = vector.shape_cast %214 : vector<1x1x128xf32> to vector<1x128xf32>
    %216 = vector.broadcast %213 : vector<96x1xf32> to vector<96x128xf32>
    %217 = vector.broadcast %215 : vector<1x128xf32> to vector<96x128xf32>
    %218 = arith.mulf %216, %217 : vector<96x128xf32>
    %c0_130 = arith.constant 0 : index
    %c0_131 = arith.constant 0 : index
    %219 = vector.load %arg4[%c0_130, %c0_131] : memref<96x128xf32, #tpu.memory_space<vmem>>, vector<96x128xf32>
    %220 = arith.addf %219, %218 : vector<96x128xf32>
    %c0_132 = arith.constant 0 : index
    %c0_133 = arith.constant 0 : index
    %221 = vector.load %arg4[%c0_132, %c0_133] : memref<96x128xf32, #tpu.memory_space<vmem>>, vector<96x128xf32>
    tpu.vector_store %arg4[%c0_132, %c0_133], %220 {strides = array<i32>} : memref<96x128xf32, #tpu.memory_space<vmem>>, vector<96x128xf32>,
    %222 = vector.extract_strided_slice %3 {offsets = [0, 22], sizes = [96, 1], strides = [1, 1]} : vector<96x25xf32> to vector<96x1xf32>
    %223 = arith.mulf %222, %1 : vector<96x1xf32>
    %c22 = arith.constant 22 : index
    %c0_134 = arith.constant 0 : index
    %c0_135 = arith.constant 0 : index
    %224 = vector.load %arg3[%c22, %c0_134, %c0_135] : memref<25x1x128xf32, #tpu.memory_space<vmem>>, vector<1x1x128xf32>
    %225 = vector.shape_cast %224 : vector<1x1x128xf32> to vector<1x128xf32>
    %226 = vector.broadcast %223 : vector<96x1xf32> to vector<96x128xf32>
    %227 = vector.broadcast %225 : vector<1x128xf32> to vector<96x128xf32>
    %228 = arith.mulf %226, %227 : vector<96x128xf32>
    %c0_136 = arith.constant 0 : index
    %c0_137 = arith.constant 0 : index
    %229 = vector.load %arg4[%c0_136, %c0_137] : memref<96x128xf32, #tpu.memory_space<vmem>>, vector<96x128xf32>
    %230 = arith.addf %229, %228 : vector<96x128xf32>
    %c0_138 = arith.constant 0 : index
    %c0_139 = arith.constant 0 : index
    %231 = vector.load %arg4[%c0_138, %c0_139] : memref<96x128xf32, #tpu.memory_space<vmem>>, vector<96x128xf32>
    tpu.vector_store %arg4[%c0_138, %c0_139], %230 {strides = array<i32>} : memref<96x128xf32, #tpu.memory_space<vmem>>, vector<96x128xf32>,
    %232 = vector.extract_strided_slice %3 {offsets = [0, 23], sizes = [96, 1], strides = [1, 1]} : vector<96x25xf32> to vector<96x1xf32>
    %233 = arith.mulf %232, %1 : vector<96x1xf32>
    %c23 = arith.constant 23 : index
    %c0_140 = arith.constant 0 : index
    %c0_141 = arith.constant 0 : index
    %234 = vector.load %arg3[%c23, %c0_140, %c0_141] : memref<25x1x128xf32, #tpu.memory_space<vmem>>, vector<1x1x128xf32>
    %235 = vector.shape_cast %234 : vector<1x1x128xf32> to vector<1x128xf32>
    %236 = vector.broadcast %233 : vector<96x1xf32> to vector<96x128xf32>
    %237 = vector.broadcast %235 : vector<1x128xf32> to vector<96x128xf32>
    %238 = arith.mulf %236, %237 : vector<96x128xf32>
    %c0_142 = arith.constant 0 : index
    %c0_143 = arith.constant 0 : index
    %239 = vector.load %arg4[%c0_142, %c0_143] : memref<96x128xf32, #tpu.memory_space<vmem>>, vector<96x128xf32>
    %240 = arith.addf %239, %238 : vector<96x128xf32>
    %c0_144 = arith.constant 0 : index
    %c0_145 = arith.constant 0 : index
    %241 = vector.load %arg4[%c0_144, %c0_145] : memref<96x128xf32, #tpu.memory_space<vmem>>, vector<96x128xf32>
    tpu.vector_store %arg4[%c0_144, %c0_145], %240 {strides = array<i32>} : memref<96x128xf32, #tpu.memory_space<vmem>>, vector<96x128xf32>,
    %242 = vector.extract_strided_slice %3 {offsets = [0, 24], sizes = [96, 1], strides = [1, 1]} : vector<96x25xf32> to vector<96x1xf32>
    %243 = arith.mulf %242, %1 : vector<96x1xf32>
    %c24 = arith.constant 24 : index
    %c0_146 = arith.constant 0 : index
    %c0_147 = arith.constant 0 : index
    %244 = vector.load %arg3[%c24, %c0_146, %c0_147] : memref<25x1x128xf32, #tpu.memory_space<vmem>>, vector<1x1x128xf32>
    %245 = vector.shape_cast %244 : vector<1x1x128xf32> to vector<1x128xf32>
    %246 = vector.broadcast %243 : vector<96x1xf32> to vector<96x128xf32>
    %247 = vector.broadcast %245 : vector<1x128xf32> to vector<96x128xf32>
    %248 = arith.mulf %246, %247 : vector<96x128xf32>
    %c0_148 = arith.constant 0 : index
    %c0_149 = arith.constant 0 : index
    %249 = vector.load %arg4[%c0_148, %c0_149] : memref<96x128xf32, #tpu.memory_space<vmem>>, vector<96x128xf32>
    %250 = arith.addf %249, %248 : vector<96x128xf32>
    %c0_150 = arith.constant 0 : index
    %c0_151 = arith.constant 0 : index
    %251 = vector.load %arg4[%c0_150, %c0_151] : memref<96x128xf32, #tpu.memory_space<vmem>>, vector<96x128xf32>
    tpu.vector_store %arg4[%c0_150, %c0_151], %250 {strides = array<i32>} : memref<96x128xf32, #tpu.memory_space<vmem>>, vector<96x128xf32>,
    return
  }
  func.func @transform_0(%arg0: i32) -> (i32, i32) {
    %c0_i32 = arith.constant 0 : i32
    %c0_i32_0 = arith.constant 0 : i32
    return %arg0, %c0_i32 : i32, i32
  }
  func.func @transform_1(%arg0: i32) -> (i32, i32) {
    %c0_i32 = arith.constant 0 : i32
    %c0_i32_0 = arith.constant 0 : i32
    return %arg0, %c0_i32 : i32, i32
  }
  func.func @transform_2(%arg0: i32) -> (i32, i32, i32) {
    %c0_i32 = arith.constant 0 : i32
    %c0_i32_0 = arith.constant 0 : i32
    %c0_i32_1 = arith.constant 0 : i32
    %c0_i32_2 = arith.constant 0 : i32
    return %c0_i32, %c0_i32_0, %c0_i32_1 : i32, i32, i32
  }
  func.func @transform_3(%arg0: i32) -> (i32, i32) {
    %c0_i32 = arith.constant 0 : i32
    %c0_i32_0 = arith.constant 0 : i32
    return %arg0, %c0_i32 : i32, i32
  }
}

</mosaic_0001>

<bundles_post_ra>
// kernel: tpu_custom_call.1
= control target key start
LH: loop header
LB: loop body
LE: loop exit
PB: predicated region body
PF: predicated region fallthrough
CT: control target
= control target key end

     0   :  { %v5082_v3 = vmov 0   ;;  %s6938_s0 = inlined_call_operand.vmem [shape: bf16[96,25], index: 0, kind: input, shape index: {}]   ;;  %s6939_s1 = inlined_call_operand.vmem [shape: bf16[96,1], index: 1, kind: input, shape index: {}]   ;;  %s6940_s2 = inlined_call_operand.vmem [shape: f32[25,1,128], index: 2, kind: input, shape index: {}]   ;;  %s6941_s3 = inlined_call_operand.hbm [shape: f32[96,128], index: 3, kind: output, shape index: {}]  }
   0x1   :  { %v5156_v0 = vld [vmem:[%s6939_s1 + $0x8] sm:$0xff]   ;;  %v5164_v2 = vld [vmem:[%s6939_s1] sm:$0xff]   ;;  %4289 = vset.pattern.permute.xlu1 %v5082_v3  ;;  %4288 = vset.pattern.permute.xlu0 %v5082_v3  ;;  %v4228_v13 = vld [vmem:[%s6939_s1 + $0x10] sm:$0xff]  }
   0x2   :  { %v4232_v1 = vld [vmem:[%s6938_s0 + $0x8] sm:$0xff]   ;;  %v4185_v4 = vunpack.c.l.bf16 %v5156_v0  ;;  %v4186_v5 = vunpack.c.h.bf16 %v5156_v0  ;;  %v4204_v8 = vld [vmem:[%s6938_s0] sm:$0xff]   ;;  %v4181_v9 = vunpack.c.l.bf16 %v5164_v2  ;;  %v4182_v10 = vunpack.c.h.bf16 %v5164_v2  ;;  %v4233_v14 = vld [vmem:[%s6938_s0 + $0x10] sm:$0xff]  }
   0x3   :  { %v5168_v6 = vunpack.c.l.bf16 %v4232_v1  ;;  %v5170_v7 = vunpack.c.h.bf16 %v4232_v1  ;;  %v5177_v11 = vunpack.c.l.bf16 %v4204_v8  ;;  %v5179_v12 = vunpack.c.h.bf16 %v4204_v8 }
   0x5   :  { %6968 = vst [vmem:[#allocation5_spill] sm:$0xff] %v5177_v11  ;;  %6969 = vst [vmem:[#allocation6_spill] sm:$0xff] %v5179_v12  ;;  %v65_v15 = vmul.f32 %v5168_v6, %v4185_v4  ;;  %v63_v16 = vmul.f32 %v5177_v11, %v4181_v9 }
   0x6   :  { %8 = vsyncpa [#allocation3], 0  ;;  %v66_v17 = vmul.f32 %v5170_v7, %v4186_v5  ;;  %v4190_v18 = vunpack.c.h.bf16 %v4228_v13  ;;  %v5190_v19 = vunpack.c.h.bf16 %v4233_v14  ;;  %v64_v20 = vmul.f32 %v5179_v12, %v4182_v10  ;;  %v4229_v23 = vld [vmem:[%s6939_s1 + $0x18] sm:$0xff]   ;;  %v4230_v31 = vld [vmem:[%s6939_s1 + $0x20] sm:$0xff]   ;;  %s5086_s9 = smov 3   ;;  %s5089_s10 = smov 4  }
   0x7   :  { %88 = vperm.xlu1 %4289, %v65_v15   ;;  %78 = vperm.xlu0 %4288, %v63_v16   ;;  %v4189_v21 = vunpack.c.l.bf16 %v4228_v13  ;;  %v5193_v22 = vunpack.c.l.bf16 %v4233_v14  ;;  %v4234_v24 = vld [vmem:[%s6938_s0 + $0x18] sm:$0xff]   ;;  %v4194_v26 = vunpack.c.h.bf16 %v4229_v23  ;;  %v4193_v29 = vunpack.c.l.bf16 %v4229_v23  ;;  %v4235_v32 = vld [vmem:[%s6938_s0 + $0x20] sm:$0xff]   ;;  %v4231_v39 = vld [vmem:[%s6939_s1 + $0x28] sm:$0xff]   ;;  %s5085_s1 = smov 2   ;;  %s5091_s11 = smov 5  }
   0x8   :  { %v68_v25 = vmul.f32 %v5190_v19, %v4190_v18  ;;  %v5202_v27 = vunpack.c.h.bf16 %v4234_v24  ;;  %v5205_v30 = vunpack.c.l.bf16 %v4234_v24  ;;  %v4198_v34 = vunpack.c.h.bf16 %v4230_v31  ;;  %v4236_v40 = vld [vmem:[%s6938_s0 + $0x28] sm:$0xff]   ;;  %s5083_s0 = smov 1   ;;  %s5093_s12 = smov 6  }
   0x9   :  { %v67_v28 = vmul.f32 %v5193_v22, %v4189_v21  ;;  %v5214_v35 = vunpack.c.h.bf16 %v4235_v32  ;;  %v4197_v37 = vunpack.c.l.bf16 %v4230_v31  ;;  %v5217_v38 = vunpack.c.l.bf16 %v4235_v32  ;;  %s5095_s13 = smov 7   ;;  %s5097_s14 = smov 8  }
   0xa   :  { %v70_v33 = vmul.f32 %v5202_v27, %v4194_v26  ;;  %v69_v36 = vmul.f32 %v5205_v30, %v4193_v29  ;;  %v4202_v42 = vunpack.c.h.bf16 %v4231_v39  ;;  %v5226_v43 = vunpack.c.h.bf16 %v4236_v40  ;;  %s5099_s15 = smov 9   ;;  %s5101_s16 = smov 10  }
   0xb   :  { %93 = vperm.xlu1 %4289, %v66_v17   ;;  %83 = vperm.xlu0 %4288, %v64_v20   ;;  %v72_v41 = vmul.f32 %v5214_v35, %v4198_v34  ;;  %v71_v44 = vmul.f32 %v5217_v38, %v4197_v37  ;;  %v4201_v45 = vunpack.c.l.bf16 %v4231_v39  ;;  %v5229_v46 = vunpack.c.l.bf16 %v4236_v40  ;;  %s5103_s17 = smov 11   ;;  %s5105_s18 = smov 12  }
   0xc   :  { %6970 = vst [vmem:[#allocation7_spill] sm:$0xff] %v5226_v43  ;;  %v74_v47 = vmul.f32 %v5226_v43, %v4202_v42  ;;  %v5233_v49 = vpack.i.bf16 %v4186_v5, %v4185_v4  ;;  %v5235_v50 = vpack.i.bf16 %v4182_v10, %v4181_v9  ;;  %v5238_v51 = vpack.i.bf16 %v4194_v26, %v4193_v29  ;;  %s5107_s19 = smov 13   ;;  %s5109_s20 = smov 14  }
   0xd   :  { %v73_v48 = vmul.f32 %v5229_v46, %v4201_v45  ;;  %v5241_v52 = vpack.i.bf16 %v4190_v18, %v4189_v21  ;;  %v5084_v53 = vmov 1   ;;  %v5244_v54 = vpack.i.bf16 %v4202_v42, %v4201_v45  ;;  %s5111_s21 = smov 15   ;;  %s5113_s22 = smov 16  }
   0xe   :  { %6971 = vst [vmem:[#allocation8_spill] sm:$0xff] %v5233_v49  ;;  %6972 = vst [vmem:[#allocation9_spill] sm:$0xff] %v5238_v51  ;;  %v5247_v55 = vpack.i.bf16 %v4198_v34, %v4197_v37  ;;  %s5115_s23 = smov 17   ;;  %s5117_s24 = smov 18  }
   0xf   :  { %103 = vperm.xlu1 %4289, %v68_v25   ;;  %98 = vperm.xlu0 %4288, %v67_v28   ;;  %6973 = vst [vmem:[#allocation10_spill] sm:$0xff] %v5241_v52  ;;  %6974 = vst [vmem:[#allocation11_spill] sm:$0xff] %v5244_v54  ;;  %s5119_s25 = smov 19   ;;  %s5121_s26 = smov 20  }
  0x10   :  { %6975 = vst [vmem:[#allocation12_spill] sm:$0xff] %v5247_v55  ;;  %s5123_s27 = smov 21  }
  0x13   :  { %113 = vperm.xlu1 %4289, %v70_v33   ;;  %108 = vperm.xlu0 %4288, %v69_v36  }
  0x17   :  { %123 = vperm.xlu1 %4289, %v72_v41   ;;  %118 = vperm.xlu0 %4288, %v71_v44  }
  0x1b   :  { %133 = vperm.xlu1 %4289, %v74_v47   ;;  %128 = vperm.xlu0 %4288, %v73_v48  }
  0x1f   :  { %4296 = vrot.lane.b32.xlu1 %v5233_v49, %s5083_s0  ;;  %4291 = vrot.lane.b32.xlu0 %v5235_v50, %s5083_s0 }
  0x20   :  { %4381 = vset.pattern.permute.xlu1 %v5084_v53  ;;  %4380 = vset.pattern.permute.xlu0 %v5084_v53 }
  0x23   :  { %4306 = vrot.lane.b32.xlu1 %v5238_v51, %s5083_s0  ;;  %4301 = vrot.lane.b32.xlu0 %v5241_v52, %s5083_s0 }
  0x27   :  { %4316 = vrot.lane.b32.xlu1 %v5244_v54, %s5083_s0  ;;  %4311 = vrot.lane.b32.xlu0 %v5247_v55, %s5083_s0 }
  0x2b   :  { %4321 = vrot.lane.b32.xlu1 %v5235_v50, %s5085_s1  ;;  %4326 = vrot.lane.b32.xlu0 %v5233_v49, %s5085_s1 }
  0x2f   :  { %4331 = vrot.lane.b32.xlu1 %v5241_v52, %s5085_s1  ;;  %4336 = vrot.lane.b32.xlu0 %v5238_v51, %s5085_s1 }
  0x33   :  { %4341 = vrot.lane.b32.xlu1 %v5247_v55, %s5085_s1  ;;  %4346 = vrot.lane.b32.xlu0 %v5244_v54, %s5085_s1 }
  0x37   :  { %4356 = vrot.lane.b32.xlu1 %v5233_v49, %s5086_s9  ;;  %4351 = vrot.lane.b32.xlu0 %v5235_v50, %s5086_s9 }
  0x3b   :  { %4366 = vrot.lane.b32.xlu1 %v5238_v51, %s5086_s9  ;;  %4361 = vrot.lane.b32.xlu0 %v5241_v52, %s5086_s9 }
  0x3f   :  { %4376 = vrot.lane.b32.xlu1 %v5244_v54, %s5086_s9  ;;  %4371 = vrot.lane.b32.xlu0 %v5247_v55, %s5086_s9 }
  0x86   :  { %v5263_v56 = vpop.permute.xlu1 %88  ;;  %v5265_v57 = vpop.permute.xlu0 %78 }
  0x87   :  { %6976 = vst [vmem:[#allocation13_spill] sm:$0xff] %v5263_v56 }
  0x8a   :  { %v5267_v58 = vpop.permute.xlu1 %93  ;;  %v5269_v59 = vpop.permute.xlu0 %83 }
  0x8b   :  { %6977 = vst [vmem:[#allocation14_spill] sm:$0xff] %v5269_v59 }
  0x8e   :  { %v5271_v60 = vpop.permute.xlu1 %103  ;;  %v5273_v61 = vpop.permute.xlu0 %98 }
  0x8f   :  { %6978 = vst [vmem:[#allocation15_spill] sm:$0xff] %v5273_v61 }
  0x92   :  { %v5275_v62 = vpop.permute.xlu1 %113  ;;  %v5277_v63 = vpop.permute.xlu0 %108 }
  0x93   :  { %6979 = vst [vmem:[#allocation16_spill] sm:$0xff] %v5277_v63 }
  0x96   :  { %v5279_v0 = vpop.permute.xlu1 %123  ;;  %v5281_v1 = vpop.permute.xlu0 %118 }
  0x97   :  { %6980 = vst [vmem:[#allocation17_spill] sm:$0xff] %v5281_v1 }
  0x9a   :  { %v5283_v2 = vpop.permute.xlu1 %133  ;;  %v5285_v3 = vpop.permute.xlu0 %128 }
  0x9e   :  { %v4297_v4 = vpop.permute.xlu1 %4296  ;;  %v4292_v5 = vpop.permute.xlu0 %4291 }
  0x9f   :  { %v4294_v8 = vunpack.i.h.bf16 %v4292_v5  ;;  %v4293_v9 = vunpack.i.l.bf16 %v4292_v5  ;;  %v4299_v10 = vunpack.i.h.bf16 %v4297_v4  ;;  %v4298_v13 = vunpack.i.l.bf16 %v4297_v4 }
  0xa1   :  { %v215_v14 = vmul.f32 %v4294_v8, %v5179_v12  ;;  %v214_v15 = vmul.f32 %v4293_v9, %v5177_v11  ;;  %v216_v20 = vmul.f32 %v4298_v13, %v5168_v6  ;;  %v217_v21 = vmul.f32 %v4299_v10, %v5170_v7 }
  0xa2   :  { %v4302_v16 = vpop.permute.xlu0 %4301  ;;  %v4307_v23 = vpop.permute.xlu1 %4306 }
  0xa3   :  { %235 = vperm.xlu1 %4381, %v215_v14   ;;  %230 = vperm.xlu0 %4380, %v214_v15   ;;  %v4304_v17 = vunpack.i.h.bf16 %v4302_v16  ;;  %v4303_v18 = vunpack.i.l.bf16 %v4302_v16  ;;  %v4309_v24 = vunpack.i.h.bf16 %v4307_v23  ;;  %v4308_v25 = vunpack.i.l.bf16 %v4307_v23 }
  0xa4   :  { %v5087_v14 = vmov 2  }
  0xa5   :  { %v218_v26 = vmul.f32 %v4303_v18, %v5193_v22  ;;  %v219_v28 = vmul.f32 %v4304_v17, %v5190_v19  ;;  %v220_v34 = vmul.f32 %v4308_v25, %v5205_v30  ;;  %v221_v36 = vmul.f32 %v4309_v24, %v5202_v27 }
  0xa6   :  { %v4312_v29 = vpop.permute.xlu0 %4311  ;;  %v4317_v31 = vpop.permute.xlu1 %4316 }
  0xa7   :  { %240 = vperm.xlu1 %4381, %v216_v20   ;;  %245 = vperm.xlu0 %4380, %v217_v21   ;;  %v4314_v32 = vunpack.i.h.bf16 %v4312_v29  ;;  %v4313_v33 = vunpack.i.l.bf16 %v4312_v29  ;;  %v4319_v37 = vunpack.i.h.bf16 %v4317_v31  ;;  %v4318_v39 = vunpack.i.l.bf16 %v4317_v31 }
  0xa9   :  { %v222_v40 = vmul.f32 %v4313_v33, %v5217_v38  ;;  %v223_v41 = vmul.f32 %v4314_v32, %v5214_v35  ;;  %v224_v44 = vmul.f32 %v4318_v39, %v5229_v46  ;;  %v225_v45 = vmul.f32 %v4319_v37, %v5226_v43 }
  0xaa   :  { %v4322_v42 = vpop.permute.xlu1 %4321  ;;  %v4327_v47 = vpop.permute.xlu0 %4326 }
  0xab   :  { %250 = vperm.xlu1 %4381, %v218_v26   ;;  %255 = vperm.xlu0 %4380, %v219_v28   ;;  %v4324_v48 = vunpack.i.h.bf16 %v4322_v42  ;;  %v4323_v53 = vunpack.i.l.bf16 %v4322_v42  ;;  %v4328_v8 = vunpack.i.l.bf16 %v4327_v47  ;;  %v4329_v20 = vunpack.i.h.bf16 %v4327_v47 }
  0xad   :  { %v378_v9 = vmul.f32 %v4323_v53, %v5177_v11  ;;  %v379_v10 = vmul.f32 %v4324_v48, %v5179_v12  ;;  %v380_v16 = vmul.f32 %v4328_v8, %v5168_v6  ;;  %v381_v26 = vmul.f32 %v4329_v20, %v5170_v7 }
  0xae   :  { %v4332_v4 = vpop.permute.xlu1 %4331  ;;  %v4337_v13 = vpop.permute.xlu0 %4336  ;;  %v5088_v48 = vmov 3  }
  0xaf   :  { %260 = vperm.xlu1 %4381, %v220_v34   ;;  %265 = vperm.xlu0 %4380, %v221_v36   ;;  %v4333_v5 = vunpack.i.l.bf16 %v4332_v4  ;;  %v4338_v15 = vunpack.i.l.bf16 %v4337_v13  ;;  %v4334_v21 = vunpack.i.h.bf16 %v4332_v4  ;;  %v4339_v28 = vunpack.i.h.bf16 %v4337_v13 }
  0xb1   :  { %v382_v17 = vmul.f32 %v4333_v5, %v5193_v22  ;;  %v384_v24 = vmul.f32 %v4338_v15, %v5205_v30  ;;  %v383_v31 = vmul.f32 %v4334_v21, %v5190_v19  ;;  %v385_v36 = vmul.f32 %v4339_v28, %v5202_v27 }
  0xb2   :  { %v4342_v18 = vpop.permute.xlu1 %4341  ;;  %v4347_v25 = vpop.permute.xlu0 %4346 }
  0xb3   :  { %270 = vperm.xlu1 %4381, %v222_v40   ;;  %275 = vperm.xlu0 %4380, %v223_v41   ;;  %v4343_v23 = vunpack.i.l.bf16 %v4342_v18  ;;  %v4348_v29 = vunpack.i.l.bf16 %v4347_v25  ;;  %v4344_v34 = vunpack.i.h.bf16 %v4342_v18  ;;  %v4349_v41 = vunpack.i.h.bf16 %v4347_v25 }
  0xb5   :  { %v386_v32 = vmul.f32 %v4343_v23, %v5217_v38  ;;  %v388_v37 = vmul.f32 %v4348_v29, %v5229_v46  ;;  %v387_v42 = vmul.f32 %v4344_v34, %v5214_v35  ;;  %v389_v53 = vmul.f32 %v4349_v41, %v5226_v43 }
  0xb6   :  { %v4352_v33 = vpop.permute.xlu0 %4351  ;;  %v4357_v40 = vpop.permute.xlu1 %4356 }
  0xb7   :  { %280 = vperm.xlu1 %4381, %v224_v44   ;;  %285 = vperm.xlu0 %4380, %v225_v45   ;;  %v4353_v39 = vunpack.i.l.bf16 %v4352_v33  ;;  %v4359_v44 = vunpack.i.h.bf16 %v4357_v40  ;;  %v4354_v4 = vunpack.i.h.bf16 %v4352_v33 }
  0xb9   :  { %v542_v45 = vmul.f32 %v4353_v39, %v5177_v11  ;;  %v545_v8 = vmul.f32 %v4359_v44, %v5170_v7 }
  0xba   :  { %v4362_v47 = vpop.permute.xlu0 %4361 }
  0xbb   :  { %4382 = vset.pattern.permute.xlu1 %v5087_v14  ;;  %4383 = vset.pattern.permute.xlu0 %v5087_v14  ;;  %v4364_v5 = vunpack.i.h.bf16 %v4362_v47  ;;  %v543_v14 = vmul.f32 %v4354_v4, %v5179_v12 }
  0xbc   :  { %394 = vperm.xlu1 %4382, %v378_v9   ;;  %399 = vperm.xlu0 %4383, %v379_v10   ;;  %v4367_v9 = vpop.permute.xlu1 %4366  ;;  %v4358_v10 = vunpack.i.l.bf16 %v4357_v40 }
  0xbd   :  { %v4369_v13 = vunpack.i.h.bf16 %v4367_v9  ;;  %v547_v15 = vmul.f32 %v4364_v5, %v5190_v19 }
  0xbe   :  { %v544_v20 = vmul.f32 %v4358_v10, %v5168_v6 }
  0xbf   :  { %v549_v21 = vmul.f32 %v4369_v13, %v5202_v27 }
  0xc0   :  { %404 = vperm.xlu1 %4382, %v380_v16   ;;  %414 = vperm.xlu0 %4383, %v382_v17   ;;  %v4372_v16 = vpop.permute.xlu0 %4371  ;;  %v4363_v17 = vunpack.i.l.bf16 %v4362_v47  ;;  %v4377_v23 = vpop.permute.xlu1 %4376 }
  0xc1   :  { %v4374_v18 = vunpack.i.h.bf16 %v4372_v16  ;;  %v4379_v25 = vunpack.i.h.bf16 %v4377_v23  ;;  %v4373_v29 = vunpack.i.l.bf16 %v4372_v16  ;;  %v4378_v33 = vunpack.i.l.bf16 %v4377_v23 }
  0xc3   :  { %v551_v28 = vmul.f32 %v4374_v18, %v5214_v35  ;;  %v550_v34 = vmul.f32 %v4373_v29, %v5217_v38 }
  0xc4   :  { %409 = vperm.xlu1 %4382, %v381_v26   ;;  %424 = vperm.xlu0 %4383, %v384_v24   ;;  %v4368_v24 = vunpack.i.l.bf16 %v4367_v9  ;;  %v546_v26 = vmul.f32 %v4363_v17, %v5193_v22 }
  0xc8   :  { %419 = vperm.xlu1 %4382, %v383_v31   ;;  %434 = vperm.xlu0 %4383, %v386_v32   ;;  %v548_v31 = vmul.f32 %v4368_v24, %v5205_v30  ;;  %v553_v32 = vmul.f32 %v4379_v25, %v5226_v43 }
  0xcc   :  { %429 = vperm.xlu1 %4382, %v385_v36   ;;  %444 = vperm.xlu0 %4383, %v388_v37   ;;  %v552_v36 = vmul.f32 %v4378_v33, %v5229_v46  ;;  %v5090_v37 = vmov 4  }
  0xd0   :  { %439 = vperm.xlu1 %4382, %v387_v42   ;;  %4384 = vset.pattern.permute.xlu0 %v5088_v48 }
  0xd1   :  { %558 = vperm.xlu0 %4384, %v542_v45  }
  0xd4   :  { %449 = vperm.xlu1 %4382, %v389_v53  }
  0xd5   :  { %573 = vperm.xlu0 %4384, %v545_v8  }
  0xd8   :  { %4385 = vset.pattern.permute.xlu1 %v5088_v48 }
  0xd9   :  { %563 = vperm.xlu1 %4385, %v543_v14   ;;  %583 = vperm.xlu0 %4384, %v547_v15  }
  0xdd   :  { %568 = vperm.xlu1 %4385, %v544_v20   ;;  %593 = vperm.xlu0 %4384, %v549_v21  }
  0xe1   :  { %578 = vperm.xlu1 %4385, %v546_v26   ;;  %603 = vperm.xlu0 %4384, %v551_v28  }
  0xe5   :  { %588 = vperm.xlu1 %4385, %v548_v31   ;;  %613 = vperm.xlu0 %4384, %v553_v32  }
  0xe9   :  { %598 = vperm.xlu1 %4385, %v550_v34   ;;  %4392 = vrot.lane.b32.xlu0 %v5233_v49, %s5089_s10 }
  0xea   :  { %4417 = vset.pattern.permute.xlu0 %v5090_v37 }
  0xed   :  { %608 = vperm.xlu1 %4385, %v552_v36   ;;  %4402 = vrot.lane.b32.xlu0 %v5238_v51, %s5089_s10 }
  0xf1   :  { %4387 = vrot.lane.b32.xlu1 %v5235_v50, %s5089_s10  ;;  %4412 = vrot.lane.b32.xlu0 %v5244_v54, %s5089_s10 }
  0xf2   :  { %4416 = vset.pattern.permute.xlu1 %v5090_v37 }
  0xf5   :  { %4397 = vrot.lane.b32.xlu1 %v5241_v52, %s5089_s10 }
  0xf9   :  { %4407 = vrot.lane.b32.xlu1 %v5247_v55, %s5089_s10 }
 0x122   :  { %v5329_v39 = vpop.permute.xlu1 %235  ;;  %v5331_v40 = vpop.permute.xlu0 %230 }
 0x123   :  { %6981 = vst [vmem:[#allocation18_spill] sm:$0xff] %v5329_v39 }
 0x126   :  { %v5333_v41 = vpop.permute.xlu1 %240  ;;  %v5335_v42 = vpop.permute.xlu0 %245 }
 0x127   :  { %6982 = vst [vmem:[#allocation19_spill] sm:$0xff] %v5333_v41 }
 0x12a   :  { %v5337_v44 = vpop.permute.xlu1 %250  ;;  %v5339_v45 = vpop.permute.xlu0 %255 }
 0x12b   :  { %6983 = vst [vmem:[#allocation20_spill] sm:$0xff] %v5337_v44 }
 0x12e   :  { %v5341_v47 = vpop.permute.xlu1 %260  ;;  %v5343_v48 = vpop.permute.xlu0 %265 }
 0x12f   :  { %6984 = vst [vmem:[#allocation21_spill] sm:$0xff] %v5341_v47 }
 0x132   :  { %v5345_v53 = vpop.permute.xlu1 %270  ;;  %v5347_v4 = vpop.permute.xlu0 %275 }
 0x133   :  { %6985 = vst [vmem:[#allocation22_spill] sm:$0xff] %v5345_v53 }
 0x136   :  { %v5349_v5 = vpop.permute.xlu1 %280  ;;  %v5351_v8 = vpop.permute.xlu0 %285 }
 0x13b   :  { %v5353_v9 = vpop.permute.xlu1 %394  ;;  %v5355_v10 = vpop.permute.xlu0 %399 }
 0x13c   :  { %6986 = vst [vmem:[#allocation23_spill] sm:$0xff] %v5355_v10 }
 0x13f   :  { %v5357_v13 = vpop.permute.xlu1 %404  ;;  %v5359_v14 = vpop.permute.xlu0 %414 }
 0x140   :  { %6987 = vst [vmem:[#allocation24_spill] sm:$0xff] %v5357_v13  ;;  %6988 = vst [vmem:[#allocation25_spill] sm:$0xff] %v5359_v14 }
 0x143   :  { %v5361_v15 = vpop.permute.xlu1 %409  ;;  %v5363_v16 = vpop.permute.xlu0 %424 }
 0x144   :  { %6989 = vst [vmem:[#allocation26_spill] sm:$0xff] %v5363_v16 }
 0x147   :  { %v5365_v17 = vpop.permute.xlu1 %419  ;;  %v5367_v18 = vpop.permute.xlu0 %434 }
 0x148   :  { %6990 = vst [vmem:[#allocation27_spill] sm:$0xff] %v5367_v18 }
 0x14b   :  { %v5369_v20 = vpop.permute.xlu1 %429  ;;  %v5371_v21 = vpop.permute.xlu0 %444 }
 0x14f   :  { %v5373_v23 = vpop.permute.xlu1 %439 }
 0x150   :  { %v5375_v24 = vpop.permute.xlu0 %558 }
 0x153   :  { %v5377_v25 = vpop.permute.xlu1 %449 }
 0x154   :  { %v5379_v26 = vpop.permute.xlu0 %573 }
 0x158   :  { %v5381_v28 = vpop.permute.xlu1 %563  ;;  %v5383_v29 = vpop.permute.xlu0 %583 }
 0x159   :  { %6991 = vst [vmem:[#allocation28_spill] sm:$0xff] %v5381_v28 }
 0x15c   :  { %v5385_v31 = vpop.permute.xlu1 %568  ;;  %v5387_v32 = vpop.permute.xlu0 %593 }
 0x15d   :  { %6992 = vst [vmem:[#allocation29_spill] sm:$0xff] %v5385_v31 }
 0x160   :  { %v5389_v33 = vpop.permute.xlu1 %578  ;;  %v5391_v34 = vpop.permute.xlu0 %603 }
 0x161   :  { %6993 = vst [vmem:[#allocation30_spill] sm:$0xff] %v5389_v33 }
 0x164   :  { %v5393_v36 = vpop.permute.xlu1 %588  ;;  %v5395_v37 = vpop.permute.xlu0 %613 }
 0x165   :  { %6994 = vst [vmem:[#allocation31_spill] sm:$0xff] %v5393_v36 }
 0x168   :  { %v5397_v18 = vpop.permute.xlu1 %598  ;;  %v4393_v14 = vpop.permute.xlu0 %4392 }
 0x169   :  { %6995 = vst [vmem:[#allocation32_spill] sm:$0xff] %v5397_v18  ;;  %v4394_v13 = vunpack.i.l.bf16 %v4393_v14  ;;  %v4395_v18 = vunpack.i.h.bf16 %v4393_v14 }
 0x16b   :  { %v708_v44 = vmul.f32 %v4394_v13, %v5168_v6 }
 0x16c   :  { %v5399_v16 = vpop.permute.xlu1 %608  ;;  %v4403_v31 = vpop.permute.xlu0 %4402 }
 0x16d   :  { %v4404_v36 = vunpack.i.l.bf16 %v4403_v31  ;;  %v4405_v39 = vunpack.i.h.bf16 %v4403_v31 }
 0x16f   :  { %v712_v41 = vmul.f32 %v4404_v36, %v5205_v30 }
 0x170   :  { %v4388_v1 = vpop.permute.xlu1 %4387  ;;  %v4413_v59 = vpop.permute.xlu0 %4412 }
 0x171   :  { %v4390_v63 = vunpack.i.h.bf16 %v4388_v1  ;;  %v4389_v28 = vunpack.i.l.bf16 %v4388_v1 }
 0x173   :  { %v706_v61 = vmul.f32 %v4389_v28, %v5177_v11  ;;  %v707_v33 = vmul.f32 %v4390_v63, %v5179_v12  ;;  %v709_v63 = vmul.f32 %v4395_v18, %v5170_v7  ;;  %v5092_v18 = vmov 5  }
 0x174   :  { %v4398_v53 = vpop.permute.xlu1 %4397 }
 0x175   :  { %v4399_v47 = vunpack.i.l.bf16 %v4398_v53  ;;  %722 = vperm.xlu1 %4416, %v706_v61   ;;  %727 = vperm.xlu0 %4417, %v707_v33   ;;  %v4400_v28 = vunpack.i.h.bf16 %v4398_v53  ;;  %v4414_v61 = vunpack.i.l.bf16 %v4413_v59  ;;  %v4415_v53 = vunpack.i.h.bf16 %v4413_v59 }
 0x177   :  { %v710_v56 = vmul.f32 %v4399_v47, %v5193_v22  ;;  %v711_v13 = vmul.f32 %v4400_v28, %v5190_v19  ;;  %v713_v47 = vmul.f32 %v4405_v39, %v5202_v27 }
 0x178   :  { %v4408_v10 = vpop.permute.xlu1 %4407 }
 0x179   :  { %742 = vperm.xlu0 %4417, %v710_v56   ;;  %732 = vperm.xlu1 %4416, %v708_v44   ;;  %v4409_v1 = vunpack.i.l.bf16 %v4408_v10  ;;  %v716_v56 = vmul.f32 %v4414_v61, %v5229_v46  ;;  %v4410_v44 = vunpack.i.h.bf16 %v4408_v10 }
 0x17b   :  { %v714_v33 = vmul.f32 %v4409_v1, %v5217_v38  ;;  %v715_v14 = vmul.f32 %v4410_v44, %v5214_v35 }
 0x17d   :  { %752 = vperm.xlu0 %4417, %v712_v41   ;;  %737 = vperm.xlu1 %4416, %v709_v63   ;;  %v717_v41 = vmul.f32 %v4415_v53, %v5226_v43 }
 0x181   :  { %762 = vperm.xlu0 %4417, %v714_v33   ;;  %747 = vperm.xlu1 %4416, %v711_v13  }
 0x185   :  { %772 = vperm.xlu0 %4417, %v716_v56   ;;  %757 = vperm.xlu1 %4416, %v713_v47  }
 0x189   :  { %767 = vperm.xlu1 %4416, %v715_v14   ;;  %4419 = vrot.lane.b32.xlu0 %v5235_v50, %s5091_s11 }
 0x18a   :  { %4448 = vset.pattern.permute.xlu0 %v5092_v18 }
 0x18d   :  { %777 = vperm.xlu1 %4416, %v717_v41   ;;  %4429 = vrot.lane.b32.xlu0 %v5241_v52, %s5091_s11 }
 0x191   :  { %4424 = vrot.lane.b32.xlu1 %v5233_v49, %s5091_s11  ;;  %4439 = vrot.lane.b32.xlu0 %v5247_v55, %s5091_s11 }
 0x192   :  { %4449 = vset.pattern.permute.xlu1 %v5092_v18 }
 0x195   :  { %4434 = vrot.lane.b32.xlu1 %v5238_v51, %s5091_s11 }
 0x199   :  { %4444 = vrot.lane.b32.xlu1 %v5244_v54, %s5091_s11 }
 0x1f4   :  { %v5419_v59 = vpop.permute.xlu1 %722  ;;  %v5421_v39 = vpop.permute.xlu0 %727 }
 0x1f5   :  { %6996 = vst [vmem:[#allocation33_spill] sm:$0xff] %v5419_v59  ;;  %6997 = vst [vmem:[#allocation34_spill] sm:$0xff] %v5421_v39 }
 0x1f8   :  { %v5423_v10 = vpop.permute.xlu0 %742  ;;  %v5425_v31 = vpop.permute.xlu1 %732 }
 0x1f9   :  { %6998 = vst [vmem:[#allocation35_spill] sm:$0xff] %v5423_v10  ;;  %6999 = vst [vmem:[#allocation36_spill] sm:$0xff] %v5425_v31 }
 0x1fc   :  { %v5427_v36 = vpop.permute.xlu0 %752  ;;  %v5429_v1 = vpop.permute.xlu1 %737 }
 0x1fd   :  { %7000 = vst [vmem:[#allocation37_spill] sm:$0xff] %v5427_v36  ;;  %7001 = vst [vmem:[#allocation38_spill] sm:$0xff] %v5429_v1 }
 0x200   :  { %v5431_v28 = vpop.permute.xlu0 %762  ;;  %v5433_v63 = vpop.permute.xlu1 %747 }
 0x201   :  { %7002 = vst [vmem:[#allocation39_spill] sm:$0xff] %v5431_v28  ;;  %7003 = vst [vmem:[#allocation40_spill] sm:$0xff] %v5433_v63 }
 0x204   :  { %v5435_v61 = vpop.permute.xlu0 %772  ;;  %v5437_v33 = vpop.permute.xlu1 %757 }
 0x205   :  { %7004 = vst [vmem:[#allocation41_spill] sm:$0xff] %v5435_v61  ;;  %7005 = vst [vmem:[#allocation42_spill] sm:$0xff] %v5437_v33 }
 0x208   :  { %v4420_v13 = vpop.permute.xlu0 %4419  ;;  %v5439_v56 = vpop.permute.xlu1 %767 }
 0x209   :  { %7006 = vst [vmem:[#allocation43_spill] sm:$0xff] %v5439_v56  ;;  %v4422_v44 = vunpack.i.h.bf16 %v4420_v13  ;;  %v4421_v47 = vunpack.i.l.bf16 %v4420_v13 }
 0x20b   :  { %v870_v53 = vmul.f32 %v4421_v47, %v5177_v11  ;;  %v871_v14 = vmul.f32 %v4422_v44, %v5179_v12 }
 0x20c   :  { %v5443_v41 = vpop.permute.xlu1 %777  ;;  %v4430_v18 = vpop.permute.xlu0 %4429 }
 0x20d   :  { %7007 = vst [vmem:[#allocation44_spill] sm:$0xff] %v5443_v41  ;;  %886 = vperm.xlu0 %4448, %v870_v53   ;;  %891 = vperm.xlu1 %4449, %v871_v14   ;;  %v4432_v31 = vunpack.i.h.bf16 %v4430_v18  ;;  %v4431_v39 = vunpack.i.l.bf16 %v4430_v18 }
 0x20f   :  { %v874_v13 = vmul.f32 %v4431_v39, %v5193_v22  ;;  %v875_v53 = vmul.f32 %v4432_v31, %v5190_v19 }
 0x210   :  { %v4425_v28 = vpop.permute.xlu1 %4424  ;;  %v4440_v14 = vpop.permute.xlu0 %4439 }
 0x211   :  { %v4427_v36 = vunpack.i.h.bf16 %v4425_v28  ;;  %v4426_v10 = vunpack.i.l.bf16 %v4425_v28  ;;  %v4442_v28 = vunpack.i.h.bf16 %v4440_v14  ;;  %v4441_v18 = vunpack.i.l.bf16 %v4440_v14 }
 0x213   :  { %v873_v33 = vmul.f32 %v4427_v36, %v5170_v7  ;;  %v872_v56 = vmul.f32 %v4426_v10, %v5168_v6  ;;  %v878_v10 = vmul.f32 %v4441_v18, %v5217_v38 }
 0x214   :  { %v4435_v61 = vpop.permute.xlu1 %4434 }
 0x215   :  { %901 = vperm.xlu0 %4448, %v873_v33   ;;  %896 = vperm.xlu1 %4449, %v872_v56   ;;  %v4437_v44 = vunpack.i.h.bf16 %v4435_v61  ;;  %v4436_v47 = vunpack.i.l.bf16 %v4435_v61  ;;  %v879_v61 = vmul.f32 %v4442_v28, %v5214_v35 }
 0x217   :  { %v876_v41 = vmul.f32 %v4436_v47, %v5205_v30  ;;  %v877_v36 = vmul.f32 %v4437_v44, %v5202_v27 }
 0x218   :  { %v4445_v63 = vpop.permute.xlu1 %4444 }
 0x219   :  { %911 = vperm.xlu0 %4448, %v875_v53   ;;  %906 = vperm.xlu1 %4449, %v874_v13   ;;  %v4447_v39 = vunpack.i.h.bf16 %v4445_v63  ;;  %v4446_v33 = vunpack.i.l.bf16 %v4445_v63  ;;  %v5094_v13 = vmov 6  }
 0x21b   :  { %v880_v31 = vmul.f32 %v4446_v33, %v5229_v46  ;;  %v881_v56 = vmul.f32 %v4447_v39, %v5226_v43 }
 0x21d   :  { %921 = vperm.xlu0 %4448, %v877_v36   ;;  %916 = vperm.xlu1 %4449, %v876_v41  }
 0x221   :  { %931 = vperm.xlu0 %4448, %v879_v61   ;;  %926 = vperm.xlu1 %4449, %v878_v10  }
 0x225   :  { %941 = vperm.xlu0 %4448, %v881_v56   ;;  %936 = vperm.xlu1 %4449, %v880_v31  }
 0x229   :  { %4451 = vrot.lane.b32.xlu1 %v5235_v50, %s5093_s12  ;;  %4456 = vrot.lane.b32.xlu0 %v5233_v49, %s5093_s12 }
 0x22a   :  { %4481 = vset.pattern.permute.xlu0 %v5094_v13  ;;  %4480 = vset.pattern.permute.xlu1 %v5094_v13 }
 0x22d   :  { %4461 = vrot.lane.b32.xlu1 %v5241_v52, %s5093_s12  ;;  %4466 = vrot.lane.b32.xlu0 %v5238_v51, %s5093_s12 }
 0x231   :  { %4471 = vrot.lane.b32.xlu1 %v5247_v55, %s5093_s12  ;;  %4476 = vrot.lane.b32.xlu0 %v5244_v54, %s5093_s12 }
 0x28c   :  { %v5461_v63 = vpop.permute.xlu0 %886  ;;  %v5463_v41 = vpop.permute.xlu1 %891 }
 0x28d   :  { %7008 = vst [vmem:[#allocation45_spill] sm:$0xff] %v5461_v63  ;;  %7009 = vst [vmem:[#allocation46_spill] sm:$0xff] %v5463_v41 }
 0x294   :  { %v5465_v44 = vpop.permute.xlu0 %901  ;;  %v5467_v47 = vpop.permute.xlu1 %896 }
 0x295   :  { %7010 = vst [vmem:[#allocation47_spill] sm:$0xff] %v5465_v44  ;;  %7011 = vst [vmem:[#allocation48_spill] sm:$0xff] %v5467_v47 }
 0x298   :  { %v5469_v53 = vpop.permute.xlu0 %911  ;;  %v5471_v14 = vpop.permute.xlu1 %906 }
 0x299   :  { %7012 = vst [vmem:[#allocation49_spill] sm:$0xff] %v5469_v53  ;;  %7013 = vst [vmem:[#allocation50_spill] sm:$0xff] %v5471_v14 }
 0x29c   :  { %v5473_v28 = vpop.permute.xlu0 %921  ;;  %v5475_v18 = vpop.permute.xlu1 %916 }
 0x29d   :  { %7014 = vst [vmem:[#allocation51_spill] sm:$0xff] %v5473_v28  ;;  %7015 = vst [vmem:[#allocation52_spill] sm:$0xff] %v5475_v18 }
 0x2a0   :  { %v5477_v36 = vpop.permute.xlu0 %931  ;;  %v5479_v10 = vpop.permute.xlu1 %926 }
 0x2a1   :  { %7016 = vst [vmem:[#allocation53_spill] sm:$0xff] %v5477_v36  ;;  %7017 = vst [vmem:[#allocation54_spill] sm:$0xff] %v5479_v10 }
 0x2a4   :  { %v5481_v39 = vpop.permute.xlu0 %941  ;;  %v5483_v33 = vpop.permute.xlu1 %936 }
 0x2a5   :  { %7018 = vst [vmem:[#allocation55_spill] sm:$0xff] %v5481_v39  ;;  %7019 = vst [vmem:[#allocation56_spill] sm:$0xff] %v5483_v33 }
 0x2a8   :  { %v4452_v61 = vpop.permute.xlu1 %4451  ;;  %v4457_v31 = vpop.permute.xlu0 %4456 }
 0x2a9   :  { %v4454_v56 = vunpack.i.h.bf16 %v4452_v61  ;;  %v4453_v13 = vunpack.i.l.bf16 %v4452_v61  ;;  %v4458_v47 = vunpack.i.l.bf16 %v4457_v31  ;;  %v4459_v39 = vunpack.i.h.bf16 %v4457_v31 }
 0x2ab   :  { %v1035_v41 = vmul.f32 %v4454_v56, %v5179_v12  ;;  %v1034_v14 = vmul.f32 %v4453_v13, %v5177_v11  ;;  %v1036_v18 = vmul.f32 %v4458_v47, %v5168_v6  ;;  %v1037_v13 = vmul.f32 %v4459_v39, %v5170_v7 }
 0x2ac   :  { %v4462_v28 = vpop.permute.xlu1 %4461  ;;  %v4467_v53 = vpop.permute.xlu0 %4466 }
 0x2ad   :  { %v4463_v36 = vunpack.i.l.bf16 %v4462_v28  ;;  %1055 = vperm.xlu0 %4481, %v1035_v41   ;;  %1050 = vperm.xlu1 %4480, %v1034_v14   ;;  %v4468_v10 = vunpack.i.l.bf16 %v4467_v53  ;;  %v4464_v1 = vunpack.i.h.bf16 %v4462_v28  ;;  %v4469_v14 = vunpack.i.h.bf16 %v4467_v53 }
 0x2af   :  { %v1038_v33 = vmul.f32 %v4463_v36, %v5193_v22  ;;  %v1040_v63 = vmul.f32 %v4468_v10, %v5205_v30  ;;  %v1039_v47 = vmul.f32 %v4464_v1, %v5190_v19  ;;  %v1041_v10 = vmul.f32 %v4469_v14, %v5202_v27 }
 0x2b0   :  { %v4472_v44 = vpop.permute.xlu1 %4471  ;;  %v4477_v56 = vpop.permute.xlu0 %4476  ;;  %v5096_v1 = vmov 7  }
 0x2b1   :  { %1070 = vperm.xlu0 %4481, %v1038_v33   ;;  %1060 = vperm.xlu1 %4480, %v1036_v18   ;;  %v4473_v61 = vunpack.i.l.bf16 %v4472_v44  ;;  %v4478_v41 = vunpack.i.l.bf16 %v4477_v56  ;;  %v4474_v18 = vunpack.i.h.bf16 %v4472_v44  ;;  %v4479_v28 = vunpack.i.h.bf16 %v4477_v56 }
 0x2b3   :  { %v1042_v59 = vmul.f32 %v4473_v61, %v5217_v38  ;;  %v1044_v36 = vmul.f32 %v4478_v41, %v5229_v46  ;;  %v1043_v39 = vmul.f32 %v4474_v18, %v5214_v35 }
 0x2b5   :  { %1080 = vperm.xlu0 %4481, %v1040_v63   ;;  %1065 = vperm.xlu1 %4480, %v1037_v13   ;;  %v1045_v63 = vmul.f32 %v4479_v28, %v5226_v43 }
 0x2b9   :  { %1090 = vperm.xlu0 %4481, %v1042_v59   ;;  %1075 = vperm.xlu1 %4480, %v1039_v47  }
 0x2bd   :  { %1100 = vperm.xlu0 %4481, %v1044_v36   ;;  %1085 = vperm.xlu1 %4480, %v1041_v10  }
 0x2c1   :  { %1095 = vperm.xlu1 %4480, %v1043_v39   ;;  %4483 = vrot.lane.b32.xlu0 %v5235_v50, %s5095_s13 }
 0x2c2   :  { %4512 = vset.pattern.permute.xlu0 %v5096_v1 }
 0x2c5   :  { %1105 = vperm.xlu1 %4480, %v1045_v63   ;;  %4493 = vrot.lane.b32.xlu0 %v5241_v52, %s5095_s13 }
 0x2c9   :  { %4488 = vrot.lane.b32.xlu1 %v5233_v49, %s5095_s13  ;;  %4503 = vrot.lane.b32.xlu0 %v5247_v55, %s5095_s13 }
 0x2ca   :  { %4513 = vset.pattern.permute.xlu1 %v5096_v1 }
 0x2cd   :  { %4498 = vrot.lane.b32.xlu1 %v5238_v51, %s5095_s13 }
 0x2d1   :  { %4508 = vrot.lane.b32.xlu1 %v5244_v54, %s5095_s13  ;;  %s5125_s13 = smov 22  }
 0x32c   :  { %v5503_v59 = vpop.permute.xlu0 %1055  ;;  %v5505_v44 = vpop.permute.xlu1 %1050 }
 0x32d   :  { %7020 = vst [vmem:[#allocation57_spill] sm:$0xff] %v5503_v59  ;;  %7021 = vst [vmem:[#allocation58_spill] sm:$0xff] %v5505_v44 }
 0x330   :  { %v5507_v53 = vpop.permute.xlu0 %1070  ;;  %v5509_v33 = vpop.permute.xlu1 %1060 }
 0x331   :  { %7022 = vst [vmem:[#allocation59_spill] sm:$0xff] %v5507_v53  ;;  %7023 = vst [vmem:[#allocation60_spill] sm:$0xff] %v5509_v33 }
 0x334   :  { %v5511_v31 = vpop.permute.xlu0 %1080  ;;  %v5513_v61 = vpop.permute.xlu1 %1065 }
 0x335   :  { %7024 = vst [vmem:[#allocation61_spill] sm:$0xff] %v5511_v31  ;;  %7025 = vst [vmem:[#allocation62_spill] sm:$0xff] %v5513_v61 }
 0x338   :  { %v5515_v56 = vpop.permute.xlu0 %1090  ;;  %v5517_v13 = vpop.permute.xlu1 %1075 }
 0x339   :  { %7026 = vst [vmem:[#allocation63_spill] sm:$0xff] %v5515_v56  ;;  %7027 = vst [vmem:[#allocation64_spill] sm:$0xff] %v5517_v13 }
 0x33c   :  { %v5519_v41 = vpop.permute.xlu0 %1100  ;;  %v5521_v47 = vpop.permute.xlu1 %1085 }
 0x33d   :  { %7028 = vst [vmem:[#allocation65_spill] sm:$0xff] %v5519_v41  ;;  %7029 = vst [vmem:[#allocation66_spill] sm:$0xff] %v5521_v47 }
 0x340   :  { %v4484_v14 = vpop.permute.xlu0 %4483  ;;  %v5523_v36 = vpop.permute.xlu1 %1095 }
 0x341   :  { %7030 = vst [vmem:[#allocation67_spill] sm:$0xff] %v5523_v36  ;;  %v4486_v10 = vunpack.i.h.bf16 %v4484_v14  ;;  %v4485_v18 = vunpack.i.l.bf16 %v4484_v14 }
 0x343   :  { %v1199_v39 = vmul.f32 %v4486_v10, %v5179_v12  ;;  %v1198_v28 = vmul.f32 %v4485_v18, %v5177_v11 }
 0x344   :  { %v5527_v63 = vpop.permute.xlu1 %1105  ;;  %v4494_v1 = vpop.permute.xlu0 %4493 }
 0x345   :  { %7031 = vst [vmem:[#allocation68_spill] sm:$0xff] %v5527_v63  ;;  %1214 = vperm.xlu0 %4512, %v1198_v28   ;;  %1219 = vperm.xlu1 %4513, %v1199_v39   ;;  %v4496_v53 = vunpack.i.h.bf16 %v4494_v1  ;;  %v4495_v59 = vunpack.i.l.bf16 %v4494_v1 }
 0x347   :  { %v1203_v14 = vmul.f32 %v4496_v53, %v5190_v19  ;;  %v1202_v10 = vmul.f32 %v4495_v59, %v5193_v22 }
 0x348   :  { %v4489_v56 = vpop.permute.xlu1 %4488  ;;  %v4504_v39 = vpop.permute.xlu0 %4503 }
 0x349   :  { %v4491_v31 = vunpack.i.h.bf16 %v4489_v56  ;;  %v4490_v33 = vunpack.i.l.bf16 %v4489_v56  ;;  %v4506_v1 = vunpack.i.h.bf16 %v4504_v39 }
 0x34b   :  { %v1201_v47 = vmul.f32 %v4491_v31, %v5170_v7  ;;  %v1200_v36 = vmul.f32 %v4490_v33, %v5168_v6  ;;  %v4505_v31 = vunpack.i.l.bf16 %v4504_v39  ;;  %v1207_v33 = vmul.f32 %v4506_v1, %v5214_v35 }
 0x34c   :  { %v4499_v41 = vpop.permute.xlu1 %4498 }
 0x34d   :  { %1229 = vperm.xlu0 %4512, %v1201_v47   ;;  %1224 = vperm.xlu1 %4513, %v1200_v36   ;;  %v4501_v18 = vunpack.i.h.bf16 %v4499_v41  ;;  %v4500_v28 = vunpack.i.l.bf16 %v4499_v41  ;;  %v1206_v53 = vmul.f32 %v4505_v31, %v5217_v38 }
 0x34f   :  { %v1205_v63 = vmul.f32 %v4501_v18, %v5202_v27  ;;  %v1204_v56 = vmul.f32 %v4500_v28, %v5205_v30 }
 0x350   :  { %v4509_v13 = vpop.permute.xlu1 %4508 }
 0x351   :  { %1239 = vperm.xlu0 %4512, %v1203_v14   ;;  %1234 = vperm.xlu1 %4513, %v1202_v10   ;;  %v4511_v59 = vunpack.i.h.bf16 %v4509_v13  ;;  %v4510_v47 = vunpack.i.l.bf16 %v4509_v13  ;;  %v5098_v14 = vmov 8  }
 0x353   :  { %v1209_v41 = vmul.f32 %v4511_v59, %v5226_v43  ;;  %v1208_v36 = vmul.f32 %v4510_v47, %v5229_v46 }
 0x355   :  { %1249 = vperm.xlu0 %4512, %v1205_v63   ;;  %1244 = vperm.xlu1 %4513, %v1204_v56  }
 0x359   :  { %1259 = vperm.xlu0 %4512, %v1207_v33   ;;  %1254 = vperm.xlu1 %4513, %v1206_v53  }
 0x35d   :  { %1269 = vperm.xlu0 %4512, %v1209_v41   ;;  %1264 = vperm.xlu1 %4513, %v1208_v36  }
 0x361   :  { %4515 = vrot.lane.b32.xlu1 %v5235_v50, %s5097_s14  ;;  %4520 = vrot.lane.b32.xlu0 %v5233_v49, %s5097_s14 }
 0x362   :  { %4545 = vset.pattern.permute.xlu0 %v5098_v14  ;;  %4544 = vset.pattern.permute.xlu1 %v5098_v14 }
 0x365   :  { %4525 = vrot.lane.b32.xlu1 %v5241_v52, %s5097_s14  ;;  %4530 = vrot.lane.b32.xlu0 %v5238_v51, %s5097_s14 }
 0x369   :  { %4535 = vrot.lane.b32.xlu1 %v5247_v55, %s5097_s14  ;;  %4540 = vrot.lane.b32.xlu0 %v5244_v54, %s5097_s14 }
 0x3c4   :  { %v5551_v13 = vpop.permute.xlu0 %1214  ;;  %v5553_v63 = vpop.permute.xlu1 %1219 }
 0x3c5   :  { %7032 = vst [vmem:[#allocation69_spill] sm:$0xff] %v5551_v13  ;;  %7033 = vst [vmem:[#allocation70_spill] sm:$0xff] %v5553_v63 }
 0x3cc   :  { %v5555_v10 = vpop.permute.xlu0 %1229  ;;  %v5557_v18 = vpop.permute.xlu1 %1224 }
 0x3cd   :  { %7034 = vst [vmem:[#allocation71_spill] sm:$0xff] %v5555_v10  ;;  %7035 = vst [vmem:[#allocation72_spill] sm:$0xff] %v5557_v18 }
 0x3d0   :  { %v5559_v28 = vpop.permute.xlu0 %1239  ;;  %v5561_v39 = vpop.permute.xlu1 %1234 }
 0x3d1   :  { %7036 = vst [vmem:[#allocation73_spill] sm:$0xff] %v5559_v28  ;;  %7037 = vst [vmem:[#allocation74_spill] sm:$0xff] %v5561_v39 }
 0x3d4   :  { %v5563_v56 = vpop.permute.xlu0 %1249  ;;  %v5565_v1 = vpop.permute.xlu1 %1244 }
 0x3d5   :  { %7038 = vst [vmem:[#allocation75_spill] sm:$0xff] %v5563_v56  ;;  %7039 = vst [vmem:[#allocation76_spill] sm:$0xff] %v5565_v1 }
 0x3d8   :  { %v5567_v31 = vpop.permute.xlu0 %1259  ;;  %v5569_v33 = vpop.permute.xlu1 %1254 }
 0x3d9   :  { %7040 = vst [vmem:[#allocation77_spill] sm:$0xff] %v5567_v31  ;;  %7041 = vst [vmem:[#allocation78_spill] sm:$0xff] %v5569_v33 }
 0x3dc   :  { %v5571_v53 = vpop.permute.xlu0 %1269  ;;  %v5573_v59 = vpop.permute.xlu1 %1264 }
 0x3dd   :  { %7042 = vst [vmem:[#allocation79_spill] sm:$0xff] %v5571_v53  ;;  %7043 = vst [vmem:[#allocation80_spill] sm:$0xff] %v5573_v59 }
 0x3e0   :  { %v4516_v47 = vpop.permute.xlu1 %4515  ;;  %v4521_v41 = vpop.permute.xlu0 %4520 }
 0x3e1   :  { %v4518_v36 = vunpack.i.h.bf16 %v4516_v47  ;;  %v4517_v14 = vunpack.i.l.bf16 %v4516_v47  ;;  %v4522_v18 = vunpack.i.l.bf16 %v4521_v41  ;;  %v4523_v53 = vunpack.i.h.bf16 %v4521_v41 }
 0x3e3   :  { %v1363_v63 = vmul.f32 %v4518_v36, %v5179_v12  ;;  %v1362_v39 = vmul.f32 %v4517_v14, %v5177_v11  ;;  %v1364_v1 = vmul.f32 %v4522_v18, %v5168_v6  ;;  %v1365_v14 = vmul.f32 %v4523_v53, %v5170_v7 }
 0x3e4   :  { %v4526_v56 = vpop.permute.xlu1 %4525  ;;  %v4531_v28 = vpop.permute.xlu0 %4530 }
 0x3e5   :  { %v4527_v31 = vunpack.i.l.bf16 %v4526_v56  ;;  %1383 = vperm.xlu0 %4545, %v1363_v63   ;;  %1378 = vperm.xlu1 %4544, %v1362_v39   ;;  %v4532_v33 = vunpack.i.l.bf16 %v4531_v28  ;;  %v4528_v61 = vunpack.i.h.bf16 %v4526_v56  ;;  %v4533_v39 = vunpack.i.h.bf16 %v4531_v28 }
 0x3e7   :  { %v1366_v59 = vmul.f32 %v4527_v31, %v5193_v22  ;;  %v1368_v13 = vmul.f32 %v4532_v33, %v5205_v30  ;;  %v1367_v18 = vmul.f32 %v4528_v61, %v5190_v19  ;;  %v1369_v33 = vmul.f32 %v4533_v39, %v5202_v27 }
 0x3e8   :  { %v4536_v10 = vpop.permute.xlu1 %4535  ;;  %v4541_v36 = vpop.permute.xlu0 %4540  ;;  %v5100_v61 = vmov 9  }
 0x3e9   :  { %1398 = vperm.xlu0 %4545, %v1366_v59   ;;  %1388 = vperm.xlu1 %4544, %v1364_v1   ;;  %v4537_v47 = vunpack.i.l.bf16 %v4536_v10  ;;  %v4542_v63 = vunpack.i.l.bf16 %v4541_v36  ;;  %v4538_v1 = vunpack.i.h.bf16 %v4536_v10  ;;  %v4543_v56 = vunpack.i.h.bf16 %v4541_v36 }
 0x3eb   :  { %v1370_v44 = vmul.f32 %v4537_v47, %v5217_v38  ;;  %v1372_v31 = vmul.f32 %v4542_v63, %v5229_v46  ;;  %v1371_v53 = vmul.f32 %v4538_v1, %v5214_v35 }
 0x3ed   :  { %1408 = vperm.xlu0 %4545, %v1368_v13   ;;  %1393 = vperm.xlu1 %4544, %v1365_v14   ;;  %v1373_v13 = vmul.f32 %v4543_v56, %v5226_v43 }
 0x3f1   :  { %1418 = vperm.xlu0 %4545, %v1370_v44   ;;  %1403 = vperm.xlu1 %4544, %v1367_v18  }
 0x3f5   :  { %1428 = vperm.xlu0 %4545, %v1372_v31   ;;  %1413 = vperm.xlu1 %4544, %v1369_v33  }
 0x3f9   :  { %1423 = vperm.xlu1 %4544, %v1371_v53   ;;  %4547 = vrot.lane.b32.xlu0 %v5235_v50, %s5099_s15 }
 0x3fa   :  { %4576 = vset.pattern.permute.xlu0 %v5100_v61 }
 0x3fd   :  { %1433 = vperm.xlu1 %4544, %v1373_v13   ;;  %4557 = vrot.lane.b32.xlu0 %v5241_v52, %s5099_s15 }
 0x401   :  { %4552 = vrot.lane.b32.xlu1 %v5233_v49, %s5099_s15  ;;  %4567 = vrot.lane.b32.xlu0 %v5247_v55, %s5099_s15 }
 0x402   :  { %4577 = vset.pattern.permute.xlu1 %v5100_v61 }
 0x405   :  { %4562 = vrot.lane.b32.xlu1 %v5238_v51, %s5099_s15 }
 0x409   :  { %4572 = vrot.lane.b32.xlu1 %v5244_v54, %s5099_s15 }
 0x464   :  { %v5593_v44 = vpop.permute.xlu0 %1383  ;;  %v5595_v10 = vpop.permute.xlu1 %1378 }
 0x465   :  { %7044 = vst [vmem:[#allocation81_spill] sm:$0xff] %v5593_v44  ;;  %7045 = vst [vmem:[#allocation82_spill] sm:$0xff] %v5595_v10 }
 0x468   :  { %v5597_v28 = vpop.permute.xlu0 %1398  ;;  %v5599_v59 = vpop.permute.xlu1 %1388 }
 0x469   :  { %7046 = vst [vmem:[#allocation83_spill] sm:$0xff] %v5597_v28  ;;  %7047 = vst [vmem:[#allocation84_spill] sm:$0xff] %v5599_v59 }
 0x46c   :  { %v5601_v41 = vpop.permute.xlu0 %1408  ;;  %v5603_v47 = vpop.permute.xlu1 %1393 }
 0x46d   :  { %7048 = vst [vmem:[#allocation85_spill] sm:$0xff] %v5601_v41  ;;  %7049 = vst [vmem:[#allocation86_spill] sm:$0xff] %v5603_v47 }
 0x470   :  { %v5605_v36 = vpop.permute.xlu0 %1418  ;;  %v5607_v14 = vpop.permute.xlu1 %1403 }
 0x471   :  { %7050 = vst [vmem:[#allocation87_spill] sm:$0xff] %v5605_v36  ;;  %7051 = vst [vmem:[#allocation88_spill] sm:$0xff] %v5607_v14 }
 0x474   :  { %v5609_v63 = vpop.permute.xlu0 %1428  ;;  %v5611_v18 = vpop.permute.xlu1 %1413 }
 0x475   :  { %7052 = vst [vmem:[#allocation89_spill] sm:$0xff] %v5609_v63  ;;  %7053 = vst [vmem:[#allocation90_spill] sm:$0xff] %v5611_v18 }
 0x478   :  { %v4548_v39 = vpop.permute.xlu0 %4547  ;;  %v5613_v31 = vpop.permute.xlu1 %1423 }
 0x479   :  { %7054 = vst [vmem:[#allocation91_spill] sm:$0xff] %v5613_v31  ;;  %v4550_v33 = vunpack.i.h.bf16 %v4548_v39  ;;  %v4549_v1 = vunpack.i.l.bf16 %v4548_v39 }
 0x47b   :  { %v1527_v53 = vmul.f32 %v4550_v33, %v5179_v12  ;;  %v1526_v56 = vmul.f32 %v4549_v1, %v5177_v11 }
 0x47c   :  { %v5617_v13 = vpop.permute.xlu1 %1433  ;;  %v4558_v61 = vpop.permute.xlu0 %4557 }
 0x47d   :  { %7055 = vst [vmem:[#allocation92_spill] sm:$0xff] %v5617_v13  ;;  %1542 = vperm.xlu0 %4576, %v1526_v56   ;;  %1547 = vperm.xlu1 %4577, %v1527_v53   ;;  %v4560_v28 = vunpack.i.h.bf16 %v4558_v61  ;;  %v4559_v44 = vunpack.i.l.bf16 %v4558_v61 }
 0x47f   :  { %v1531_v39 = vmul.f32 %v4560_v28, %v5190_v19  ;;  %v1530_v33 = vmul.f32 %v4559_v44, %v5193_v22 }
 0x480   :  { %v4553_v36 = vpop.permute.xlu1 %4552  ;;  %v4568_v53 = vpop.permute.xlu0 %4567 }
 0x481   :  { %v4555_v41 = vunpack.i.h.bf16 %v4553_v36  ;;  %v4554_v59 = vunpack.i.l.bf16 %v4553_v36  ;;  %v4570_v61 = vunpack.i.h.bf16 %v4568_v53 }
 0x483   :  { %v1529_v18 = vmul.f32 %v4555_v41, %v5170_v7  ;;  %v1528_v31 = vmul.f32 %v4554_v59, %v5168_v6  ;;  %v4569_v41 = vunpack.i.l.bf16 %v4568_v53  ;;  %v1535_v59 = vmul.f32 %v4570_v61, %v5214_v35 }
 0x484   :  { %v4563_v63 = vpop.permute.xlu1 %4562 }
 0x485   :  { %1557 = vperm.xlu0 %4576, %v1529_v18   ;;  %1552 = vperm.xlu1 %4577, %v1528_v31   ;;  %v4565_v1 = vunpack.i.h.bf16 %v4563_v63  ;;  %v4564_v56 = vunpack.i.l.bf16 %v4563_v63  ;;  %v1534_v28 = vmul.f32 %v4569_v41, %v5217_v38 }
 0x487   :  { %v1533_v13 = vmul.f32 %v4565_v1, %v5202_v27  ;;  %v1532_v36 = vmul.f32 %v4564_v56, %v5205_v30 }
 0x488   :  { %v4573_v14 = vpop.permute.xlu1 %4572 }
 0x489   :  { %1567 = vperm.xlu0 %4576, %v1531_v39   ;;  %1562 = vperm.xlu1 %4577, %v1530_v33   ;;  %v4575_v44 = vunpack.i.h.bf16 %v4573_v14  ;;  %v4574_v18 = vunpack.i.l.bf16 %v4573_v14  ;;  %v5102_v39 = vmov 10  }
 0x48b   :  { %v1537_v63 = vmul.f32 %v4575_v44, %v5226_v43  ;;  %v1536_v31 = vmul.f32 %v4574_v18, %v5229_v46 }
 0x48d   :  { %1577 = vperm.xlu0 %4576, %v1533_v13   ;;  %1572 = vperm.xlu1 %4577, %v1532_v36  }
 0x491   :  { %1587 = vperm.xlu0 %4576, %v1535_v59   ;;  %1582 = vperm.xlu1 %4577, %v1534_v28  }
 0x495   :  { %1597 = vperm.xlu0 %4576, %v1537_v63   ;;  %1592 = vperm.xlu1 %4577, %v1536_v31  }
 0x499   :  { %4579 = vrot.lane.b32.xlu1 %v5235_v50, %s5101_s16  ;;  %4584 = vrot.lane.b32.xlu0 %v5233_v49, %s5101_s16 }
 0x49a   :  { %4609 = vset.pattern.permute.xlu0 %v5102_v39  ;;  %4608 = vset.pattern.permute.xlu1 %v5102_v39 }
 0x49d   :  { %4589 = vrot.lane.b32.xlu1 %v5241_v52, %s5101_s16  ;;  %4594 = vrot.lane.b32.xlu0 %v5238_v51, %s5101_s16 }
 0x4a1   :  { %4599 = vrot.lane.b32.xlu1 %v5247_v55, %s5101_s16  ;;  %4604 = vrot.lane.b32.xlu0 %v5244_v54, %s5101_s16 }
 0x4fc   :  { %v5635_v14 = vpop.permute.xlu0 %1542  ;;  %v5637_v13 = vpop.permute.xlu1 %1547 }
 0x4fd   :  { %7056 = vst [vmem:[#allocation93_spill] sm:$0xff] %v5635_v14  ;;  %7057 = vst [vmem:[#allocation94_spill] sm:$0xff] %v5637_v13 }
 0x504   :  { %v5639_v33 = vpop.permute.xlu0 %1557  ;;  %v5641_v1 = vpop.permute.xlu1 %1552 }
 0x505   :  { %7058 = vst [vmem:[#allocation95_spill] sm:$0xff] %v5639_v33  ;;  %7059 = vst [vmem:[#allocation96_spill] sm:$0xff] %v5641_v1 }
 0x508   :  { %v5643_v56 = vpop.permute.xlu0 %1567  ;;  %v5645_v53 = vpop.permute.xlu1 %1562 }
 0x509   :  { %7060 = vst [vmem:[#allocation97_spill] sm:$0xff] %v5643_v56  ;;  %7061 = vst [vmem:[#allocation98_spill] sm:$0xff] %v5645_v53 }
 0x50c   :  { %v5647_v36 = vpop.permute.xlu0 %1577  ;;  %v5649_v61 = vpop.permute.xlu1 %1572 }
 0x50d   :  { %7062 = vst [vmem:[#allocation99_spill] sm:$0xff] %v5647_v36  ;;  %7063 = vst [vmem:[#allocation100_spill] sm:$0xff] %v5649_v61 }
 0x510   :  { %v5651_v41 = vpop.permute.xlu0 %1587  ;;  %v5653_v59 = vpop.permute.xlu1 %1582 }
 0x511   :  { %7064 = vst [vmem:[#allocation101_spill] sm:$0xff] %v5651_v41  ;;  %7065 = vst [vmem:[#allocation102_spill] sm:$0xff] %v5653_v59 }
 0x514   :  { %v5655_v28 = vpop.permute.xlu0 %1597  ;;  %v5657_v44 = vpop.permute.xlu1 %1592 }
 0x515   :  { %7066 = vst [vmem:[#allocation103_spill] sm:$0xff] %v5655_v28  ;;  %7067 = vst [vmem:[#allocation104_spill] sm:$0xff] %v5657_v44 }
 0x518   :  { %v4580_v18 = vpop.permute.xlu1 %4579  ;;  %v4585_v63 = vpop.permute.xlu0 %4584 }
 0x519   :  { %v4582_v31 = vunpack.i.h.bf16 %v4580_v18  ;;  %v4581_v39 = vunpack.i.l.bf16 %v4580_v18  ;;  %v4586_v1 = vunpack.i.l.bf16 %v4585_v63  ;;  %v4587_v28 = vunpack.i.h.bf16 %v4585_v63 }
 0x51b   :  { %v1691_v13 = vmul.f32 %v4582_v31, %v5179_v12  ;;  %v1690_v53 = vmul.f32 %v4581_v39, %v5177_v11  ;;  %v1692_v61 = vmul.f32 %v4586_v1, %v5168_v6  ;;  %v1693_v39 = vmul.f32 %v4587_v28, %v5170_v7 }
 0x51c   :  { %v4590_v36 = vpop.permute.xlu1 %4589  ;;  %v4595_v56 = vpop.permute.xlu0 %4594 }
 0x51d   :  { %v4591_v41 = vunpack.i.l.bf16 %v4590_v36  ;;  %1711 = vperm.xlu0 %4609, %v1691_v13   ;;  %1706 = vperm.xlu1 %4608, %v1690_v53   ;;  %v4596_v59 = vunpack.i.l.bf16 %v4595_v56  ;;  %v4592_v47 = vunpack.i.h.bf16 %v4590_v36  ;;  %v4597_v53 = vunpack.i.h.bf16 %v4595_v56 }
 0x51f   :  { %v1694_v44 = vmul.f32 %v4591_v41, %v5193_v22  ;;  %v1696_v14 = vmul.f32 %v4596_v59, %v5205_v30  ;;  %v1695_v1 = vmul.f32 %v4592_v47, %v5190_v19  ;;  %v1697_v59 = vmul.f32 %v4597_v53, %v5202_v27 }
 0x520   :  { %v4600_v33 = vpop.permute.xlu1 %4599  ;;  %v4605_v31 = vpop.permute.xlu0 %4604  ;;  %v5104_v47 = vmov 11  }
 0x521   :  { %1726 = vperm.xlu0 %4609, %v1694_v44   ;;  %1716 = vperm.xlu1 %4608, %v1692_v61   ;;  %v4601_v18 = vunpack.i.l.bf16 %v4600_v33  ;;  %v4606_v13 = vunpack.i.l.bf16 %v4605_v31  ;;  %v4602_v61 = vunpack.i.h.bf16 %v4600_v33  ;;  %v4607_v36 = vunpack.i.h.bf16 %v4605_v31 }
 0x523   :  { %v1698_v10 = vmul.f32 %v4601_v18, %v5217_v38  ;;  %v1700_v41 = vmul.f32 %v4606_v13, %v5229_v46  ;;  %v1699_v28 = vmul.f32 %v4602_v61, %v5214_v35 }
 0x525   :  { %1736 = vperm.xlu0 %4609, %v1696_v14   ;;  %1721 = vperm.xlu1 %4608, %v1693_v39   ;;  %v1701_v14 = vmul.f32 %v4607_v36, %v5226_v43 }
 0x529   :  { %1746 = vperm.xlu0 %4609, %v1698_v10   ;;  %1731 = vperm.xlu1 %4608, %v1695_v1  }
 0x52d   :  { %1756 = vperm.xlu0 %4609, %v1700_v41   ;;  %1741 = vperm.xlu1 %4608, %v1697_v59  }
 0x531   :  { %1751 = vperm.xlu1 %4608, %v1699_v28   ;;  %4611 = vrot.lane.b32.xlu0 %v5235_v50, %s5103_s17 }
 0x532   :  { %4640 = vset.pattern.permute.xlu0 %v5104_v47 }
 0x535   :  { %1761 = vperm.xlu1 %4608, %v1701_v14   ;;  %4621 = vrot.lane.b32.xlu0 %v5241_v52, %s5103_s17 }
 0x539   :  { %4616 = vrot.lane.b32.xlu1 %v5233_v49, %s5103_s17  ;;  %4631 = vrot.lane.b32.xlu0 %v5247_v55, %s5103_s17 }
 0x53a   :  { %4641 = vset.pattern.permute.xlu1 %v5104_v47 }
 0x53d   :  { %4626 = vrot.lane.b32.xlu1 %v5238_v51, %s5103_s17 }
 0x541   :  { %4636 = vrot.lane.b32.xlu1 %v5244_v54, %s5103_s17  ;;  %s5127_s17 = smov 23  }
 0x59c   :  { %v5677_v10 = vpop.permute.xlu0 %1711  ;;  %v5679_v33 = vpop.permute.xlu1 %1706 }
 0x59d   :  { %7068 = vst [vmem:[#allocation105_spill] sm:$0xff] %v5677_v10  ;;  %7069 = vst [vmem:[#allocation106_spill] sm:$0xff] %v5679_v33 }
 0x5a0   :  { %v5681_v56 = vpop.permute.xlu0 %1726  ;;  %v5683_v44 = vpop.permute.xlu1 %1716 }
 0x5a1   :  { %7070 = vst [vmem:[#allocation107_spill] sm:$0xff] %v5681_v56  ;;  %7071 = vst [vmem:[#allocation108_spill] sm:$0xff] %v5683_v44 }
 0x5a4   :  { %v5685_v63 = vpop.permute.xlu0 %1736  ;;  %v5687_v18 = vpop.permute.xlu1 %1721 }
 0x5a5   :  { %7072 = vst [vmem:[#allocation109_spill] sm:$0xff] %v5685_v63  ;;  %7073 = vst [vmem:[#allocation110_spill] sm:$0xff] %v5687_v18 }
 0x5a8   :  { %v5689_v31 = vpop.permute.xlu0 %1746  ;;  %v5691_v39 = vpop.permute.xlu1 %1731 }
 0x5a9   :  { %7074 = vst [vmem:[#allocation111_spill] sm:$0xff] %v5689_v31  ;;  %7075 = vst [vmem:[#allocation112_spill] sm:$0xff] %v5691_v39 }
 0x5ac   :  { %v5693_v13 = vpop.permute.xlu0 %1756  ;;  %v5695_v1 = vpop.permute.xlu1 %1741 }
 0x5ad   :  { %7076 = vst [vmem:[#allocation113_spill] sm:$0xff] %v5693_v13  ;;  %7077 = vst [vmem:[#allocation114_spill] sm:$0xff] %v5695_v1 }
 0x5b0   :  { %v4612_v53 = vpop.permute.xlu0 %4611  ;;  %v5697_v41 = vpop.permute.xlu1 %1751 }
 0x5b1   :  { %7078 = vst [vmem:[#allocation115_spill] sm:$0xff] %v5697_v41  ;;  %v4614_v59 = vunpack.i.h.bf16 %v4612_v53  ;;  %v4613_v61 = vunpack.i.l.bf16 %v4612_v53 }
 0x5b3   :  { %v1855_v28 = vmul.f32 %v4614_v59, %v5179_v12  ;;  %v1854_v36 = vmul.f32 %v4613_v61, %v5177_v11 }
 0x5b4   :  { %v5701_v14 = vpop.permute.xlu1 %1761  ;;  %v4622_v47 = vpop.permute.xlu0 %4621 }
 0x5b5   :  { %7079 = vst [vmem:[#allocation116_spill] sm:$0xff] %v5701_v14  ;;  %1870 = vperm.xlu0 %4640, %v1854_v36   ;;  %1875 = vperm.xlu1 %4641, %v1855_v28   ;;  %v4624_v44 = vunpack.i.h.bf16 %v4622_v47  ;;  %v4623_v10 = vunpack.i.l.bf16 %v4622_v47 }
 0x5b7   :  { %v1859_v53 = vmul.f32 %v4624_v44, %v5190_v19  ;;  %v1858_v59 = vmul.f32 %v4623_v10, %v5193_v22 }
 0x5b8   :  { %v4617_v31 = vpop.permute.xlu1 %4616  ;;  %v4632_v28 = vpop.permute.xlu0 %4631 }
 0x5b9   :  { %v4619_v63 = vunpack.i.h.bf16 %v4617_v31  ;;  %v4618_v56 = vunpack.i.l.bf16 %v4617_v31  ;;  %v4634_v47 = vunpack.i.h.bf16 %v4632_v28 }
 0x5bb   :  { %v1857_v1 = vmul.f32 %v4619_v63, %v5170_v7  ;;  %v1856_v41 = vmul.f32 %v4618_v56, %v5168_v6  ;;  %v4633_v63 = vunpack.i.l.bf16 %v4632_v28  ;;  %v1863_v56 = vmul.f32 %v4634_v47, %v5214_v35 }
 0x5bc   :  { %v4627_v13 = vpop.permute.xlu1 %4626 }
 0x5bd   :  { %1885 = vperm.xlu0 %4640, %v1857_v1   ;;  %1880 = vperm.xlu1 %4641, %v1856_v41   ;;  %v4629_v61 = vunpack.i.h.bf16 %v4627_v13  ;;  %v4628_v36 = vunpack.i.l.bf16 %v4627_v13  ;;  %v1862_v44 = vmul.f32 %v4633_v63, %v5217_v38 }
 0x5bf   :  { %v1861_v14 = vmul.f32 %v4629_v61, %v5202_v27  ;;  %v1860_v31 = vmul.f32 %v4628_v36, %v5205_v30 }
 0x5c0   :  { %v4637_v39 = vpop.permute.xlu1 %4636 }
 0x5c1   :  { %1895 = vperm.xlu0 %4640, %v1859_v53   ;;  %1890 = vperm.xlu1 %4641, %v1858_v59   ;;  %v4639_v10 = vunpack.i.h.bf16 %v4637_v39  ;;  %v4638_v1 = vunpack.i.l.bf16 %v4637_v39  ;;  %v5106_v53 = vmov 12  }
 0x5c3   :  { %v1865_v13 = vmul.f32 %v4639_v10, %v5226_v43  ;;  %v1864_v41 = vmul.f32 %v4638_v1, %v5229_v46 }
 0x5c5   :  { %1905 = vperm.xlu0 %4640, %v1861_v14   ;;  %1900 = vperm.xlu1 %4641, %v1860_v31  }
 0x5c9   :  { %1915 = vperm.xlu0 %4640, %v1863_v56   ;;  %1910 = vperm.xlu1 %4641, %v1862_v44  }
 0x5cd   :  { %1925 = vperm.xlu0 %4640, %v1865_v13   ;;  %1920 = vperm.xlu1 %4641, %v1864_v41  }
 0x5d1   :  { %4643 = vrot.lane.b32.xlu1 %v5235_v50, %s5105_s18  ;;  %4648 = vrot.lane.b32.xlu0 %v5233_v49, %s5105_s18 }
 0x5d2   :  { %4673 = vset.pattern.permute.xlu0 %v5106_v53  ;;  %4672 = vset.pattern.permute.xlu1 %v5106_v53 }
 0x5d5   :  { %4653 = vrot.lane.b32.xlu1 %v5241_v52, %s5105_s18  ;;  %4658 = vrot.lane.b32.xlu0 %v5238_v51, %s5105_s18 }
 0x5d9   :  { %4663 = vrot.lane.b32.xlu1 %v5247_v55, %s5105_s18  ;;  %4668 = vrot.lane.b32.xlu0 %v5244_v54, %s5105_s18  ;;  %s5129_s18 = smov 24  }
 0x634   :  { %v5719_v39 = vpop.permute.xlu0 %1870  ;;  %v5721_v14 = vpop.permute.xlu1 %1875 }
 0x635   :  { %7080 = vst [vmem:[#allocation117_spill] sm:$0xff] %v5719_v39  ;;  %7081 = vst [vmem:[#allocation118_spill] sm:$0xff] %v5721_v14 }
 0x63c   :  { %v5723_v59 = vpop.permute.xlu0 %1885  ;;  %v5725_v61 = vpop.permute.xlu1 %1880 }
 0x63d   :  { %7082 = vst [vmem:[#allocation119_spill] sm:$0xff] %v5723_v59  ;;  %7083 = vst [vmem:[#allocation120_spill] sm:$0xff] %v5725_v61 }
 0x640   :  { %v5727_v36 = vpop.permute.xlu0 %1895  ;;  %v5729_v28 = vpop.permute.xlu1 %1890 }
 0x641   :  { %7084 = vst [vmem:[#allocation121_spill] sm:$0xff] %v5727_v36  ;;  %7085 = vst [vmem:[#allocation122_spill] sm:$0xff] %v5729_v28 }
 0x644   :  { %v5731_v31 = vpop.permute.xlu0 %1905  ;;  %v5733_v47 = vpop.permute.xlu1 %1900 }
 0x645   :  { %7086 = vst [vmem:[#allocation123_spill] sm:$0xff] %v5731_v31  ;;  %7087 = vst [vmem:[#allocation124_spill] sm:$0xff] %v5733_v47 }
 0x648   :  { %v5735_v63 = vpop.permute.xlu0 %1915  ;;  %v5737_v56 = vpop.permute.xlu1 %1910 }
 0x649   :  { %7088 = vst [vmem:[#allocation125_spill] sm:$0xff] %v5735_v63  ;;  %7089 = vst [vmem:[#allocation126_spill] sm:$0xff] %v5737_v56 }
 0x64c   :  { %v5739_v44 = vpop.permute.xlu0 %1925  ;;  %v5741_v10 = vpop.permute.xlu1 %1920 }
 0x64d   :  { %7090 = vst [vmem:[#allocation127_spill] sm:$0xff] %v5739_v44  ;;  %7091 = vst [vmem:[#allocation128_spill] sm:$0xff] %v5741_v10 }
 0x650   :  { %v4644_v1 = vpop.permute.xlu1 %4643  ;;  %v4649_v13 = vpop.permute.xlu0 %4648 }
 0x651   :  { %v4646_v41 = vunpack.i.h.bf16 %v4644_v1  ;;  %v4645_v53 = vunpack.i.l.bf16 %v4644_v1  ;;  %v4650_v61 = vunpack.i.l.bf16 %v4649_v13  ;;  %v4651_v44 = vunpack.i.h.bf16 %v4649_v13 }
 0x653   :  { %v2019_v14 = vmul.f32 %v4646_v41, %v5179_v12  ;;  %v2018_v28 = vmul.f32 %v4645_v53, %v5177_v11  ;;  %v2020_v47 = vmul.f32 %v4650_v61, %v5168_v6  ;;  %v2021_v53 = vmul.f32 %v4651_v44, %v5170_v7 }
 0x654   :  { %v4654_v31 = vpop.permute.xlu1 %4653  ;;  %v4659_v36 = vpop.permute.xlu0 %4658 }
 0x655   :  { %v4655_v63 = vunpack.i.l.bf16 %v4654_v31  ;;  %2039 = vperm.xlu0 %4673, %v2019_v14   ;;  %2034 = vperm.xlu1 %4672, %v2018_v28   ;;  %v4660_v56 = vunpack.i.l.bf16 %v4659_v36  ;;  %v4656_v39 = vunpack.i.h.bf16 %v4654_v31  ;;  %v4661_v28 = vunpack.i.h.bf16 %v4659_v36 }
 0x657   :  { %v2022_v10 = vmul.f32 %v4655_v63, %v5193_v22  ;;  %v2024_v18 = vmul.f32 %v4660_v56, %v5205_v30  ;;  %v2023_v61 = vmul.f32 %v4656_v39, %v5190_v19  ;;  %v2025_v56 = vmul.f32 %v4661_v28, %v5202_v27 }
 0x658   :  { %v4664_v59 = vpop.permute.xlu1 %4663  ;;  %v4669_v41 = vpop.permute.xlu0 %4668  ;;  %v5108_v39 = vmov 13  }
 0x659   :  { %2054 = vperm.xlu0 %4673, %v2022_v10   ;;  %2044 = vperm.xlu1 %4672, %v2020_v47   ;;  %v4665_v1 = vunpack.i.l.bf16 %v4664_v59  ;;  %v4670_v14 = vunpack.i.l.bf16 %v4669_v41  ;;  %v4666_v47 = vunpack.i.h.bf16 %v4664_v59  ;;  %v4671_v31 = vunpack.i.h.bf16 %v4669_v41 }
 0x65b   :  { %v2026_v33 = vmul.f32 %v4665_v1, %v5217_v38  ;;  %v2028_v63 = vmul.f32 %v4670_v14, %v5229_v46  ;;  %v2027_v44 = vmul.f32 %v4666_v47, %v5214_v35 }
 0x65d   :  { %2064 = vperm.xlu0 %4673, %v2024_v18   ;;  %2049 = vperm.xlu1 %4672, %v2021_v53   ;;  %v2029_v18 = vmul.f32 %v4671_v31, %v5226_v43 }
 0x661   :  { %2074 = vperm.xlu0 %4673, %v2026_v33   ;;  %2059 = vperm.xlu1 %4672, %v2023_v61  }
 0x665   :  { %2084 = vperm.xlu0 %4673, %v2028_v63   ;;  %2069 = vperm.xlu1 %4672, %v2025_v56  }
 0x669   :  { %2079 = vperm.xlu1 %4672, %v2027_v44   ;;  %4675 = vrot.lane.b32.xlu0 %v5235_v50, %s5107_s19 }
 0x66a   :  { %4704 = vset.pattern.permute.xlu0 %v5108_v39 }
 0x66d   :  { %2089 = vperm.xlu1 %4672, %v2029_v18   ;;  %4685 = vrot.lane.b32.xlu0 %v5241_v52, %s5107_s19 }
 0x671   :  { %4680 = vrot.lane.b32.xlu1 %v5233_v49, %s5107_s19  ;;  %4695 = vrot.lane.b32.xlu0 %v5247_v55, %s5107_s19 }
 0x672   :  { %4705 = vset.pattern.permute.xlu1 %v5108_v39 }
 0x675   :  { %4690 = vrot.lane.b32.xlu1 %v5238_v51, %s5107_s19 }
 0x679   :  { %4700 = vrot.lane.b32.xlu1 %v5244_v54, %s5107_s19 }
 0x6d4   :  { %v5761_v33 = vpop.permute.xlu0 %2039  ;;  %v5763_v59 = vpop.permute.xlu1 %2034 }
 0x6d5   :  { %7092 = vst [vmem:[#allocation129_spill] sm:$0xff] %v5761_v33  ;;  %7093 = vst [vmem:[#allocation130_spill] sm:$0xff] %v5763_v59 }
 0x6d8   :  { %v5765_v36 = vpop.permute.xlu0 %2054  ;;  %v5767_v10 = vpop.permute.xlu1 %2044 }
 0x6d9   :  { %7094 = vst [vmem:[#allocation131_spill] sm:$0xff] %v5765_v36  ;;  %7095 = vst [vmem:[#allocation132_spill] sm:$0xff] %v5767_v10 }
 0x6dc   :  { %v5769_v13 = vpop.permute.xlu0 %2064  ;;  %v5771_v1 = vpop.permute.xlu1 %2049 }
 0x6dd   :  { %7096 = vst [vmem:[#allocation133_spill] sm:$0xff] %v5769_v13  ;;  %7097 = vst [vmem:[#allocation134_spill] sm:$0xff] %v5771_v1 }
 0x6e0   :  { %v5773_v41 = vpop.permute.xlu0 %2074  ;;  %v5775_v53 = vpop.permute.xlu1 %2059 }
 0x6e1   :  { %7098 = vst [vmem:[#allocation135_spill] sm:$0xff] %v5773_v41  ;;  %7099 = vst [vmem:[#allocation136_spill] sm:$0xff] %v5775_v53 }
 0x6e4   :  { %v5777_v14 = vpop.permute.xlu0 %2084  ;;  %v5779_v61 = vpop.permute.xlu1 %2069 }
 0x6e5   :  { %7100 = vst [vmem:[#allocation137_spill] sm:$0xff] %v5777_v14  ;;  %7101 = vst [vmem:[#allocation138_spill] sm:$0xff] %v5779_v61 }
 0x6e8   :  { %v4676_v28 = vpop.permute.xlu0 %4675  ;;  %v5781_v63 = vpop.permute.xlu1 %2079 }
 0x6e9   :  { %7102 = vst [vmem:[#allocation139_spill] sm:$0xff] %v5781_v63  ;;  %v4678_v56 = vunpack.i.h.bf16 %v4676_v28  ;;  %v4677_v47 = vunpack.i.l.bf16 %v4676_v28 }
 0x6eb   :  { %v2183_v44 = vmul.f32 %v4678_v56, %v5179_v12  ;;  %v2182_v31 = vmul.f32 %v4677_v47, %v5177_v11 }
 0x6ec   :  { %v5785_v18 = vpop.permute.xlu1 %2089  ;;  %v4686_v39 = vpop.permute.xlu0 %4685 }
 0x6ed   :  { %7103 = vst [vmem:[#allocation140_spill] sm:$0xff] %v5785_v18  ;;  %2198 = vperm.xlu0 %4704, %v2182_v31   ;;  %2203 = vperm.xlu1 %4705, %v2183_v44   ;;  %v4688_v10 = vunpack.i.h.bf16 %v4686_v39  ;;  %v4687_v33 = vunpack.i.l.bf16 %v4686_v39 }
 0x6ef   :  { %v2187_v28 = vmul.f32 %v4688_v10, %v5190_v19  ;;  %v2186_v56 = vmul.f32 %v4687_v33, %v5193_v22 }
 0x6f0   :  { %v4681_v41 = vpop.permute.xlu1 %4680  ;;  %v4696_v44 = vpop.permute.xlu0 %4695 }
 0x6f1   :  { %v4683_v13 = vunpack.i.h.bf16 %v4681_v41  ;;  %v4682_v36 = vunpack.i.l.bf16 %v4681_v41  ;;  %v4698_v39 = vunpack.i.h.bf16 %v4696_v44 }
 0x6f3   :  { %v2185_v61 = vmul.f32 %v4683_v13, %v5170_v7  ;;  %v2184_v63 = vmul.f32 %v4682_v36, %v5168_v6  ;;  %v4697_v13 = vunpack.i.l.bf16 %v4696_v44  ;;  %v2191_v36 = vmul.f32 %v4698_v39, %v5214_v35 }
 0x6f4   :  { %v4691_v14 = vpop.permute.xlu1 %4690 }
 0x6f5   :  { %2213 = vperm.xlu0 %4704, %v2185_v61   ;;  %2208 = vperm.xlu1 %4705, %v2184_v63   ;;  %v4693_v47 = vunpack.i.h.bf16 %v4691_v14  ;;  %v4692_v31 = vunpack.i.l.bf16 %v4691_v14  ;;  %v2190_v10 = vmul.f32 %v4697_v13, %v5217_v38 }
 0x6f7   :  { %v2189_v18 = vmul.f32 %v4693_v47, %v5202_v27  ;;  %v2188_v41 = vmul.f32 %v4692_v31, %v5205_v30 }
 0x6f8   :  { %v4701_v53 = vpop.permute.xlu1 %4700 }
 0x6f9   :  { %2223 = vperm.xlu0 %4704, %v2187_v28   ;;  %2218 = vperm.xlu1 %4705, %v2186_v56   ;;  %v4703_v33 = vunpack.i.h.bf16 %v4701_v53  ;;  %v4702_v61 = vunpack.i.l.bf16 %v4701_v53  ;;  %v5110_v28 = vmov 14  }
 0x6fb   :  { %v2193_v14 = vmul.f32 %v4703_v33, %v5226_v43  ;;  %v2192_v63 = vmul.f32 %v4702_v61, %v5229_v46 }
 0x6fd   :  { %2233 = vperm.xlu0 %4704, %v2189_v18   ;;  %2228 = vperm.xlu1 %4705, %v2188_v41  }
 0x701   :  { %2243 = vperm.xlu0 %4704, %v2191_v36   ;;  %2238 = vperm.xlu1 %4705, %v2190_v10  }
 0x705   :  { %2253 = vperm.xlu0 %4704, %v2193_v14   ;;  %2248 = vperm.xlu1 %4705, %v2192_v63  }
 0x709   :  { %4707 = vrot.lane.b32.xlu1 %v5235_v50, %s5109_s20  ;;  %4712 = vrot.lane.b32.xlu0 %v5233_v49, %s5109_s20 }
 0x70a   :  { %4737 = vset.pattern.permute.xlu0 %v5110_v28  ;;  %4736 = vset.pattern.permute.xlu1 %v5110_v28 }
 0x70d   :  { %4717 = vrot.lane.b32.xlu1 %v5241_v52, %s5109_s20  ;;  %4722 = vrot.lane.b32.xlu0 %v5238_v51, %s5109_s20 }
 0x711   :  { %4727 = vrot.lane.b32.xlu1 %v5247_v55, %s5109_s20  ;;  %4732 = vrot.lane.b32.xlu0 %v5244_v54, %s5109_s20 }
 0x76c   :  { %v5803_v53 = vpop.permute.xlu0 %2198  ;;  %v5805_v18 = vpop.permute.xlu1 %2203 }
 0x76d   :  { %7104 = vst [vmem:[#allocation141_spill] sm:$0xff] %v5803_v53  ;;  %7105 = vst [vmem:[#allocation142_spill] sm:$0xff] %v5805_v18 }
 0x774   :  { %v5807_v56 = vpop.permute.xlu0 %2213  ;;  %v5809_v47 = vpop.permute.xlu1 %2208 }
 0x775   :  { %7106 = vst [vmem:[#allocation143_spill] sm:$0xff] %v5807_v56  ;;  %7107 = vst [vmem:[#allocation144_spill] sm:$0xff] %v5809_v47 }
 0x778   :  { %v5811_v31 = vpop.permute.xlu0 %2223  ;;  %v5813_v44 = vpop.permute.xlu1 %2218 }
 0x779   :  { %7108 = vst [vmem:[#allocation145_spill] sm:$0xff] %v5811_v31  ;;  %7109 = vst [vmem:[#allocation146_spill] sm:$0xff] %v5813_v44 }
 0x77c   :  { %v5815_v41 = vpop.permute.xlu0 %2233  ;;  %v5817_v39 = vpop.permute.xlu1 %2228 }
 0x77d   :  { %7110 = vst [vmem:[#allocation147_spill] sm:$0xff] %v5815_v41  ;;  %7111 = vst [vmem:[#allocation148_spill] sm:$0xff] %v5817_v39 }
 0x780   :  { %v5819_v13 = vpop.permute.xlu0 %2243  ;;  %v5821_v36 = vpop.permute.xlu1 %2238 }
 0x781   :  { %7112 = vst [vmem:[#allocation149_spill] sm:$0xff] %v5819_v13  ;;  %7113 = vst [vmem:[#allocation150_spill] sm:$0xff] %v5821_v36 }
 0x784   :  { %v5823_v10 = vpop.permute.xlu0 %2253  ;;  %v5825_v33 = vpop.permute.xlu1 %2248 }
 0x785   :  { %7114 = vst [vmem:[#allocation151_spill] sm:$0xff] %v5823_v10  ;;  %7115 = vst [vmem:[#allocation152_spill] sm:$0xff] %v5825_v33 }
 0x788   :  { %v4708_v61 = vpop.permute.xlu1 %4707  ;;  %v4713_v14 = vpop.permute.xlu0 %4712 }
 0x789   :  { %v4710_v63 = vunpack.i.h.bf16 %v4708_v61  ;;  %v4709_v28 = vunpack.i.l.bf16 %v4708_v61  ;;  %v4714_v47 = vunpack.i.l.bf16 %v4713_v14  ;;  %v4715_v10 = vunpack.i.h.bf16 %v4713_v14 }
 0x78b   :  { %v2347_v18 = vmul.f32 %v4710_v63, %v5179_v12  ;;  %v2346_v44 = vmul.f32 %v4709_v28, %v5177_v11  ;;  %v2348_v39 = vmul.f32 %v4714_v47, %v5168_v6  ;;  %v2349_v28 = vmul.f32 %v4715_v10, %v5170_v7 }
 0x78c   :  { %v4718_v41 = vpop.permute.xlu1 %4717  ;;  %v4723_v31 = vpop.permute.xlu0 %4722 }
 0x78d   :  { %v4719_v13 = vunpack.i.l.bf16 %v4718_v41  ;;  %2367 = vperm.xlu0 %4737, %v2347_v18   ;;  %2362 = vperm.xlu1 %4736, %v2346_v44   ;;  %v4724_v36 = vunpack.i.l.bf16 %v4723_v31  ;;  %v4720_v53 = vunpack.i.h.bf16 %v4718_v41  ;;  %v4725_v44 = vunpack.i.h.bf16 %v4723_v31 }
 0x78f   :  { %v2350_v33 = vmul.f32 %v4719_v13, %v5193_v22  ;;  %v2352_v1 = vmul.f32 %v4724_v36, %v5205_v30  ;;  %v2351_v47 = vmul.f32 %v4720_v53, %v5190_v19  ;;  %v2353_v36 = vmul.f32 %v4725_v44, %v5202_v27 }
 0x790   :  { %v4728_v56 = vpop.permute.xlu1 %4727  ;;  %v4733_v63 = vpop.permute.xlu0 %4732  ;;  %v5112_v53 = vmov 15  }
 0x791   :  { %2382 = vperm.xlu0 %4737, %v2350_v33   ;;  %2372 = vperm.xlu1 %4736, %v2348_v39   ;;  %v4729_v61 = vunpack.i.l.bf16 %v4728_v56  ;;  %v4734_v18 = vunpack.i.l.bf16 %v4733_v63  ;;  %v4730_v39 = vunpack.i.h.bf16 %v4728_v56  ;;  %v4735_v41 = vunpack.i.h.bf16 %v4733_v63 }
 0x793   :  { %v2354_v59 = vmul.f32 %v4729_v61, %v5217_v38  ;;  %v2356_v13 = vmul.f32 %v4734_v18, %v5229_v46  ;;  %v2355_v10 = vmul.f32 %v4730_v39, %v5214_v35 }
 0x795   :  { %2392 = vperm.xlu0 %4737, %v2352_v1   ;;  %2377 = vperm.xlu1 %4736, %v2349_v28   ;;  %v2357_v1 = vmul.f32 %v4735_v41, %v5226_v43 }
 0x799   :  { %2402 = vperm.xlu0 %4737, %v2354_v59   ;;  %2387 = vperm.xlu1 %4736, %v2351_v47  }
 0x79d   :  { %2412 = vperm.xlu0 %4737, %v2356_v13   ;;  %2397 = vperm.xlu1 %4736, %v2353_v36  }
 0x7a1   :  { %2407 = vperm.xlu1 %4736, %v2355_v10   ;;  %4739 = vrot.lane.b32.xlu0 %v5235_v50, %s5111_s21 }
 0x7a2   :  { %4768 = vset.pattern.permute.xlu0 %v5112_v53 }
 0x7a5   :  { %2417 = vperm.xlu1 %4736, %v2357_v1   ;;  %4749 = vrot.lane.b32.xlu0 %v5241_v52, %s5111_s21 }
 0x7a9   :  { %4744 = vrot.lane.b32.xlu1 %v5233_v49, %s5111_s21  ;;  %4759 = vrot.lane.b32.xlu0 %v5247_v55, %s5111_s21 }
 0x7aa   :  { %4769 = vset.pattern.permute.xlu1 %v5112_v53 }
 0x7ad   :  { %4754 = vrot.lane.b32.xlu1 %v5238_v51, %s5111_s21 }
 0x7b1   :  { %4764 = vrot.lane.b32.xlu1 %v5244_v54, %s5111_s21 }
 0x80c   :  { %v5845_v59 = vpop.permute.xlu0 %2367  ;;  %v5847_v56 = vpop.permute.xlu1 %2362 }
 0x80d   :  { %7116 = vst [vmem:[#allocation153_spill] sm:$0xff] %v5845_v59  ;;  %7117 = vst [vmem:[#allocation154_spill] sm:$0xff] %v5847_v56 }
 0x810   :  { %v5849_v31 = vpop.permute.xlu0 %2382  ;;  %v5851_v33 = vpop.permute.xlu1 %2372 }
 0x811   :  { %7118 = vst [vmem:[#allocation155_spill] sm:$0xff] %v5849_v31  ;;  %7119 = vst [vmem:[#allocation156_spill] sm:$0xff] %v5851_v33 }
 0x814   :  { %v5853_v14 = vpop.permute.xlu0 %2392  ;;  %v5855_v61 = vpop.permute.xlu1 %2377 }
 0x815   :  { %7120 = vst [vmem:[#allocation157_spill] sm:$0xff] %v5853_v14  ;;  %7121 = vst [vmem:[#allocation158_spill] sm:$0xff] %v5855_v61 }
 0x818   :  { %v5857_v63 = vpop.permute.xlu0 %2402  ;;  %v5859_v28 = vpop.permute.xlu1 %2387 }
 0x819   :  { %7122 = vst [vmem:[#allocation159_spill] sm:$0xff] %v5857_v63  ;;  %7123 = vst [vmem:[#allocation160_spill] sm:$0xff] %v5859_v28 }
 0x81c   :  { %v5861_v18 = vpop.permute.xlu0 %2412  ;;  %v5863_v47 = vpop.permute.xlu1 %2397 }
 0x81d   :  { %7124 = vst [vmem:[#allocation161_spill] sm:$0xff] %v5861_v18  ;;  %7125 = vst [vmem:[#allocation162_spill] sm:$0xff] %v5863_v47 }
 0x820   :  { %v4740_v44 = vpop.permute.xlu0 %4739  ;;  %v5865_v13 = vpop.permute.xlu1 %2407 }
 0x821   :  { %7126 = vst [vmem:[#allocation163_spill] sm:$0xff] %v5865_v13  ;;  %v4742_v36 = vunpack.i.h.bf16 %v4740_v44  ;;  %v4741_v39 = vunpack.i.l.bf16 %v4740_v44 }
 0x823   :  { %v2511_v10 = vmul.f32 %v4742_v36, %v5179_v12  ;;  %v2510_v41 = vmul.f32 %v4741_v39, %v5177_v11 }
 0x824   :  { %v5869_v1 = vpop.permute.xlu1 %2417  ;;  %v4750_v53 = vpop.permute.xlu0 %4749 }
 0x825   :  { %7127 = vst [vmem:[#allocation164_spill] sm:$0xff] %v5869_v1  ;;  %2526 = vperm.xlu0 %4768, %v2510_v41   ;;  %2531 = vperm.xlu1 %4769, %v2511_v10   ;;  %v4752_v33 = vunpack.i.h.bf16 %v4750_v53  ;;  %v4751_v59 = vunpack.i.l.bf16 %v4750_v53 }
 0x827   :  { %v2515_v44 = vmul.f32 %v4752_v33, %v5190_v19  ;;  %v2514_v36 = vmul.f32 %v4751_v59, %v5193_v22 }
 0x828   :  { %v4745_v63 = vpop.permute.xlu1 %4744  ;;  %v4760_v10 = vpop.permute.xlu0 %4759 }
 0x829   :  { %v4747_v14 = vunpack.i.h.bf16 %v4745_v63  ;;  %v4746_v31 = vunpack.i.l.bf16 %v4745_v63  ;;  %v4762_v53 = vunpack.i.h.bf16 %v4760_v10 }
 0x82b   :  { %v2513_v47 = vmul.f32 %v4747_v14, %v5170_v7  ;;  %v2512_v13 = vmul.f32 %v4746_v31, %v5168_v6  ;;  %v4761_v14 = vunpack.i.l.bf16 %v4760_v10  ;;  %v2519_v31 = vmul.f32 %v4762_v53, %v5214_v35 }
 0x82c   :  { %v4755_v18 = vpop.permute.xlu1 %4754 }
 0x82d   :  { %2541 = vperm.xlu0 %4768, %v2513_v47   ;;  %2536 = vperm.xlu1 %4769, %v2512_v13   ;;  %v4757_v39 = vunpack.i.h.bf16 %v4755_v18  ;;  %v4756_v41 = vunpack.i.l.bf16 %v4755_v18  ;;  %v2518_v33 = vmul.f32 %v4761_v14, %v5217_v38 }
 0x82f   :  { %v2517_v1 = vmul.f32 %v4757_v39, %v5202_v27  ;;  %v2516_v63 = vmul.f32 %v4756_v41, %v5205_v30 }
 0x830   :  { %v4765_v28 = vpop.permute.xlu1 %4764 }
 0x831   :  { %2551 = vperm.xlu0 %4768, %v2515_v44   ;;  %2546 = vperm.xlu1 %4769, %v2514_v36   ;;  %v4767_v59 = vunpack.i.h.bf16 %v4765_v28  ;;  %v4766_v47 = vunpack.i.l.bf16 %v4765_v28  ;;  %v5114_v44 = vmov 16  }
 0x833   :  { %v2521_v18 = vmul.f32 %v4767_v59, %v5226_v43  ;;  %v2520_v13 = vmul.f32 %v4766_v47, %v5229_v46 }
 0x835   :  { %2561 = vperm.xlu0 %4768, %v2517_v1   ;;  %2556 = vperm.xlu1 %4769, %v2516_v63  }
 0x839   :  { %2571 = vperm.xlu0 %4768, %v2519_v31   ;;  %2566 = vperm.xlu1 %4769, %v2518_v33  }
 0x83d   :  { %2581 = vperm.xlu0 %4768, %v2521_v18   ;;  %2576 = vperm.xlu1 %4769, %v2520_v13  }
 0x841   :  { %4771 = vrot.lane.b32.xlu1 %v5235_v50, %s5113_s22  ;;  %4776 = vrot.lane.b32.xlu0 %v5233_v49, %s5113_s22 }
 0x842   :  { %4801 = vset.pattern.permute.xlu0 %v5114_v44  ;;  %4800 = vset.pattern.permute.xlu1 %v5114_v44 }
 0x845   :  { %4781 = vrot.lane.b32.xlu1 %v5241_v52, %s5113_s22  ;;  %4786 = vrot.lane.b32.xlu0 %v5238_v51, %s5113_s22 }
 0x849   :  { %4791 = vrot.lane.b32.xlu1 %v5247_v55, %s5113_s22  ;;  %4796 = vrot.lane.b32.xlu0 %v5244_v54, %s5113_s22 }
 0x8a4   :  { %v5887_v28 = vpop.permute.xlu0 %2526  ;;  %v5889_v1 = vpop.permute.xlu1 %2531 }
 0x8a5   :  { %7128 = vst [vmem:[#allocation165_spill] sm:$0xff] %v5887_v28  ;;  %7129 = vst [vmem:[#allocation166_spill] sm:$0xff] %v5889_v1 }
 0x8ac   :  { %v5891_v36 = vpop.permute.xlu0 %2541  ;;  %v5893_v39 = vpop.permute.xlu1 %2536 }
 0x8ad   :  { %7130 = vst [vmem:[#allocation167_spill] sm:$0xff] %v5891_v36  ;;  %7131 = vst [vmem:[#allocation168_spill] sm:$0xff] %v5893_v39 }
 0x8b0   :  { %v5895_v41 = vpop.permute.xlu0 %2551  ;;  %v5897_v10 = vpop.permute.xlu1 %2546 }
 0x8b1   :  { %7132 = vst [vmem:[#allocation169_spill] sm:$0xff] %v5895_v41  ;;  %7133 = vst [vmem:[#allocation170_spill] sm:$0xff] %v5897_v10 }
 0x8b4   :  { %v5899_v63 = vpop.permute.xlu0 %2561  ;;  %v5901_v53 = vpop.permute.xlu1 %2556 }
 0x8b5   :  { %7134 = vst [vmem:[#allocation171_spill] sm:$0xff] %v5899_v63  ;;  %7135 = vst [vmem:[#allocation172_spill] sm:$0xff] %v5901_v53 }
 0x8b8   :  { %v5903_v14 = vpop.permute.xlu0 %2571  ;;  %v5905_v31 = vpop.permute.xlu1 %2566 }
 0x8b9   :  { %7136 = vst [vmem:[#allocation173_spill] sm:$0xff] %v5903_v14  ;;  %7137 = vst [vmem:[#allocation174_spill] sm:$0xff] %v5905_v31 }
 0x8bc   :  { %v5907_v33 = vpop.permute.xlu0 %2581  ;;  %v5909_v59 = vpop.permute.xlu1 %2576 }
 0x8bd   :  { %7138 = vst [vmem:[#allocation175_spill] sm:$0xff] %v5907_v33  ;;  %7139 = vst [vmem:[#allocation176_spill] sm:$0xff] %v5909_v59 }
 0x8c0   :  { %v4772_v47 = vpop.permute.xlu1 %4771  ;;  %v4777_v18 = vpop.permute.xlu0 %4776 }
 0x8c1   :  { %v4774_v13 = vunpack.i.h.bf16 %v4772_v47  ;;  %v4773_v44 = vunpack.i.l.bf16 %v4772_v47  ;;  %v4778_v39 = vunpack.i.l.bf16 %v4777_v18  ;;  %v4779_v33 = vunpack.i.h.bf16 %v4777_v18 }
 0x8c3   :  { %v2675_v1 = vmul.f32 %v4774_v13, %v5179_v12  ;;  %v2674_v10 = vmul.f32 %v4773_v44, %v5177_v11  ;;  %v2676_v53 = vmul.f32 %v4778_v39, %v5168_v6  ;;  %v2677_v44 = vmul.f32 %v4779_v33, %v5170_v7 }
 0x8c4   :  { %v4782_v63 = vpop.permute.xlu1 %4781  ;;  %v4787_v41 = vpop.permute.xlu0 %4786 }
 0x8c5   :  { %v4783_v14 = vunpack.i.l.bf16 %v4782_v63  ;;  %2695 = vperm.xlu0 %4801, %v2675_v1   ;;  %2690 = vperm.xlu1 %4800, %v2674_v10   ;;  %v4788_v31 = vunpack.i.l.bf16 %v4787_v41  ;;  %v4784_v28 = vunpack.i.h.bf16 %v4782_v63  ;;  %v4789_v10 = vunpack.i.h.bf16 %v4787_v41 }
 0x8c7   :  { %v2678_v59 = vmul.f32 %v4783_v14, %v5193_v22  ;;  %v2680_v61 = vmul.f32 %v4788_v31, %v5205_v30  ;;  %v2679_v39 = vmul.f32 %v4784_v28, %v5190_v19  ;;  %v2681_v31 = vmul.f32 %v4789_v10, %v5202_v27 }
 0x8c8   :  { %v4792_v36 = vpop.permute.xlu1 %4791  ;;  %v4797_v13 = vpop.permute.xlu0 %4796  ;;  %v5116_v28 = vmov 17  }
 0x8c9   :  { %2710 = vperm.xlu0 %4801, %v2678_v59   ;;  %2700 = vperm.xlu1 %4800, %v2676_v53   ;;  %v4793_v47 = vunpack.i.l.bf16 %v4792_v36  ;;  %v4798_v1 = vunpack.i.l.bf16 %v4797_v13  ;;  %v4794_v53 = vunpack.i.h.bf16 %v4792_v36  ;;  %v4799_v63 = vunpack.i.h.bf16 %v4797_v13 }
 0x8cb   :  { %v2682_v56 = vmul.f32 %v4793_v47, %v5217_v38  ;;  %v2684_v14 = vmul.f32 %v4798_v1, %v5229_v46  ;;  %v2683_v33 = vmul.f32 %v4794_v53, %v5214_v35 }
 0x8cd   :  { %2720 = vperm.xlu0 %4801, %v2680_v61   ;;  %2705 = vperm.xlu1 %4800, %v2677_v44   ;;  %v2685_v61 = vmul.f32 %v4799_v63, %v5226_v43 }
 0x8d1   :  { %2730 = vperm.xlu0 %4801, %v2682_v56   ;;  %2715 = vperm.xlu1 %4800, %v2679_v39  }
 0x8d5   :  { %2740 = vperm.xlu0 %4801, %v2684_v14   ;;  %2725 = vperm.xlu1 %4800, %v2681_v31  }
 0x8d9   :  { %2735 = vperm.xlu1 %4800, %v2683_v33   ;;  %4803 = vrot.lane.b32.xlu0 %v5235_v50, %s5115_s23 }
 0x8da   :  { %4832 = vset.pattern.permute.xlu0 %v5116_v28 }
 0x8dd   :  { %2745 = vperm.xlu1 %4800, %v2685_v61   ;;  %4813 = vrot.lane.b32.xlu0 %v5241_v52, %s5115_s23 }
 0x8e1   :  { %4808 = vrot.lane.b32.xlu1 %v5233_v49, %s5115_s23  ;;  %4823 = vrot.lane.b32.xlu0 %v5247_v55, %s5115_s23 }
 0x8e2   :  { %4833 = vset.pattern.permute.xlu1 %v5116_v28 }
 0x8e5   :  { %4818 = vrot.lane.b32.xlu1 %v5238_v51, %s5115_s23 }
 0x8e9   :  { %4828 = vrot.lane.b32.xlu1 %v5244_v54, %s5115_s23 }
 0x944   :  { %v5929_v56 = vpop.permute.xlu0 %2695  ;;  %v5931_v36 = vpop.permute.xlu1 %2690 }
 0x945   :  { %7140 = vst [vmem:[#allocation177_spill] sm:$0xff] %v5929_v56  ;;  %7141 = vst [vmem:[#allocation178_spill] sm:$0xff] %v5931_v36 }
 0x948   :  { %v5933_v41 = vpop.permute.xlu0 %2710  ;;  %v5935_v59 = vpop.permute.xlu1 %2700 }
 0x949   :  { %7142 = vst [vmem:[#allocation179_spill] sm:$0xff] %v5933_v41  ;;  %7143 = vst [vmem:[#allocation180_spill] sm:$0xff] %v5935_v59 }
 0x94c   :  { %v5937_v18 = vpop.permute.xlu0 %2720  ;;  %v5939_v47 = vpop.permute.xlu1 %2705 }
 0x94d   :  { %7144 = vst [vmem:[#allocation181_spill] sm:$0xff] %v5937_v18  ;;  %7145 = vst [vmem:[#allocation182_spill] sm:$0xff] %v5939_v47 }
 0x950   :  { %v5941_v13 = vpop.permute.xlu0 %2730  ;;  %v5943_v44 = vpop.permute.xlu1 %2715 }
 0x951   :  { %7146 = vst [vmem:[#allocation183_spill] sm:$0xff] %v5941_v13  ;;  %7147 = vst [vmem:[#allocation184_spill] sm:$0xff] %v5943_v44 }
 0x954   :  { %v5945_v1 = vpop.permute.xlu0 %2740  ;;  %v5947_v39 = vpop.permute.xlu1 %2725 }
 0x955   :  { %7148 = vst [vmem:[#allocation185_spill] sm:$0xff] %v5945_v1  ;;  %7149 = vst [vmem:[#allocation186_spill] sm:$0xff] %v5947_v39 }
 0x958   :  { %v4804_v10 = vpop.permute.xlu0 %4803  ;;  %v5949_v14 = vpop.permute.xlu1 %2735 }
 0x959   :  { %7150 = vst [vmem:[#allocation187_spill] sm:$0xff] %v5949_v14  ;;  %v4806_v31 = vunpack.i.h.bf16 %v4804_v10  ;;  %v4805_v53 = vunpack.i.l.bf16 %v4804_v10 }
 0x95b   :  { %v2839_v33 = vmul.f32 %v4806_v31, %v5179_v12  ;;  %v2838_v63 = vmul.f32 %v4805_v53, %v5177_v11 }
 0x95c   :  { %v5953_v61 = vpop.permute.xlu1 %2745  ;;  %v4814_v28 = vpop.permute.xlu0 %4813 }
 0x95d   :  { %7151 = vst [vmem:[#allocation188_spill] sm:$0xff] %v5953_v61  ;;  %2854 = vperm.xlu0 %4832, %v2838_v63   ;;  %2859 = vperm.xlu1 %4833, %v2839_v33   ;;  %v4816_v59 = vunpack.i.h.bf16 %v4814_v28  ;;  %v4815_v56 = vunpack.i.l.bf16 %v4814_v28 }
 0x95f   :  { %v2843_v10 = vmul.f32 %v4816_v59, %v5190_v19  ;;  %v2842_v31 = vmul.f32 %v4815_v56, %v5193_v22 }
 0x960   :  { %v4809_v13 = vpop.permute.xlu1 %4808  ;;  %v4824_v33 = vpop.permute.xlu0 %4823 }
 0x961   :  { %v4811_v18 = vunpack.i.h.bf16 %v4809_v13  ;;  %v4810_v41 = vunpack.i.l.bf16 %v4809_v13  ;;  %v4826_v28 = vunpack.i.h.bf16 %v4824_v33 }
 0x963   :  { %v2841_v39 = vmul.f32 %v4811_v18, %v5170_v7  ;;  %v2840_v14 = vmul.f32 %v4810_v41, %v5168_v6  ;;  %v4825_v18 = vunpack.i.l.bf16 %v4824_v33  ;;  %v2847_v41 = vmul.f32 %v4826_v28, %v5214_v35 }
 0x964   :  { %v4819_v1 = vpop.permute.xlu1 %4818 }
 0x965   :  { %2869 = vperm.xlu0 %4832, %v2841_v39   ;;  %2864 = vperm.xlu1 %4833, %v2840_v14   ;;  %v4821_v53 = vunpack.i.h.bf16 %v4819_v1  ;;  %v4820_v63 = vunpack.i.l.bf16 %v4819_v1  ;;  %v2846_v59 = vmul.f32 %v4825_v18, %v5217_v38 }
 0x967   :  { %v2845_v61 = vmul.f32 %v4821_v53, %v5202_v27  ;;  %v2844_v13 = vmul.f32 %v4820_v63, %v5205_v30 }
 0x968   :  { %v4829_v44 = vpop.permute.xlu1 %4828 }
 0x969   :  { %2879 = vperm.xlu0 %4832, %v2843_v10   ;;  %2874 = vperm.xlu1 %4833, %v2842_v31   ;;  %v4831_v56 = vunpack.i.h.bf16 %v4829_v44  ;;  %v4830_v39 = vunpack.i.l.bf16 %v4829_v44  ;;  %v5118_v10 = vmov 18  }
 0x96b   :  { %v2849_v1 = vmul.f32 %v4831_v56, %v5226_v43  ;;  %v2848_v14 = vmul.f32 %v4830_v39, %v5229_v46 }
 0x96d   :  { %2889 = vperm.xlu0 %4832, %v2845_v61   ;;  %2884 = vperm.xlu1 %4833, %v2844_v13  }
 0x971   :  { %2899 = vperm.xlu0 %4832, %v2847_v41   ;;  %2894 = vperm.xlu1 %4833, %v2846_v59  }
 0x975   :  { %2909 = vperm.xlu0 %4832, %v2849_v1   ;;  %2904 = vperm.xlu1 %4833, %v2848_v14  }
 0x979   :  { %4835 = vrot.lane.b32.xlu1 %v5235_v50, %s5117_s24  ;;  %4840 = vrot.lane.b32.xlu0 %v5233_v49, %s5117_s24 }
 0x97a   :  { %4865 = vset.pattern.permute.xlu0 %v5118_v10  ;;  %4864 = vset.pattern.permute.xlu1 %v5118_v10 }
 0x97d   :  { %4845 = vrot.lane.b32.xlu1 %v5241_v52, %s5117_s24  ;;  %4850 = vrot.lane.b32.xlu0 %v5238_v51, %s5117_s24 }
 0x981   :  { %4855 = vrot.lane.b32.xlu1 %v5247_v55, %s5117_s24  ;;  %4860 = vrot.lane.b32.xlu0 %v5244_v54, %s5117_s24 }
 0x9dc   :  { %v5971_v44 = vpop.permute.xlu0 %2854  ;;  %v5973_v61 = vpop.permute.xlu1 %2859 }
 0x9dd   :  { %7152 = vst [vmem:[#allocation189_spill] sm:$0xff] %v5971_v44  ;;  %7153 = vst [vmem:[#allocation190_spill] sm:$0xff] %v5973_v61 }
 0x9e4   :  { %v5975_v31 = vpop.permute.xlu0 %2869  ;;  %v5977_v53 = vpop.permute.xlu1 %2864 }
 0x9e5   :  { %7154 = vst [vmem:[#allocation191_spill] sm:$0xff] %v5975_v31  ;;  %7155 = vst [vmem:[#allocation192_spill] sm:$0xff] %v5977_v53 }
 0x9e8   :  { %v5979_v63 = vpop.permute.xlu0 %2879  ;;  %v5981_v33 = vpop.permute.xlu1 %2874 }
 0x9e9   :  { %7156 = vst [vmem:[#allocation193_spill] sm:$0xff] %v5979_v63  ;;  %7157 = vst [vmem:[#allocation194_spill] sm:$0xff] %v5981_v33 }
 0x9ec   :  { %v5983_v13 = vpop.permute.xlu0 %2889  ;;  %v5985_v28 = vpop.permute.xlu1 %2884 }
 0x9ed   :  { %7158 = vst [vmem:[#allocation195_spill] sm:$0xff] %v5983_v13  ;;  %7159 = vst [vmem:[#allocation196_spill] sm:$0xff] %v5985_v28 }
 0x9f0   :  { %v5987_v18 = vpop.permute.xlu0 %2899  ;;  %v5989_v41 = vpop.permute.xlu1 %2894 }
 0x9f1   :  { %7160 = vst [vmem:[#allocation197_spill] sm:$0xff] %v5987_v18  ;;  %7161 = vst [vmem:[#allocation198_spill] sm:$0xff] %v5989_v41 }
 0x9f4   :  { %v5991_v59 = vpop.permute.xlu0 %2909  ;;  %v5993_v56 = vpop.permute.xlu1 %2904 }
 0x9f5   :  { %7162 = vst [vmem:[#allocation199_spill] sm:$0xff] %v5991_v59  ;;  %7163 = vst [vmem:[#allocation200_spill] sm:$0xff] %v5993_v56 }
 0x9f8   :  { %v4836_v39 = vpop.permute.xlu1 %4835  ;;  %v4841_v1 = vpop.permute.xlu0 %4840 }
 0x9f9   :  { %v4838_v14 = vunpack.i.h.bf16 %v4836_v39  ;;  %v4837_v10 = vunpack.i.l.bf16 %v4836_v39  ;;  %v4842_v53 = vunpack.i.l.bf16 %v4841_v1  ;;  %v4843_v59 = vunpack.i.h.bf16 %v4841_v1 }
 0x9fb   :  { %v3003_v61 = vmul.f32 %v4838_v14, %v5179_v12  ;;  %v3002_v33 = vmul.f32 %v4837_v10, %v5177_v11  ;;  %v3004_v28 = vmul.f32 %v4842_v53, %v5168_v6  ;;  %v3005_v10 = vmul.f32 %v4843_v59, %v5170_v7 }
 0x9fc   :  { %v4846_v13 = vpop.permute.xlu1 %4845  ;;  %v4851_v63 = vpop.permute.xlu0 %4850 }
 0x9fd   :  { %v4847_v18 = vunpack.i.l.bf16 %v4846_v13  ;;  %3023 = vperm.xlu0 %4865, %v3003_v61   ;;  %3018 = vperm.xlu1 %4864, %v3002_v33   ;;  %v4852_v41 = vunpack.i.l.bf16 %v4851_v63  ;;  %v4848_v44 = vunpack.i.h.bf16 %v4846_v13  ;;  %v4853_v33 = vunpack.i.h.bf16 %v4851_v63 }
 0x9ff   :  { %v3006_v56 = vmul.f32 %v4847_v18, %v5193_v22  ;;  %v3008_v47 = vmul.f32 %v4852_v41, %v5205_v30  ;;  %v3007_v53 = vmul.f32 %v4848_v44, %v5190_v19  ;;  %v3009_v41 = vmul.f32 %v4853_v33, %v5202_v27 }
 0xa00   :  { %v4856_v31 = vpop.permute.xlu1 %4855  ;;  %v4861_v14 = vpop.permute.xlu0 %4860  ;;  %v5120_v44 = vmov 19  }
 0xa01   :  { %3038 = vperm.xlu0 %4865, %v3006_v56   ;;  %3028 = vperm.xlu1 %4864, %v3004_v28   ;;  %v4857_v39 = vunpack.i.l.bf16 %v4856_v31  ;;  %v4862_v61 = vunpack.i.l.bf16 %v4861_v14  ;;  %v4858_v28 = vunpack.i.h.bf16 %v4856_v31  ;;  %v4863_v13 = vunpack.i.h.bf16 %v4861_v14 }
 0xa03   :  { %v3010_v36 = vmul.f32 %v4857_v39, %v5217_v38  ;;  %v3012_v18 = vmul.f32 %v4862_v61, %v5229_v46  ;;  %v3011_v59 = vmul.f32 %v4858_v28, %v5214_v35 }
 0xa05   :  { %3048 = vperm.xlu0 %4865, %v3008_v47   ;;  %3033 = vperm.xlu1 %4864, %v3005_v10   ;;  %v3013_v47 = vmul.f32 %v4863_v13, %v5226_v43 }
 0xa09   :  { %3058 = vperm.xlu0 %4865, %v3010_v36   ;;  %3043 = vperm.xlu1 %4864, %v3007_v53  }
 0xa0d   :  { %3068 = vperm.xlu0 %4865, %v3012_v18   ;;  %3053 = vperm.xlu1 %4864, %v3009_v41  }
 0xa11   :  { %3063 = vperm.xlu1 %4864, %v3011_v59   ;;  %4867 = vrot.lane.b32.xlu0 %v5235_v50, %s5119_s25 }
 0xa12   :  { %4896 = vset.pattern.permute.xlu0 %v5120_v44 }
 0xa15   :  { %3073 = vperm.xlu1 %4864, %v3013_v47   ;;  %4877 = vrot.lane.b32.xlu0 %v5241_v52, %s5119_s25 }
 0xa19   :  { %4872 = vrot.lane.b32.xlu1 %v5233_v49, %s5119_s25  ;;  %4887 = vrot.lane.b32.xlu0 %v5247_v55, %s5119_s25 }
 0xa1a   :  { %4897 = vset.pattern.permute.xlu1 %v5120_v44 }
 0xa1d   :  { %4882 = vrot.lane.b32.xlu1 %v5238_v51, %s5119_s25 }
 0xa21   :  { %4892 = vrot.lane.b32.xlu1 %v5244_v54, %s5119_s25 }
 0xa7c   :  { %v6013_v36 = vpop.permute.xlu0 %3023  ;;  %v6015_v31 = vpop.permute.xlu1 %3018 }
 0xa7d   :  { %7164 = vst [vmem:[#allocation201_spill] sm:$0xff] %v6013_v36 }
 0xa80   :  { %v6017_v63 = vpop.permute.xlu0 %3038  ;;  %v6019_v56 = vpop.permute.xlu1 %3028 }
 0xa81   :  { %7165 = vst [vmem:[#allocation202_spill] sm:$0xff] %v6017_v63  ;;  %7166 = vst [vmem:[#allocation203_spill] sm:$0xff] %v6019_v56 }
 0xa84   :  { %v6021_v1 = vpop.permute.xlu0 %3048  ;;  %v6023_v39 = vpop.permute.xlu1 %3033 }
 0xa85   :  { %7167 = vst [vmem:[#allocation204_spill] sm:$0xff] %v6021_v1  ;;  %7168 = vst [vmem:[#allocation205_spill] sm:$0xff] %v6023_v39 }
 0xa88   :  { %v6025_v14 = vpop.permute.xlu0 %3058  ;;  %v6027_v10 = vpop.permute.xlu1 %3043 }
 0xa89   :  { %7169 = vst [vmem:[#allocation206_spill] sm:$0xff] %v6025_v14  ;;  %7170 = vst [vmem:[#allocation207_spill] sm:$0xff] %v6027_v10 }
 0xa8c   :  { %v6029_v61 = vpop.permute.xlu0 %3068  ;;  %v6031_v53 = vpop.permute.xlu1 %3053 }
 0xa8d   :  { %7171 = vst [vmem:[#allocation208_spill] sm:$0xff] %v6029_v61  ;;  %7172 = vst [vmem:[#allocation209_spill] sm:$0xff] %v6031_v53 }
 0xa90   :  { %v4868_v33 = vpop.permute.xlu0 %4867  ;;  %v6033_v18 = vpop.permute.xlu1 %3063 }
 0xa91   :  { %7173 = vst [vmem:[#allocation210_spill] sm:$0xff] %v6033_v18  ;;  %v4870_v41 = vunpack.i.h.bf16 %v4868_v33  ;;  %v4869_v28 = vunpack.i.l.bf16 %v4868_v33 }
 0xa93   :  { %v3167_v59 = vmul.f32 %v4870_v41, %v5179_v12  ;;  %v3166_v13 = vmul.f32 %v4869_v28, %v5177_v11 }
 0xa94   :  { %v6037_v47 = vpop.permute.xlu1 %3073  ;;  %v4878_v44 = vpop.permute.xlu0 %4877 }
 0xa95   :  { %7174 = vst [vmem:[#allocation211_spill] sm:$0xff] %v6037_v47  ;;  %3182 = vperm.xlu0 %4896, %v3166_v13   ;;  %3187 = vperm.xlu1 %4897, %v3167_v59   ;;  %v4880_v56 = vunpack.i.h.bf16 %v4878_v44  ;;  %v4879_v36 = vunpack.i.l.bf16 %v4878_v44 }
 0xa97   :  { %v3171_v33 = vmul.f32 %v4880_v56, %v5190_v19  ;;  %v3170_v41 = vmul.f32 %v4879_v36, %v5193_v22 }
 0xa98   :  { %v4873_v14 = vpop.permute.xlu1 %4872  ;;  %v4888_v59 = vpop.permute.xlu0 %4887 }
 0xa99   :  { %v4875_v1 = vunpack.i.h.bf16 %v4873_v14  ;;  %v4874_v63 = vunpack.i.l.bf16 %v4873_v14  ;;  %v4890_v44 = vunpack.i.h.bf16 %v4888_v59 }
 0xa9b   :  { %v3169_v53 = vmul.f32 %v4875_v1, %v5170_v7  ;;  %v3168_v18 = vmul.f32 %v4874_v63, %v5168_v6  ;;  %v4889_v1 = vunpack.i.l.bf16 %v4888_v59  ;;  %v3175_v63 = vmul.f32 %v4890_v44, %v5214_v35 }
 0xa9c   :  { %v4883_v61 = vpop.permute.xlu1 %4882 }
 0xa9d   :  { %3197 = vperm.xlu0 %4896, %v3169_v53   ;;  %3192 = vperm.xlu1 %4897, %v3168_v18   ;;  %v4885_v28 = vunpack.i.h.bf16 %v4883_v61  ;;  %v4884_v13 = vunpack.i.l.bf16 %v4883_v61  ;;  %v3174_v56 = vmul.f32 %v4889_v1, %v5217_v38 }
 0xa9f   :  { %v3173_v47 = vmul.f32 %v4885_v28, %v5202_v27  ;;  %v3172_v14 = vmul.f32 %v4884_v13, %v5205_v30 }
 0xaa0   :  { %v4893_v10 = vpop.permute.xlu1 %4892 }
 0xaa1   :  { %3207 = vperm.xlu0 %4896, %v3171_v33   ;;  %3202 = vperm.xlu1 %4897, %v3170_v41   ;;  %v4895_v36 = vunpack.i.h.bf16 %v4893_v10  ;;  %v4894_v53 = vunpack.i.l.bf16 %v4893_v10  ;;  %v5122_v33 = vmov 20  }
 0xaa3   :  { %v3177_v61 = vmul.f32 %v4895_v36, %v5226_v43  ;;  %v3176_v18 = vmul.f32 %v4894_v53, %v5229_v46 }
 0xaa5   :  { %3217 = vperm.xlu0 %4896, %v3173_v47   ;;  %3212 = vperm.xlu1 %4897, %v3172_v14  }
 0xaa9   :  { %3227 = vperm.xlu0 %4896, %v3175_v63   ;;  %3222 = vperm.xlu1 %4897, %v3174_v56  }
 0xaad   :  { %3237 = vperm.xlu0 %4896, %v3177_v61   ;;  %3232 = vperm.xlu1 %4897, %v3176_v18  }
 0xab1   :  { %4899 = vrot.lane.b32.xlu1 %v5235_v50, %s5121_s26  ;;  %4904 = vrot.lane.b32.xlu0 %v5233_v49, %s5121_s26 }
 0xab2   :  { %4929 = vset.pattern.permute.xlu0 %v5122_v33  ;;  %4928 = vset.pattern.permute.xlu1 %v5122_v33 }
 0xab5   :  { %4909 = vrot.lane.b32.xlu1 %v5241_v52, %s5121_s26  ;;  %4914 = vrot.lane.b32.xlu0 %v5238_v51, %s5121_s26 }
 0xab9   :  { %4919 = vrot.lane.b32.xlu1 %v5247_v55, %s5121_s26  ;;  %4924 = vrot.lane.b32.xlu0 %v5244_v54, %s5121_s26 }
 0xb14   :  { %v6055_v10 = vpop.permute.xlu0 %3182  ;;  %v6057_v47 = vpop.permute.xlu1 %3187 }
 0xb15   :  { %7175 = vst [vmem:[#allocation212_spill] sm:$0xff] %v6057_v47 }
 0xb1c   :  { %v6059_v41 = vpop.permute.xlu0 %3197  ;;  %v6061_v28 = vpop.permute.xlu1 %3192 }
 0xb1d   :  { %7176 = vst [vmem:[#allocation213_spill] sm:$0xff] %v6059_v41  ;;  %7177 = vst [vmem:[#allocation214_spill] sm:$0xff] %v6061_v28 }
 0xb20   :  { %v6063_v13 = vpop.permute.xlu0 %3207  ;;  %v6065_v59 = vpop.permute.xlu1 %3202 }
 0xb21   :  { %7178 = vst [vmem:[#allocation215_spill] sm:$0xff] %v6063_v13  ;;  %7179 = vst [vmem:[#allocation216_spill] sm:$0xff] %v6065_v59 }
 0xb24   :  { %v6067_v14 = vpop.permute.xlu0 %3217  ;;  %v6069_v44 = vpop.permute.xlu1 %3212 }
 0xb25   :  { %7180 = vst [vmem:[#allocation217_spill] sm:$0xff] %v6067_v14  ;;  %7181 = vst [vmem:[#allocation218_spill] sm:$0xff] %v6069_v44 }
 0xb28   :  { %v6071_v1 = vpop.permute.xlu0 %3227  ;;  %v6073_v63 = vpop.permute.xlu1 %3222 }
 0xb29   :  { %7182 = vst [vmem:[#allocation219_spill] sm:$0xff] %v6071_v1  ;;  %7183 = vst [vmem:[#allocation220_spill] sm:$0xff] %v6073_v63 }
 0xb2c   :  { %v6075_v56 = vpop.permute.xlu0 %3237  ;;  %v6077_v36 = vpop.permute.xlu1 %3232 }
 0xb2d   :  { %7184 = vst [vmem:[#allocation221_spill] sm:$0xff] %v6075_v56  ;;  %7185 = vst [vmem:[#allocation222_spill] sm:$0xff] %v6077_v36 }
 0xb30   :  { %v4900_v53 = vpop.permute.xlu1 %4899  ;;  %v4905_v61 = vpop.permute.xlu0 %4904 }
 0xb31   :  { %v4902_v18 = vunpack.i.h.bf16 %v4900_v53  ;;  %v4901_v33 = vunpack.i.l.bf16 %v4900_v53  ;;  %v4906_v28 = vunpack.i.l.bf16 %v4905_v61  ;;  %v4907_v56 = vunpack.i.h.bf16 %v4905_v61 }
 0xb33   :  { %v3331_v47 = vmul.f32 %v4902_v18, %v5179_v12  ;;  %v3330_v59 = vmul.f32 %v4901_v33, %v5177_v11  ;;  %v3332_v44 = vmul.f32 %v4906_v28, %v5168_v6  ;;  %v3333_v33 = vmul.f32 %v4907_v56, %v5170_v7 }
 0xb34   :  { %v4910_v14 = vpop.permute.xlu1 %4909  ;;  %v4915_v13 = vpop.permute.xlu0 %4914 }
 0xb35   :  { %v4911_v1 = vunpack.i.l.bf16 %v4910_v14  ;;  %3351 = vperm.xlu0 %4929, %v3331_v47   ;;  %3346 = vperm.xlu1 %4928, %v3330_v59   ;;  %v4916_v63 = vunpack.i.l.bf16 %v4915_v13  ;;  %v4912_v11 = vunpack.i.h.bf16 %v4910_v14  ;;  %v4917_v59 = vunpack.i.h.bf16 %v4915_v13 }
 0xb37   :  { %v3334_v36 = vmul.f32 %v4911_v1, %v5193_v22  ;;  %v3336_v39 = vmul.f32 %v4916_v63, %v5205_v30  ;;  %v3335_v28 = vmul.f32 %v4912_v11, %v5190_v19  ;;  %v3337_v63 = vmul.f32 %v4917_v59, %v5202_v27 }
 0xb38   :  { %v4920_v41 = vpop.permute.xlu1 %4919  ;;  %v4925_v18 = vpop.permute.xlu0 %4924  ;;  %v5124_v11 = vmov 21  }
 0xb39   :  { %3366 = vperm.xlu0 %4929, %v3334_v36   ;;  %3356 = vperm.xlu1 %4928, %v3332_v44   ;;  %v4921_v53 = vunpack.i.l.bf16 %v4920_v41  ;;  %v4926_v47 = vunpack.i.l.bf16 %v4925_v18  ;;  %v4922_v44 = vunpack.i.h.bf16 %v4920_v41  ;;  %v4927_v14 = vunpack.i.h.bf16 %v4925_v18  ;;  %v6105_v41 = vld [vmem:[%s6940_s2 + $0x1] ss:$0 sm:$0xff] }
 0xb3a   :  { %v294_v36 = vmul.f32 %v6105_v41, %v5331_v40  ;;  %v299_v18 = vmul.f32 %v6105_v41, %v5339_v45 }
 0xb3b   :  { %v3338_v12 = vmul.f32 %v4921_v53, %v5217_v38  ;;  %v3340_v1 = vmul.f32 %v4926_v47, %v5229_v46  ;;  %v3339_v56 = vmul.f32 %v4922_v44, %v5214_v35  ;;  %v297_v53 = vmul.f32 %v6105_v41, %v5335_v42  ;;  %v6122_v47 = vld [vmem:[%s6940_s2 + $0x2] ss:$0 sm:$0xff] }
 0xb3c   :  { %v303_v42 = vmul.f32 %v6105_v41, %v5347_v4  ;;  %v458_v4 = vmul.f32 %v6122_v47, %v5353_v9  ;;  %v468_v44 = vmul.f32 %v6122_v47, %v5371_v21 }
 0xb3d   :  { %3376 = vperm.xlu0 %4929, %v3336_v39   ;;  %3361 = vperm.xlu1 %4928, %v3333_v33   ;;  %v3341_v39 = vmul.f32 %v4927_v14, %v5226_v43  ;;  %v301_v33 = vmul.f32 %v6105_v41, %v5343_v48 }
 0xb41   :  { %3386 = vperm.xlu0 %4929, %v3338_v12   ;;  %3371 = vperm.xlu1 %4928, %v3335_v28   ;;  %v6100_v12 = vld [vmem:[%s6940_s2] ss:$0 sm:$0xff]  ;;  %v304_v28 = vmul.f32 %v6105_v41, %v5349_v5 }
 0xb42   :  { %v142_v13 = vmul.f32 %v6100_v12, %v5265_v57  ;;  %v145_v61 = vmul.f32 %v6100_v12, %v5267_v58  ;;  %v147_v57 = vmul.f32 %v6100_v12, %v5271_v60  ;;  %v149_v58 = vmul.f32 %v6100_v12, %v5275_v62  ;;  %v6143_v62 = vld [vmem:[%s6940_s2 + $0x3] ss:$0 sm:$0xff] }
 0xb43   :  { %v151_v40 = vmul.f32 %v6100_v12, %v5279_v0  ;;  %v153_v45 = vmul.f32 %v6100_v12, %v5283_v2  ;;  %v152_v48 = vmul.f32 %v6100_v12, %v5285_v3  ;;  %v305_v60 = vmul.f32 %v6105_v41, %v5351_v8 }
 0xb44   :  { %v318_v0 = vadd.f32 %v294_v36, %v142_v13  ;;  %v461_v2 = vmul.f32 %v6122_v47, %v5361_v15  ;;  %v463_v3 = vmul.f32 %v6122_v47, %v5365_v17  ;;  %v321_v59 = vadd.f32 %v297_v53, %v145_v61 }
 0xb45   :  { %3396 = vperm.xlu0 %4929, %v3340_v1   ;;  %3381 = vperm.xlu1 %4928, %v3337_v63   ;;  %v323_v5 = vadd.f32 %v299_v18, %v147_v57  ;;  %v325_v1 = vadd.f32 %v301_v33, %v149_v58  ;;  %v465_v8 = vmul.f32 %v6122_v47, %v5369_v20  ;;  %v7186_v58 = vld [vmem:[#allocation33_spill] sm:$0xff] }
 0xb46   :  { %v327_v63 = vadd.f32 %v303_v42, %v151_v40  ;;  %v622_v9 = vmul.f32 %v6143_v62, %v5375_v24  ;;  %v328_v15 = vadd.f32 %v304_v28, %v152_v48  ;;  %v329_v14 = vadd.f32 %v305_v60, %v153_v45  ;;  %v7187_v42 = vld [vmem:[#allocation38_spill] sm:$0xff]  ;;  %v7188_v45 = vld [vmem:[#allocation40_spill] sm:$0xff]  ;;  %v7189_v28 = vld [vmem:[#allocation41_spill] sm:$0xff] }
 0xb47   :  { %v469_v17 = vmul.f32 %v6122_v47, %v5377_v25  ;;  %v485_v20 = vadd.f32 %v461_v2, %v321_v59  ;;  %v487_v13 = vadd.f32 %v463_v3, %v323_v5  ;;  %v627_v21 = vmul.f32 %v6143_v62, %v5383_v29  ;;  %v7190_v60 = vld [vmem:[#allocation42_spill] sm:$0xff]  ;;  %v7191_v59 = vld [vmem:[#allocation43_spill] sm:$0xff] }
 0xb48   :  { %v489_v24 = vadd.f32 %v465_v8, %v325_v1  ;;  %v629_v36 = vmul.f32 %v6143_v62, %v5387_v32  ;;  %v631_v25 = vmul.f32 %v6143_v62, %v5391_v34  ;;  %v492_v61 = vadd.f32 %v468_v44, %v328_v15  ;;  %v6185_v34 = vld [vmem:[%s6940_s2 + $0x5] ss:$0 sm:$0xff]  ;;  %v7192_v8 = vld [vmem:[#allocation44_spill] sm:$0xff] }
 0xb49   :  { %3391 = vperm.xlu1 %4928, %v3339_v56   ;;  %4931 = vrot.lane.b32.xlu0 %v5235_v50, %s5123_s27  ;;  %v467_v56 = vmul.f32 %v6122_v47, %v5373_v23  ;;  %v6168_v23 = vld [vmem:[%s6940_s2 + $0x4] ss:$0 sm:$0xff]  ;;  %v632_v29 = vmul.f32 %v6143_v62, %v5399_v16  ;;  %v493_v33 = vadd.f32 %v469_v17, %v329_v14  ;;  %v6204_v14 = vld [vmem:[%s6940_s2 + $0x6] ss:$0 sm:$0xff] }
 0xb4a   :  { %4960 = vset.pattern.permute.xlu0 %v5124_v11  ;;  %v786_v40 = vmul.f32 %v6168_v23, %v7186_v58  ;;  %v789_v32 = vmul.f32 %v6168_v23, %v7187_v42  ;;  %v791_v48 = vmul.f32 %v6168_v23, %v7188_v45  ;;  %v796_v16 = vmul.f32 %v6168_v23, %v7189_v28  ;;  %v7193_v44 = vld [vmem:[#allocation45_spill] sm:$0xff]  ;;  %v7199_v58 = vld [vmem:[#allocation56_spill] sm:$0xff]  ;;  %v7201_v28 = vld [vmem:[#allocation62_spill] sm:$0xff] }
 0xb4b   :  { %v491_v53 = vadd.f32 %v467_v56, %v327_v63  ;;  %v795_v5 = vmul.f32 %v6168_v23, %v7191_v59  ;;  %v656_v1 = vadd.f32 %v632_v29, %v492_v61  ;;  %v797_v63 = vmul.f32 %v6168_v23, %v7192_v8  ;;  %v7198_v29 = vld [vmem:[#allocation55_spill] sm:$0xff] }
 0xb4c   :  { %v950_v56 = vmul.f32 %v6185_v34, %v7193_v44  ;;  %v7205_v8 = vld [vmem:[#allocation67_spill] sm:$0xff]  ;;  %v7206_v44 = vld [vmem:[#allocation68_spill] sm:$0xff] }
 0xb4d   :  { %3401 = vperm.xlu1 %4928, %v3341_v39   ;;  %4941 = vrot.lane.b32.xlu0 %v5241_v52, %s5123_s27  ;;  %v625_v39 = vmul.f32 %v6143_v62, %v5379_v26  ;;  %v633_v26 = vmul.f32 %v6143_v62, %v5395_v37  ;;  %v651_v37 = vadd.f32 %v627_v21, %v487_v13  ;;  %v7196_v13 = vld [vmem:[#allocation51_spill] sm:$0xff] }
 0xb4e   :  { %v655_v2 = vadd.f32 %v631_v25, %v491_v53  ;;  %v957_v21 = vmul.f32 %v6185_v34, %v7196_v13  ;;  %v7208_v13 = vld [vmem:[#allocation71_spill] sm:$0xff] }
 0xb4f   :  { %v649_v57 = vadd.f32 %v625_v39, %v485_v20  ;;  %v657_v3 = vadd.f32 %v633_v26, %v493_v33  ;;  %v7197_v26 = vld [vmem:[#allocation53_spill] sm:$0xff]  ;;  %v961_v33 = vmul.f32 %v6185_v34, %v7198_v29 }
 0xb50   :  { %v959_v61 = vmul.f32 %v6185_v34, %v7197_v26  ;;  %v819_v53 = vadd.f32 %v795_v5, %v655_v2  ;;  %v7203_v2 = vld [vmem:[#allocation65_spill] sm:$0xff]  ;;  %v7210_v26 = vld [vmem:[#allocation75_spill] sm:$0xff] }
 0xb51   :  { %4936 = vrot.lane.b32.xlu1 %v5233_v49, %s5123_s27  ;;  %4951 = vrot.lane.b32.xlu0 %v5247_v55, %s5123_s27  ;;  %v813_v39 = vadd.f32 %v789_v32, %v649_v57  ;;  %v7200_v57 = vld [vmem:[#allocation58_spill] sm:$0xff]  ;;  %v821_v42 = vadd.f32 %v797_v63, %v657_v3  ;;  %v1124_v59 = vmul.f32 %v6204_v14, %v7203_v2 }
 0xb52   :  { %4961 = vset.pattern.permute.xlu1 %v5124_v11  ;;  %v482_v11 = vadd.f32 %v458_v4, %v318_v0  ;;  %v793_v0 = vmul.f32 %v6168_v23, %v7190_v60  ;;  %v653_v4 = vadd.f32 %v629_v36, %v489_v24  ;;  %v815_v24 = vadd.f32 %v791_v48, %v651_v37  ;;  %v6223_v48 = vld [vmem:[%s6940_s2 + $0x7] ss:$0 sm:$0xff]  ;;  %v7204_v3 = vld [vmem:[#allocation66_spill] sm:$0xff] }
 0xb53   :  { %v820_v36 = vadd.f32 %v796_v16, %v656_v1  ;;  %v1117_v37 = vmul.f32 %v6204_v14, %v7201_v28  ;;  %v983_v5 = vadd.f32 %v959_v61, %v819_v53  ;;  %v1121_v1 = vmul.f32 %v6204_v14, %v7204_v3  ;;  %v6246_v53 = vld [vmem:[%s6940_s2 + $0x8] ss:$0 sm:$0xff] }
 0xb54   :  { %v646_v18 = vadd.f32 %v622_v9, %v482_v11  ;;  %v7194_v9 = vld [vmem:[#allocation47_spill] sm:$0xff]  ;;  %v7195_v11 = vld [vmem:[#allocation49_spill] sm:$0xff]  ;;  %v817_v25 = vadd.f32 %v793_v0, %v653_v4  ;;  %v7202_v0 = vld [vmem:[#allocation64_spill] sm:$0xff]  ;;  %v1123_v63 = vmul.f32 %v6204_v14, %v7205_v8  ;;  %v1285_v61 = vmul.f32 %v6223_v48, %v7210_v26 }
 0xb55   :  { %4946 = vrot.lane.b32.xlu1 %v5238_v51, %s5123_s27  ;;  %v953_v15 = vmul.f32 %v6185_v34, %v7194_v9  ;;  %v955_v20 = vmul.f32 %v6185_v34, %v7195_v11  ;;  %v1119_v4 = vmul.f32 %v6204_v14, %v7202_v0  ;;  %v985_v9 = vadd.f32 %v961_v33, %v821_v42  ;;  %v7211_v33 = vld [vmem:[#allocation77_spill] sm:$0xff]  ;;  %v7214_v0 = vld [vmem:[#allocation82_spill] sm:$0xff] }
 0xb56   :  { %v810_v17 = vadd.f32 %v786_v40, %v646_v18  ;;  %v960_v18 = vmul.f32 %v6185_v34, %v7199_v58  ;;  %v1114_v40 = vmul.f32 %v6204_v14, %v7200_v57  ;;  %v981_v60 = vadd.f32 %v957_v21, %v817_v25  ;;  %v7215_v3 = vld [vmem:[#allocation86_spill] sm:$0xff] }
 0xb57   :  { %v977_v45 = vadd.f32 %v953_v15, %v813_v39  ;;  %v979_v16 = vadd.f32 %v955_v20, %v815_v24  ;;  %v7207_v39 = vld [vmem:[#allocation69_spill] sm:$0xff]  ;;  %v1281_v21 = vmul.f32 %v6223_v48, %v7208_v13  ;;  %v1287_v58 = vmul.f32 %v6223_v48, %v7211_v33  ;;  %v6263_v8 = vld [vmem:[%s6940_s2 + $0x9] ss:$0 sm:$0xff]  ;;  %v6274_v13 = vld [vmem:[%s6940_s2 + $0xa] ss:$0 sm:$0xff] }
 0xb58   :  { %v974_v32 = vadd.f32 %v950_v56, %v810_v17  ;;  %v1125_v56 = vmul.f32 %v6204_v14, %v7206_v44  ;;  %v984_v15 = vadd.f32 %v960_v18, %v820_v36  ;;  %v1278_v11 = vmul.f32 %v6223_v48, %v7207_v39  ;;  %v7209_v24 = vld [vmem:[#allocation73_spill] sm:$0xff]  ;;  %v7212_v18 = vld [vmem:[#allocation79_spill] sm:$0xff]  ;;  %7217 = vst [vmem:[#allocation33_spill] sm:$0xff] %v6263_v8 }
 0xb59   :  { %4956 = vrot.lane.b32.xlu1 %v5244_v54, %s5123_s27  ;;  %v1141_v20 = vadd.f32 %v1117_v37, %v977_v45  ;;  %v1283_v25 = vmul.f32 %v6223_v48, %v7209_v24  ;;  %v1143_v36 = vadd.f32 %v1119_v4, %v979_v16  ;;  %v1289_v57 = vmul.f32 %v6223_v48, %v7212_v18  ;;  %v7213_v45 = vld [vmem:[#allocation80_spill] sm:$0xff]  ;;  %v7220_v39 = vld [vmem:[#allocation91_spill] sm:$0xff] }
 0xb5a   :  { %v1138_v17 = vadd.f32 %v1114_v40, %v974_v32  ;;  %v1148_v29 = vadd.f32 %v1124_v59, %v984_v15  ;;  %v1145_v40 = vadd.f32 %v1121_v1, %v981_v60  ;;  %v1147_v42 = vadd.f32 %v1123_v63, %v983_v5  ;;  %v7216_v4 = vld [vmem:[#allocation88_spill] sm:$0xff]  ;;  %v7218_v63 = vld [vmem:[#allocation89_spill] sm:$0xff]  ;;  %v7219_v15 = vld [vmem:[#allocation90_spill] sm:$0xff]  ;;  %7221 = vst [vmem:[#allocation38_spill] sm:$0xff] %v6274_v13 }
 0xb5b   :  { %v1149_v32 = vadd.f32 %v1125_v56, %v985_v9  ;;  %v1288_v28 = vmul.f32 %v6223_v48, %v7213_v45  ;;  %v1442_v2 = vmul.f32 %v6246_v53, %v7214_v0  ;;  %v1445_v16 = vmul.f32 %v6246_v53, %v7215_v3  ;;  %v7229_v3 = vld [vmem:[#allocation106_spill] sm:$0xff] }
 0xb5c   :  { %v1302_v37 = vadd.f32 %v1278_v11, %v1138_v17  ;;  %v1447_v59 = vmul.f32 %v6246_v53, %v7216_v4  ;;  %v1305_v60 = vadd.f32 %v1281_v21, %v1141_v20  ;;  %v1307_v5 = vadd.f32 %v1283_v25, %v1143_v36  ;;  %v7222_v20 = vld [vmem:[#allocation92_spill] sm:$0xff]  ;;  %v7223_v25 = vld [vmem:[#allocation93_spill] sm:$0xff]  ;;  %v7230_v4 = vld [vmem:[#allocation103_spill] sm:$0xff] }
 0xb5d   :  { %v1309_v1 = vadd.f32 %v1285_v61, %v1145_v40  ;;  %v1452_v44 = vmul.f32 %v6246_v53, %v7218_v63  ;;  %v1311_v56 = vadd.f32 %v1287_v58, %v1147_v42  ;;  %v1313_v9 = vadd.f32 %v1289_v57, %v1149_v32  ;;  %v7224_v61 = vld [vmem:[#allocation95_spill] sm:$0xff]  ;;  %v7225_v57 = vld [vmem:[#allocation97_spill] sm:$0xff]  ;;  %v6287_v42 = vld [vmem:[%s6940_s2 + $0xb] ss:$0 sm:$0xff] }
 0xb5e   :  { %v1449_v17 = vmul.f32 %v6246_v53, %v7219_v15  ;;  %v1451_v11 = vmul.f32 %v6246_v53, %v7220_v39  ;;  %v1312_v24 = vadd.f32 %v1288_v28, %v1148_v29  ;;  %v1453_v21 = vmul.f32 %v6246_v53, %v7222_v20  ;;  %7226 = vst [vmem:[#allocation40_spill] sm:$0xff] %v6287_v42  ;;  %v7227_v32 = vld [vmem:[#allocation99_spill] sm:$0xff]  ;;  %v7228_v28 = vld [vmem:[#allocation101_spill] sm:$0xff]  ;;  %v6302_v63 = vld [vmem:[%s6940_s2 + $0xc] ss:$0 sm:$0xff] }
 0xb5f   :  { %v1606_v26 = vmul.f32 %v6263_v8, %v7223_v25  ;;  %v1609_v36 = vmul.f32 %v6263_v8, %v7224_v61  ;;  %v1466_v33 = vadd.f32 %v1442_v2, %v1302_v37  ;;  %v1469_v58 = vadd.f32 %v1445_v16, %v1305_v60  ;;  %v7231_v60 = vld [vmem:[#allocation104_spill] sm:$0xff]  ;;  %7232 = vst [vmem:[#allocation41_spill] sm:$0xff] %v6302_v63  ;;  %v7236_v61 = vld [vmem:[#allocation113_spill] sm:$0xff] }
 0xb60   :  { %v1471_v18 = vadd.f32 %v1447_v59, %v1307_v5  ;;  %v1611_v40 = vmul.f32 %v6263_v8, %v7225_v57  ;;  %v1476_v29 = vadd.f32 %v1452_v44, %v1312_v24  ;;  %v1613_v45 = vmul.f32 %v6263_v8, %v7227_v32  ;;  %v7233_v24 = vld [vmem:[#allocation117_spill] sm:$0xff]  ;;  %v6315_v32 = vld [vmem:[%s6940_s2 + $0xd] ss:$0 sm:$0xff] }
 0xb61   :  { %v1615_v0 = vmul.f32 %v6263_v8, %v7228_v28  ;;  %v1770_v37 = vmul.f32 %v6274_v13, %v7229_v3  ;;  %v1473_v2 = vadd.f32 %v1449_v17, %v1309_v1  ;;  %v1475_v16 = vadd.f32 %v1451_v11, %v1311_v56  ;;  %v7234_v1 = vld [vmem:[#allocation110_spill] sm:$0xff]  ;;  %v7235_v17 = vld [vmem:[#allocation112_spill] sm:$0xff]  ;;  %7237 = vst [vmem:[#allocation42_spill] sm:$0xff] %v6315_v32  ;;  %v7240_v3 = vld [vmem:[#allocation115_spill] sm:$0xff] }
 0xb62   :  { %v1617_v59 = vmul.f32 %v6263_v8, %v7230_v4  ;;  %v1616_v5 = vmul.f32 %v6263_v8, %v7231_v60  ;;  %v1477_v44 = vadd.f32 %v1453_v21, %v1313_v9  ;;  %v1630_v15 = vadd.f32 %v1606_v26, %v1466_v33  ;;  %v6326_v60 = vld [vmem:[%s6940_s2 + $0xe] ss:$0 sm:$0xff]  ;;  %v7265_v8 = vld [vmem:[#allocation151_spill] sm:$0xff] }
 0xb63   :  { %v1633_v39 = vadd.f32 %v1609_v36, %v1469_v58  ;;  %v1934_v20 = vmul.f32 %v6287_v42, %v7233_v24  ;;  %v1635_v25 = vadd.f32 %v1611_v40, %v1471_v18  ;;  %v1773_v56 = vmul.f32 %v6274_v13, %v7234_v1  ;;  %v7238_v36 = vld [vmem:[#allocation130_spill] sm:$0xff]  ;;  %v7241_v24 = vld [vmem:[#allocation116_spill] sm:$0xff] }
 0xb64   :  { %v1775_v11 = vmul.f32 %v6274_v13, %v7235_v17  ;;  %v1780_v57 = vmul.f32 %v6274_v13, %v7236_v61  ;;  %v1637_v9 = vadd.f32 %v1613_v45, %v1473_v2  ;;  %v1639_v21 = vadd.f32 %v1615_v0, %v1475_v16  ;;  %v7239_v40 = vld [vmem:[#allocation114_spill] sm:$0xff]  ;;  %v7243_v16 = vld [vmem:[#allocation141_spill] sm:$0xff]  ;;  %v7245_v61 = vld [vmem:[#allocation123_spill] sm:$0xff] }
 0xb65   :  { %v1794_v26 = vadd.f32 %v1770_v37, %v1630_v15  ;;  %v2098_v33 = vmul.f32 %v6302_v63, %v7238_v36  ;;  %v1641_v58 = vadd.f32 %v1617_v59, %v1477_v44  ;;  %v1640_v18 = vadd.f32 %v1616_v5, %v1476_v29  ;;  %v7242_v37 = vld [vmem:[#allocation119_spill] sm:$0xff]  ;;  %v7244_v15 = vld [vmem:[#allocation121_spill] sm:$0xff]  ;;  %v6339_v17 = vld [vmem:[%s6940_s2 + $0xf] ss:$0 sm:$0xff] }
 0xb66   :  { %v1777_v28 = vmul.f32 %v6274_v13, %v7239_v40  ;;  %v1779_v4 = vmul.f32 %v6274_v13, %v7240_v3  ;;  %v1781_v45 = vmul.f32 %v6274_v13, %v7241_v24  ;;  %v1937_v2 = vmul.f32 %v6287_v42, %v7242_v37  ;;  %v7247_v3 = vld [vmem:[#allocation154_spill] sm:$0xff]  ;;  %v6354_v37 = vld [vmem:[%s6940_s2 + $0x10] ss:$0 sm:$0xff] }
 0xb67   :  { %v1958_v0 = vadd.f32 %v1934_v20, %v1794_v26  ;;  %v2262_v29 = vmul.f32 %v6315_v32, %v7243_v16  ;;  %v1797_v59 = vadd.f32 %v1773_v56, %v1633_v39  ;;  %v1799_v5 = vadd.f32 %v1775_v11, %v1635_v25  ;;  %v7246_v26 = vld [vmem:[#allocation125_spill] sm:$0xff]  ;;  %v7248_v11 = vld [vmem:[#allocation127_spill] sm:$0xff] }
 0xb68   :  { %v1804_v44 = vadd.f32 %v1780_v57, %v1640_v18  ;;  %v1939_v1 = vmul.f32 %v6287_v42, %v7244_v15  ;;  %v1941_v20 = vmul.f32 %v6287_v42, %v7245_v61  ;;  %v1943_v36 = vmul.f32 %v6287_v42, %v7246_v26  ;;  %v7249_v18 = vld [vmem:[#allocation128_spill] sm:$0xff]  ;;  %v7262_v13 = vld [vmem:[#allocation147_spill] sm:$0xff] }
 0xb69   :  { %v2122_v40 = vadd.f32 %v2098_v33, %v1958_v0  ;;  %v2426_v39 = vmul.f32 %v6326_v60, %v7247_v3  ;;  %v1801_v25 = vadd.f32 %v1777_v28, %v1637_v9  ;;  %v1803_v56 = vadd.f32 %v1779_v4, %v1639_v21  ;;  %v7250_v33 = vld [vmem:[#allocation165_spill] sm:$0xff]  ;;  %v7251_v9 = vld [vmem:[#allocation134_spill] sm:$0xff]  ;;  %v7252_v28 = vld [vmem:[#allocation136_spill] sm:$0xff] }
 0xb6a   :  { %v1945_v57 = vmul.f32 %v6287_v42, %v7248_v11  ;;  %v1944_v24 = vmul.f32 %v6287_v42, %v7249_v18  ;;  %v1805_v16 = vadd.f32 %v1781_v45, %v1641_v58  ;;  %v1961_v15 = vadd.f32 %v1937_v2, %v1797_v59  ;;  %v7253_v3 = vld [vmem:[#allocation137_spill] sm:$0xff]  ;;  %v6367_v18 = vld [vmem:[%s6940_s2 + $0x11] ss:$0 sm:$0xff] }
 0xb6b   :  { %v2286_v61 = vadd.f32 %v2262_v29, %v2122_v40  ;;  %v2590_v0 = vmul.f32 %v6339_v17, %v7250_v33  ;;  %v1963_v26 = vadd.f32 %v1939_v1, %v1799_v5  ;;  %v2101_v21 = vmul.f32 %v6302_v63, %v7251_v9  ;;  %v7254_v29 = vld [vmem:[#allocation178_spill] sm:$0xff]  ;;  %v7256_v9 = vld [vmem:[#allocation143_spill] sm:$0xff] }
 0xb6c   :  { %v2103_v4 = vmul.f32 %v6302_v63, %v7252_v28  ;;  %v2108_v11 = vmul.f32 %v6302_v63, %v7253_v3  ;;  %v1965_v58 = vadd.f32 %v1941_v20, %v1801_v25  ;;  %v1967_v45 = vadd.f32 %v1943_v36, %v1803_v56  ;;  %v7255_v40 = vld [vmem:[#allocation138_spill] sm:$0xff]  ;;  %v6378_v3 = vld [vmem:[%s6940_s2 + $0x12] ss:$0 sm:$0xff]  ;;  %v7258_v36 = vld [vmem:[#allocation140_spill] sm:$0xff] }
 0xb6d   :  { %v2450_v2 = vadd.f32 %v2426_v39, %v2286_v61  ;;  %v2754_v59 = vmul.f32 %v6354_v37, %v7254_v29  ;;  %v1969_v5 = vadd.f32 %v1945_v57, %v1805_v16  ;;  %v1968_v1 = vadd.f32 %v1944_v24, %v1804_v44  ;;  %v7257_v42 = vld [vmem:[#allocation139_spill] sm:$0xff]  ;;  %v7259_v56 = vld [vmem:[#allocation189_spill] sm:$0xff]  ;;  %v7260_v61 = vld [vmem:[#allocation158_spill] sm:$0xff] }
 0xb6e   :  { %v2105_v33 = vmul.f32 %v6302_v63, %v7255_v40  ;;  %v2265_v28 = vmul.f32 %v6315_v32, %v7256_v9  ;;  %v2107_v20 = vmul.f32 %v6302_v63, %v7257_v42  ;;  %v2109_v39 = vmul.f32 %v6302_v63, %v7258_v36  ;;  %v6391_v40 = vld [vmem:[%s6940_s2 + $0x13] ss:$0 sm:$0xff]  ;;  %v7261_v9 = vld [vmem:[#allocation145_spill] sm:$0xff] }
 0xb6f   :  { %v2614_v25 = vadd.f32 %v2590_v0, %v2450_v2  ;;  %v2918_v44 = vmul.f32 %v6367_v18, %v7259_v56  ;;  %v2125_v57 = vadd.f32 %v2101_v21, %v1961_v15  ;;  %v2127_v24 = vadd.f32 %v2103_v4, %v1963_v26  ;;  %v7263_v4 = vld [vmem:[#allocation149_spill] sm:$0xff] }
 0xb70   :  { %v2132_v16 = vadd.f32 %v2108_v11, %v1968_v1  ;;  %v2429_v29 = vmul.f32 %v6326_v60, %v7260_v61  ;;  %v2267_v42 = vmul.f32 %v6315_v32, %v7261_v9  ;;  %v2269_v0 = vmul.f32 %v6315_v32, %v7262_v13  ;;  %v7264_v1 = vld [vmem:[#allocation167_spill] sm:$0xff] }
 0xb71   :  { %v2778_v2 = vadd.f32 %v2754_v59, %v2614_v25  ;;  %v3082_v15 = vmul.f32 %v6378_v3, %v6015_v31  ;;  %v2129_v26 = vadd.f32 %v2105_v33, %v1965_v58  ;;  %v2289_v21 = vadd.f32 %v2265_v28, %v2125_v57  ;;  %v7266_v59 = vld [vmem:[#allocation152_spill] sm:$0xff]  ;;  %v6414_v25 = vld [vmem:[%s6940_s2 + $0x14] ss:$0 sm:$0xff] }
 0xb72   :  { %v2271_v11 = vmul.f32 %v6315_v32, %v7263_v4  ;;  %v2593_v36 = vmul.f32 %v6339_v17, %v7264_v1  ;;  %v2131_v56 = vadd.f32 %v2107_v20, %v1967_v45  ;;  %v2133_v61 = vadd.f32 %v2109_v39, %v1969_v5  ;;  %v7267_v33 = vld [vmem:[#allocation160_spill] sm:$0xff]  ;;  %v7268_v20 = vld [vmem:[#allocation182_spill] sm:$0xff] }
 0xb73   :  { %v2942_v63 = vadd.f32 %v2918_v44, %v2778_v2  ;;  %v3246_v9 = vmul.f32 %v6391_v40, %v6055_v10  ;;  %v2273_v13 = vmul.f32 %v6315_v32, %v7265_v8  ;;  %v2272_v31 = vmul.f32 %v6315_v32, %v7266_v59  ;;  %v7269_v8 = vld [vmem:[#allocation161_spill] sm:$0xff]  ;;  %v7270_v2 = vld [vmem:[#allocation162_spill] sm:$0xff] }
 0xb74   :  { %v2453_v58 = vadd.f32 %v2429_v29, %v2289_v21  ;;  %v2431_v28 = vmul.f32 %v6326_v60, %v7267_v33  ;;  %v2291_v45 = vadd.f32 %v2267_v42, %v2127_v24  ;;  %v2293_v5 = vadd.f32 %v2269_v0, %v2129_v26  ;;  %v7272_v59 = vld [vmem:[#allocation169_spill] sm:$0xff]  ;;  %v7273_v24 = vld [vmem:[#allocation191_spill] sm:$0xff] }
 0xb75   :  { %v2757_v10 = vmul.f32 %v6354_v37, %v7268_v20  ;;  %v3106_v39 = vadd.f32 %v3082_v15, %v2942_v63  ;;  %v2295_v44 = vadd.f32 %v2271_v11, %v2131_v56  ;;  %v2436_v57 = vmul.f32 %v6326_v60, %v7269_v8  ;;  %v7274_v56 = vld [vmem:[#allocation163_spill] sm:$0xff] }
 0xb76   :  { %v2433_v29 = vmul.f32 %v6326_v60, %v7270_v2  ;;  %v2617_v21 = vadd.f32 %v2593_v36, %v2453_v58  ;;  %v2595_v33 = vmul.f32 %v6339_v17, %v7272_v59  ;;  %v2921_v42 = vmul.f32 %v6367_v18, %v7273_v24  ;;  %v7275_v36 = vld [vmem:[#allocation184_spill] sm:$0xff]  ;;  %v7276_v2 = vld [vmem:[#allocation205_spill] sm:$0xff] }
 0xb77   :  { %v3270_v0 = vadd.f32 %v3246_v9, %v3106_v39  ;;  %v2297_v15 = vadd.f32 %v2273_v13, %v2133_v61  ;;  %v2296_v26 = vadd.f32 %v2272_v31, %v2132_v16  ;;  %v2455_v11 = vadd.f32 %v2431_v28, %v2291_v45  ;;  %v7278_v9 = vld [vmem:[#allocation171_spill] sm:$0xff]  ;;  %v7279_v61 = vld [vmem:[#allocation176_spill] sm:$0xff] }
 0xb78   :  { %v2435_v20 = vmul.f32 %v6326_v60, %v7274_v56  ;;  %v2781_v8 = vadd.f32 %v2757_v10, %v2617_v21  ;;  %v2759_v58 = vmul.f32 %v6354_v37, %v7275_v36  ;;  %v2457_v24 = vadd.f32 %v2433_v29, %v2293_v5  ;;  %v7282_v10 = vld [vmem:[#allocation193_spill] sm:$0xff]  ;;  %v7286_v56 = vld [vmem:[#allocation186_spill] sm:$0xff] }
 0xb79   :  { %v2460_v32 = vadd.f32 %v2436_v57, %v2296_v26  ;;  %v2597_v39 = vmul.f32 %v6339_v17, %v7278_v9  ;;  %v2600_v16 = vmul.f32 %v6339_v17, %v7279_v61  ;;  %v2619_v28 = vadd.f32 %v2595_v33, %v2455_v11  ;;  %v7284_v5 = vld [vmem:[#allocation173_spill] sm:$0xff] }
 0xb7a   :  { %v2945_v45 = vadd.f32 %v2921_v42, %v2781_v8  ;;  %v2923_v21 = vmul.f32 %v6367_v18, %v7282_v10  ;;  %v2459_v57 = vadd.f32 %v2435_v20, %v2295_v44  ;;  %v2599_v29 = vmul.f32 %v6339_v17, %v7284_v5  ;;  %v7288_v8 = vld [vmem:[#allocation207_spill] sm:$0xff] }
 0xb7b   :  { %v2761_v36 = vmul.f32 %v6354_v37, %v7286_v56  ;;  %v2783_v42 = vadd.f32 %v2759_v58, %v2619_v28  ;;  %v3087_v9 = vmul.f32 %v6378_v3, %v7288_v8  ;;  %v2621_v61 = vadd.f32 %v2597_v39, %v2457_v24  ;;  %v7289_v44 = vld [vmem:[#allocation195_spill] sm:$0xff] }
 0xb7c   :  { %v2624_v10 = vadd.f32 %v2600_v16, %v2460_v32  ;;  %v2925_v20 = vmul.f32 %v6367_v18, %v7289_v44  ;;  %v2623_v28 = vadd.f32 %v2599_v29, %v2459_v57  ;;  %v7292_v32 = vld [vmem:[#allocation187_spill] sm:$0xff]  ;;  %v7294_v44 = vld [vmem:[#allocation209_spill] sm:$0xff] }
 0xb7d   :  { %v2947_v56 = vadd.f32 %v2923_v21, %v2783_v42  ;;  %v2785_v24 = vadd.f32 %v2761_v36, %v2621_v61  ;;  %v2763_v39 = vmul.f32 %v6354_v37, %v7292_v32 }
 0xb7f   :  { %v3111_v16 = vadd.f32 %v3087_v9, %v2947_v56  ;;  %v2949_v42 = vadd.f32 %v2925_v20, %v2785_v24  ;;  %v7297_v9 = vld [vmem:[#allocation217_spill] sm:$0xff]  ;;  %v2787_v32 = vadd.f32 %v2763_v39, %v2623_v28  ;;  %v7300_v24 = vld [vmem:[#allocation210_spill] sm:$0xff] }
 0xb80   :  { %v3253_v61 = vmul.f32 %v6391_v40, %v7297_v9 }
 0xbb4   :  { %v6422_v4 = vpop.permute.xlu0 %3351  ;;  %v3347_v1 = vpop.permute.xlu1 %3346 }
 0xbb5   :  { %7271 = vst [vmem:[#allocation43_spill] sm:$0xff] %v6422_v4  ;;  %v3410_v63 = vmul.f32 %v6414_v25, %v3347_v1  ;;  %v3085_v4 = vmul.f32 %v6378_v3, %v7276_v2  ;;  %v7283_v1 = vld [vmem:[#allocation213_spill] sm:$0xff]  ;;  %v7287_v2 = vld [vmem:[#allocation164_spill] sm:$0xff] }
 0xbb6   :  { %v2437_v33 = vmul.f32 %v6326_v60, %v7287_v2  ;;  %v7293_v2 = vld [vmem:[#allocation208_spill] sm:$0xff] }
 0xbb7   :  { %v6435_v59 = vadd.f32 %v3410_v63, %v3270_v0  ;;  %v3249_v0 = vmul.f32 %v6391_v40, %v7283_v1  ;;  %v7285_v63 = vld [vmem:[#allocation185_spill] sm:$0xff]  ;;  %v3109_v11 = vadd.f32 %v3085_v4, %v2945_v45  ;;  %v7290_v1 = vld [vmem:[#allocation200_spill] sm:$0xff]  ;;  %v3092_v8 = vmul.f32 %v6378_v3, %v7293_v2 }
 0xbb8   :  { %v6441_v13 = vpop.permute.xlu0 %3366  ;;  %v6443_v31 = vpop.permute.xlu1 %3356  ;;  %v2764_v26 = vmul.f32 %v6354_v37, %v7285_v63  ;;  %v2928_v5 = vmul.f32 %v6367_v18, %v7290_v1  ;;  %v3089_v1 = vmul.f32 %v6378_v3, %v7294_v44  ;;  %v7299_v2 = vld [vmem:[#allocation188_spill] sm:$0xff] }
 0xbb9   :  { %7277 = vst [vmem:[#allocation44_spill] sm:$0xff] %v6435_v59  ;;  %7280 = vst [vmem:[#allocation45_spill] sm:$0xff] %v6441_v13  ;;  %v7291_v59 = vld [vmem:[#allocation215_spill] sm:$0xff]  ;;  %v2765_v20 = vmul.f32 %v6354_v37, %v7299_v2 }
 0xbba   :  { %7281 = vst [vmem:[#allocation47_spill] sm:$0xff] %v6443_v31  ;;  %v3273_v31 = vadd.f32 %v3249_v0, %v3109_v11  ;;  %v3251_v58 = vmul.f32 %v6391_v40, %v7291_v59  ;;  %v2788_v45 = vadd.f32 %v2764_v26, %v2624_v10  ;;  %v7295_v0 = vld [vmem:[#allocation175_spill] sm:$0xff]  ;;  %v7298_v10 = vld [vmem:[#allocation222_spill] sm:$0xff]  ;;  %v3113_v44 = vadd.f32 %v3089_v1, %v2949_v42 }
 0xbbb   :  { %v2601_v59 = vmul.f32 %v6339_v17, %v7295_v0  ;;  %v3256_v56 = vmul.f32 %v6391_v40, %v7298_v10  ;;  %v7302_v10 = vld [vmem:[#allocation219_spill] sm:$0xff] }
 0xbbc   :  { %v6463_v63 = vpop.permute.xlu0 %3376  ;;  %v3362_v13 = vpop.permute.xlu1 %3361  ;;  %v2952_v29 = vadd.f32 %v2928_v5, %v2788_v45  ;;  %v3275_v11 = vadd.f32 %v3251_v58, %v3111_v16  ;;  %v3091_v5 = vmul.f32 %v6378_v3, %v7300_v24  ;;  %v3277_v28 = vadd.f32 %v3253_v61, %v3113_v44  ;;  %v7303_v42 = vld [vmem:[#allocation211_spill] sm:$0xff] }
 0xbbd   :  { %v3413_v4 = vmul.f32 %v6414_v25, %v3362_v13  ;;  %v7296_v13 = vld [vmem:[#allocation197_spill] sm:$0xff] }
 0xbbe   :  { %v2927_v57 = vmul.f32 %v6367_v18, %v7296_v13  ;;  %v3116_v45 = vadd.f32 %v3092_v8, %v2952_v29  ;;  %v7301_v13 = vld [vmem:[#allocation199_spill] sm:$0xff] }
 0xbbf   :  { %v6474_v21 = vadd.f32 %v3413_v4, %v3273_v31  ;;  %v2461_v4 = vadd.f32 %v2437_v33, %v2297_v15  ;;  %v2929_v9 = vmul.f32 %v6367_v18, %v7301_v13  ;;  %v7304_v13 = vld [vmem:[#allocation221_spill] sm:$0xff] }
 0xbc0   :  { %v6480_v26 = vpop.permute.xlu0 %3386  ;;  %v3372_v36 = vpop.permute.xlu1 %3371  ;;  %v2951_v16 = vadd.f32 %v2927_v57, %v2787_v32  ;;  %v3280_v39 = vadd.f32 %v3256_v56, %v3116_v45  ;;  %v3257_v61 = vmul.f32 %v6391_v40, %v7304_v13 }
 0xbc1   :  { %v3415_v31 = vmul.f32 %v6414_v25, %v3372_v36  ;;  %v2625_v58 = vadd.f32 %v2601_v59, %v2461_v4  ;;  %v3255_v36 = vmul.f32 %v6391_v40, %v7302_v10  ;;  %v3093_v59 = vmul.f32 %v6378_v3, %v7303_v42 }
 0xbc2   :  { %v3115_v1 = vadd.f32 %v3091_v5, %v2951_v16  ;;  %v7305_v5 = vld [vmem:[#allocation6_spill] sm:$0xff]  ;;  %v7306_v16 = vld [vmem:[#allocation5_spill] sm:$0xff] }
 0xbc3   :  { %v6491_v0 = vadd.f32 %v3415_v31, %v3275_v11  ;;  %v2789_v8 = vadd.f32 %v2765_v20, %v2625_v58 }
 0xbc4   :  { %v3397_v15 = vpop.permute.xlu0 %3396  ;;  %v3382_v33 = vpop.permute.xlu1 %3381  ;;  %v3279_v31 = vadd.f32 %v3255_v36, %v3115_v1 }
 0xbc5   :  { %v3420_v2 = vmul.f32 %v6414_v25, %v3397_v15  ;;  %v3417_v24 = vmul.f32 %v6414_v25, %v3382_v33  ;;  %v2953_v11 = vadd.f32 %v2929_v9, %v2789_v8 }
 0xbc7   :  { %v6501_v57 = vadd.f32 %v3420_v2, %v3280_v39  ;;  %v6503_v29 = vadd.f32 %v3417_v24, %v3277_v28  ;;  %v3117_v20 = vadd.f32 %v3093_v59, %v2953_v11 }
 0xbc8   :  { %v4932_v4 = vpop.permute.xlu0 %4931  ;;  %v3392_v32 = vpop.permute.xlu1 %3391 }
 0xbc9   :  { %v4934_v56 = vunpack.i.h.bf16 %v4932_v4  ;;  %v4933_v45 = vunpack.i.l.bf16 %v4932_v4  ;;  %v3419_v44 = vmul.f32 %v6414_v25, %v3392_v32  ;;  %v3281_v28 = vadd.f32 %v3257_v61, %v3117_v20 }
 0xbcb   :  { %v3495_v58 = vmul.f32 %v4934_v56, %v7305_v5  ;;  %v3494_v10 = vmul.f32 %v4933_v45, %v7306_v16  ;;  %v6510_v15 = vadd.f32 %v3419_v44, %v3279_v31 }
 0xbcc   :  { %v3402_v33 = vpop.permute.xlu1 %3401  ;;  %v4942_v36 = vpop.permute.xlu0 %4941 }
 0xbcd   :  { %v3421_v9 = vmul.f32 %v6414_v25, %v3402_v33  ;;  %3510 = vperm.xlu0 %4960, %v3494_v10   ;;  %3515 = vperm.xlu1 %4961, %v3495_v58   ;;  %v4944_v1 = vunpack.i.h.bf16 %v4942_v36  ;;  %v4943_v42 = vunpack.i.l.bf16 %v4942_v36 }
 0xbcf   :  { %v6513_v39 = vadd.f32 %v3421_v9, %v3281_v28  ;;  %v3499_v4 = vmul.f32 %v4944_v1, %v5190_v19  ;;  %v3498_v32 = vmul.f32 %v4943_v42, %v5193_v22  ;;  %v7307_v1 = vld [vmem:[#allocation18_spill] sm:$0xff] }
 0xbd0   :  { %v4937_v2 = vpop.permute.xlu1 %4936  ;;  %v4952_v56 = vpop.permute.xlu0 %4951  ;;  %v295_v42 = vmul.f32 %v6105_v41, %v7307_v1 }
 0xbd1   :  { %v4939_v24 = vunpack.i.h.bf16 %v4937_v2  ;;  %v4938_v8 = vunpack.i.l.bf16 %v4937_v2  ;;  %v4954_v20 = vunpack.i.h.bf16 %v4952_v56  ;;  %v4953_v58 = vunpack.i.l.bf16 %v4952_v56 }
 0xbd3   :  { %v3497_v59 = vmul.f32 %v4939_v24, %v5170_v7  ;;  %v3496_v11 = vmul.f32 %v4938_v8, %v5168_v6  ;;  %v3503_v33 = vmul.f32 %v4954_v20, %v5214_v35  ;;  %v3502_v28 = vmul.f32 %v4953_v58, %v5217_v38  ;;  %v7313_v20 = vld [vmem:[#allocation21_spill] sm:$0xff] }
 0xbd4   :  { %v4947_v31 = vpop.permute.xlu1 %4946  ;;  %v5126_v8 = vmov 22   ;;  %v300_v58 = vmul.f32 %v6105_v41, %v7313_v20 }
 0xbd5   :  { %3525 = vperm.xlu0 %4960, %v3497_v59   ;;  %3520 = vperm.xlu1 %4961, %v3496_v11   ;;  %v4949_v13 = vunpack.i.h.bf16 %v4947_v31  ;;  %v4948_v61 = vunpack.i.l.bf16 %v4947_v31  ;;  %v7308_v59 = vld [vmem:[#allocation14_spill] sm:$0xff]  ;;  %v7309_v31 = vld [vmem:[#allocation19_spill] sm:$0xff] }
 0xbd6   :  { %v143_v11 = vmul.f32 %v6100_v12, %v7308_v59  ;;  %v7318_v59 = vld [vmem:[#allocation16_spill] sm:$0xff] }
 0xbd7   :  { %v3501_v45 = vmul.f32 %v4949_v13, %v5202_v27  ;;  %v3500_v44 = vmul.f32 %v4948_v61, %v5205_v30  ;;  %v7311_v61 = vld [vmem:[#allocation13_spill] sm:$0xff] }
 0xbd8   :  { %v4957_v10 = vpop.permute.xlu1 %4956  ;;  %v144_v56 = vmul.f32 %v6100_v12, %v7311_v61 }
 0xbd9   :  { %3535 = vperm.xlu0 %4960, %v3499_v4   ;;  %3530 = vperm.xlu1 %4961, %v3498_v32   ;;  %v4959_v9 = vunpack.i.h.bf16 %v4957_v10  ;;  %v4958_v36 = vunpack.i.l.bf16 %v4957_v10  ;;  %v296_v4 = vmul.f32 %v6105_v41, %v7309_v31  ;;  %v7310_v32 = vld [vmem:[#allocation23_spill] sm:$0xff]  ;;  %v7314_v10 = vld [vmem:[#allocation22_spill] sm:$0xff]  ;;  %v148_v31 = vmul.f32 %v6100_v12, %v7318_v59 }
 0xbda   :  { %v459_v13 = vmul.f32 %v6122_v47, %v7310_v32  ;;  %v7319_v32 = vld [vmem:[#allocation17_spill] sm:$0xff] }
 0xbdb   :  { %v3505_v2 = vmul.f32 %v4959_v9, %v5226_v43  ;;  %v3504_v24 = vmul.f32 %v4958_v36, %v5229_v46  ;;  %v319_v36 = vadd.f32 %v295_v42, %v143_v11  ;;  %v150_v61 = vmul.f32 %v6100_v12, %v7319_v32  ;;  %v7322_v11 = vld [vmem:[#allocation27_spill] sm:$0xff] }
 0xbdd   :  { %3545 = vperm.xlu0 %4960, %v3501_v45   ;;  %3540 = vperm.xlu1 %4961, %v3500_v44   ;;  %v7312_v45 = vld [vmem:[#allocation20_spill] sm:$0xff]  ;;  %v483_v42 = vadd.f32 %v459_v13, %v319_v36 }
 0xbde   :  { %v298_v44 = vmul.f32 %v6105_v41, %v7312_v45  ;;  %v7320_v45 = vld [vmem:[#allocation25_spill] sm:$0xff] }
 0xbdf   :  { %v462_v20 = vmul.f32 %v6122_v47, %v7320_v45  ;;  %v7325_v45 = vld [vmem:[#allocation30_spill] sm:$0xff] }
 0xbe0   :  { %v626_v43 = vmul.f32 %v6143_v62, %v7325_v45 }
 0xbe1   :  { %3555 = vperm.xlu0 %4960, %v3503_v33   ;;  %3550 = vperm.xlu1 %4961, %v3502_v28   ;;  %v302_v33 = vmul.f32 %v6105_v41, %v7314_v10  ;;  %v7315_v28 = vld [vmem:[#allocation15_spill] sm:$0xff]  ;;  %v7321_v41 = vld [vmem:[#allocation26_spill] sm:$0xff] }
 0xbe2   :  { %v146_v9 = vmul.f32 %v6100_v12, %v7315_v28  ;;  %v464_v10 = vmul.f32 %v6122_v47, %v7321_v41  ;;  %v320_v28 = vadd.f32 %v296_v4, %v144_v56  ;;  %v7326_v41 = vld [vmem:[#allocation46_spill] sm:$0xff] }
 0xbe3   :  { %v326_v59 = vadd.f32 %v302_v33, %v150_v61  ;;  %v951_v4 = vmul.f32 %v6185_v34, %v7326_v41  ;;  %v7331_v61 = vld [vmem:[#allocation35_spill] sm:$0xff]  ;;  %v7337_v41 = vld [vmem:[#allocation52_spill] sm:$0xff] }
 0xbe5   :  { %3565 = vperm.xlu0 %4960, %v3505_v2   ;;  %3560 = vperm.xlu1 %4961, %v3504_v24   ;;  %v7316_v2 = vld [vmem:[#allocation24_spill] sm:$0xff] }
 0xbe6   :  { %v460_v24 = vmul.f32 %v6122_v47, %v7316_v2  ;;  %v466_v2 = vmul.f32 %v6122_v47, %v7322_v11  ;;  %v7327_v47 = vld [vmem:[#allocation31_spill] sm:$0xff]  ;;  %v7334_v11 = vld [vmem:[#allocation48_spill] sm:$0xff] }
 0xbe7   :  { %v628_v36 = vmul.f32 %v6143_v62, %v7327_v47  ;;  %v956_v47 = vmul.f32 %v6185_v34, %v7337_v41 }
 0xbe8   :  { %v484_v32 = vadd.f32 %v460_v24, %v320_v28  ;;  %v7330_v24 = vld [vmem:[#allocation57_spill] sm:$0xff]  ;;  %v790_v28 = vmul.f32 %v6168_v23, %v7331_v61 }
 0xbe9   :  { %4963 = vrot.lane.b32.xlu1 %v5235_v50, %s5125_s13  ;;  %4968 = vrot.lane.b32.xlu0 %v5233_v49, %s5125_s13  ;;  %v7324_v49 = vld [vmem:[#allocation29_spill] sm:$0xff] }
 0xbea   :  { %4993 = vset.pattern.permute.xlu0 %v5126_v8  ;;  %4992 = vset.pattern.permute.xlu1 %v5126_v8  ;;  %v7317_v8 = vld [vmem:[#allocation28_spill] sm:$0xff]  ;;  %v624_v12 = vmul.f32 %v6143_v62, %v7324_v49 }
 0xbeb   :  { %v623_v1 = vmul.f32 %v6143_v62, %v7317_v8 }
 0xbed   :  { %4973 = vrot.lane.b32.xlu1 %v5241_v52, %s5125_s13  ;;  %4978 = vrot.lane.b32.xlu0 %v5238_v51, %s5125_s13  ;;  %v322_v51 = vadd.f32 %v298_v44, %v146_v9  ;;  %v647_v52 = vadd.f32 %v623_v1, %v483_v42  ;;  %v7329_v9 = vld [vmem:[#allocation36_spill] sm:$0xff]  ;;  %v1115_v1 = vmul.f32 %v6204_v14, %v7330_v24 }
 0xbee   :  { %v788_v49 = vmul.f32 %v6168_v23, %v7329_v9  ;;  %v7338_v9 = vld [vmem:[#allocation54_spill] sm:$0xff] }
 0xbef   :  { %v486_v13 = vadd.f32 %v462_v20, %v322_v51  ;;  %v7332_v51 = vld [vmem:[#allocation37_spill] sm:$0xff]  ;;  %v7333_v20 = vld [vmem:[#allocation39_spill] sm:$0xff] }
 0xbf1   :  { %4983 = vrot.lane.b32.xlu1 %v5247_v55, %s5125_s13  ;;  %4988 = vrot.lane.b32.xlu0 %v5244_v54, %s5125_s13  ;;  %v7323_v54 = vld [vmem:[#allocation34_spill] sm:$0xff]  ;;  %v324_v55 = vadd.f32 %v300_v58, %v148_v31  ;;  %v490_v58 = vadd.f32 %v466_v2, %v326_v59  ;;  %v648_v31 = vadd.f32 %v624_v12, %v484_v32 }
 0xbf2   :  { %v787_v8 = vmul.f32 %v6168_v23, %v7323_v54  ;;  %v7328_v54 = vld [vmem:[#allocation32_spill] sm:$0xff]  ;;  %v650_v42 = vadd.f32 %v626_v43, %v486_v13  ;;  %v7335_v2 = vld [vmem:[#allocation70_spill] sm:$0xff] }
 0xbf3   :  { %v488_v56 = vadd.f32 %v464_v10, %v324_v55  ;;  %v630_v44 = vmul.f32 %v6143_v62, %v7328_v54  ;;  %v792_v55 = vmul.f32 %v6168_v23, %v7332_v51  ;;  %v794_v10 = vmul.f32 %v6168_v23, %v7333_v20  ;;  %v7336_v12 = vld [vmem:[#allocation50_spill] sm:$0xff]  ;;  %v7340_v51 = vld [vmem:[#allocation59_spill] sm:$0xff] }
 0xbf4   :  { %v811_v33 = vadd.f32 %v787_v8, %v647_v52  ;;  %v952_v52 = vmul.f32 %v6185_v34, %v7334_v11  ;;  %v1279_v8 = vmul.f32 %v6223_v48, %v7335_v2  ;;  %v954_v32 = vmul.f32 %v6185_v34, %v7336_v12  ;;  %v7342_v11 = vld [vmem:[#allocation94_spill] sm:$0xff]  ;;  %v7345_v12 = vld [vmem:[#allocation63_spill] sm:$0xff] }
 0xbf5   :  { %v652_v59 = vadd.f32 %v628_v36, %v488_v56  ;;  %v654_v45 = vadd.f32 %v630_v44, %v490_v58  ;;  %v812_v54 = vadd.f32 %v788_v49, %v648_v31  ;;  %v958_v23 = vmul.f32 %v6185_v34, %v7338_v9  ;;  %v7341_v44 = vld [vmem:[#allocation60_spill] sm:$0xff]  ;;  %v7343_v49 = vld [vmem:[#allocation33_spill] sm:$0xff] }
 0xbf6   :  { %v975_v62 = vadd.f32 %v951_v4, %v811_v33  ;;  %v7339_v4 = vld [vmem:[#allocation81_spill] sm:$0xff]  ;;  %v814_v33 = vadd.f32 %v790_v28, %v650_v42  ;;  %v1118_v56 = vmul.f32 %v6204_v14, %v7340_v51  ;;  %v1116_v58 = vmul.f32 %v6204_v14, %v7341_v44 }
 0xbf7   :  { %v1443_v13 = vmul.f32 %v6246_v53, %v7339_v4  ;;  %v816_v24 = vadd.f32 %v792_v55, %v652_v59  ;;  %v818_v61 = vadd.f32 %v794_v10, %v654_v45  ;;  %v976_v36 = vadd.f32 %v952_v52, %v812_v54  ;;  %v7346_v10 = vld [vmem:[#allocation74_spill] sm:$0xff]  ;;  %v7347_v59 = vld [vmem:[#allocation105_spill] sm:$0xff]  ;;  %v7349_v54 = vld [vmem:[#allocation72_spill] sm:$0xff] }
 0xbf8   :  { %v1139_v43 = vadd.f32 %v1115_v1, %v975_v62  ;;  %v1607_v31 = vmul.f32 %v7343_v49, %v7342_v11  ;;  %v978_v2 = vadd.f32 %v954_v32, %v814_v33  ;;  %v7344_v1 = vld [vmem:[#allocation61_spill] sm:$0xff]  ;;  %v1122_v28 = vmul.f32 %v6204_v14, %v7345_v12  ;;  %v7348_v45 = vld [vmem:[#allocation38_spill] sm:$0xff]  ;;  %v7350_v32 = vld [vmem:[#allocation76_spill] sm:$0xff] }
 0xbf9   :  { %v980_v34 = vadd.f32 %v956_v47, %v816_v24  ;;  %v1120_v62 = vmul.f32 %v6204_v14, %v7344_v1  ;;  %v982_v55 = vadd.f32 %v958_v23, %v818_v61  ;;  %v1282_v42 = vmul.f32 %v6223_v48, %v7346_v10  ;;  %v7352_v14 = vld [vmem:[#allocation83_spill] sm:$0xff]  ;;  %v7353_v61 = vld [vmem:[#allocation118_spill] sm:$0xff] }
 0xbfa   :  { %v1303_v20 = vadd.f32 %v1279_v8, %v1139_v43  ;;  %v1771_v41 = vmul.f32 %v7348_v45, %v7347_v59  ;;  %v1142_v8 = vadd.f32 %v1118_v56, %v978_v2  ;;  %v1280_v9 = vmul.f32 %v6223_v48, %v7349_v54  ;;  %v7351_v43 = vld [vmem:[#allocation78_spill] sm:$0xff]  ;;  %v7355_v56 = vld [vmem:[#allocation84_spill] sm:$0xff]  ;;  %v7356_v2 = vld [vmem:[#allocation85_spill] sm:$0xff] }
 0xbfb   :  { %v1284_v47 = vmul.f32 %v6223_v48, %v7350_v32  ;;  %v1286_v4 = vmul.f32 %v6223_v48, %v7351_v43  ;;  %v1140_v33 = vadd.f32 %v1116_v58, %v976_v36  ;;  %v1446_v23 = vmul.f32 %v6246_v53, %v7352_v14  ;;  %v7357_v10 = vld [vmem:[#allocation87_spill] sm:$0xff]  ;;  %v7358_v58 = vld [vmem:[#allocation129_spill] sm:$0xff]  ;;  %v7360_v43 = vld [vmem:[#allocation96_spill] sm:$0xff] }
 0xbfc   :  { %v1467_v52 = vadd.f32 %v1443_v13, %v1303_v20  ;;  %v7354_v13 = vld [vmem:[#allocation40_spill] sm:$0xff]  ;;  %v1144_v44 = vadd.f32 %v1120_v62, %v980_v34  ;;  %v1146_v20 = vadd.f32 %v1122_v28, %v982_v55  ;;  %v1444_v11 = vmul.f32 %v6246_v53, %v7355_v56  ;;  %v7359_v59 = vld [vmem:[#allocation41_spill] sm:$0xff]  ;;  %v7361_v28 = vld [vmem:[#allocation98_spill] sm:$0xff] }
 0xbfd   :  { %v1935_v51 = vmul.f32 %v7354_v13, %v7353_v61  ;;  %v1448_v1 = vmul.f32 %v6246_v53, %v7356_v2  ;;  %v1306_v12 = vadd.f32 %v1282_v42, %v1142_v8  ;;  %v1450_v48 = vmul.f32 %v6246_v53, %v7357_v10  ;;  %v7362_v61 = vld [vmem:[#allocation142_spill] sm:$0xff]  ;;  %v7365_v2 = vld [vmem:[#allocation108_spill] sm:$0xff] }
 0xbfe   :  { %v1631_v24 = vadd.f32 %v1607_v31, %v1467_v52  ;;  %v2099_v54 = vmul.f32 %v7359_v59, %v7358_v58  ;;  %v1304_v31 = vadd.f32 %v1280_v9, %v1140_v33  ;;  %v1308_v52 = vadd.f32 %v1284_v47, %v1144_v44  ;;  %v7363_v42 = vld [vmem:[#allocation42_spill] sm:$0xff]  ;;  %v7367_v44 = vld [vmem:[#allocation153_spill] sm:$0xff] }
 0xbff   :  { %v1310_v32 = vadd.f32 %v1286_v4, %v1146_v20  ;;  %v1608_v34 = vmul.f32 %v7343_v49, %v7360_v43  ;;  %v1470_v62 = vadd.f32 %v1446_v23, %v1306_v12  ;;  %v1610_v55 = vmul.f32 %v7343_v49, %v7361_v28  ;;  %v7366_v4 = vld [vmem:[#allocation102_spill] sm:$0xff]  ;;  %v7368_v12 = vld [vmem:[#allocation107_spill] sm:$0xff] }
 0xc00   :  { %v1795_v36 = vadd.f32 %v1771_v41, %v1631_v24  ;;  %v2263_v8 = vmul.f32 %v7363_v42, %v7362_v61  ;;  %v1468_v56 = vadd.f32 %v1444_v11, %v1304_v31  ;;  %v1472_v53 = vadd.f32 %v1448_v1, %v1308_v52  ;;  %v7364_v41 = vld [vmem:[#allocation100_spill] sm:$0xff]  ;;  %v7369_v11 = vld [vmem:[#allocation109_spill] sm:$0xff]  ;;  %v7371_v52 = vld [vmem:[#allocation111_spill] sm:$0xff] }
 0xc01   :  { %v1612_v24 = vmul.f32 %v7343_v49, %v7364_v41  ;;  %v1772_v9 = vmul.f32 %v7348_v45, %v7365_v2  ;;  %v1474_v47 = vadd.f32 %v1450_v48, %v1310_v32  ;;  %v1614_v33 = vmul.f32 %v7343_v49, %v7366_v4  ;;  %v7372_v49 = vld [vmem:[#allocation166_spill] sm:$0xff]  ;;  %v7374_v61 = vld [vmem:[#allocation132_spill] sm:$0xff] }
 0xc02   :  { %v1959_v14 = vadd.f32 %v1935_v51, %v1795_v36  ;;  %v2427_v20 = vmul.f32 %v6326_v60, %v7367_v44  ;;  %v1632_v51 = vadd.f32 %v1608_v34, %v1468_v56  ;;  %v1774_v10 = vmul.f32 %v7348_v45, %v7368_v12  ;;  %v7370_v36 = vld [vmem:[#allocation120_spill] sm:$0xff]  ;;  %v7373_v34 = vld [vmem:[#allocation122_spill] sm:$0xff] }
 0xc03   :  { %v1776_v1 = vmul.f32 %v7348_v45, %v7369_v11  ;;  %v1936_v58 = vmul.f32 %v7354_v13, %v7370_v36  ;;  %v1634_v31 = vadd.f32 %v1610_v55, %v1470_v62  ;;  %v1778_v48 = vmul.f32 %v7348_v45, %v7371_v52  ;;  %v7375_v2 = vld [vmem:[#allocation124_spill] sm:$0xff]  ;;  %v7376_v55 = vld [vmem:[#allocation177_spill] sm:$0xff]  ;;  %v7379_v36 = vld [vmem:[#allocation190_spill] sm:$0xff] }
 0xc04   :  { %v2123_v23 = vadd.f32 %v2099_v54, %v1959_v14  ;;  %v2591_v54 = vmul.f32 %v6339_v17, %v7372_v49  ;;  %v1636_v43 = vadd.f32 %v1612_v24, %v1472_v53  ;;  %v1796_v28 = vadd.f32 %v1772_v9, %v1632_v51  ;;  %v7377_v12 = vld [vmem:[#allocation144_spill] sm:$0xff]  ;;  %v7378_v9 = vld [vmem:[#allocation126_spill] sm:$0xff]  ;;  %v7380_v52 = vld [vmem:[#allocation131_spill] sm:$0xff] }
 0xc05   :  { %v1938_v14 = vmul.f32 %v7354_v13, %v7373_v34  ;;  %v2100_v56 = vmul.f32 %v7359_v59, %v7374_v61  ;;  %v1638_v41 = vadd.f32 %v1614_v33, %v1474_v47  ;;  %v1940_v4 = vmul.f32 %v7354_v13, %v7375_v2  ;;  %v7381_v49 = vld [vmem:[#allocation156_spill] sm:$0xff] }
 0xc06   :  { %v2287_v32 = vadd.f32 %v2263_v8, %v2123_v23  ;;  %v2755_v45 = vmul.f32 %v6354_v37, %v7376_v55  ;;  %v1798_v8 = vadd.f32 %v1774_v10, %v1634_v31  ;;  %v1800_v23 = vadd.f32 %v1776_v1, %v1636_v43  ;;  %v7383_v43 = vld [vmem:[#allocation201_spill] sm:$0xff] }
 0xc07   :  { %v1960_v44 = vadd.f32 %v1936_v58, %v1796_v28  ;;  %v2264_v53 = vmul.f32 %v7363_v42, %v7377_v12  ;;  %v1802_v24 = vadd.f32 %v1778_v48, %v1638_v41  ;;  %v1942_v51 = vmul.f32 %v7354_v13, %v7378_v9  ;;  %v7382_v58 = vld [vmem:[#allocation133_spill] sm:$0xff]  ;;  %v7386_v41 = vld [vmem:[#allocation168_spill] sm:$0xff] }
 0xc08   :  { %v2451_v62 = vadd.f32 %v2427_v20, %v2287_v32  ;;  %v2919_v47 = vmul.f32 %v6367_v18, %v7379_v36  ;;  %v1962_v33 = vadd.f32 %v1938_v14, %v1798_v8  ;;  %v2102_v20 = vmul.f32 %v7359_v59, %v7380_v52  ;;  %v7385_v14 = vld [vmem:[#allocation146_spill] sm:$0xff]  ;;  %v7388_v8 = vld [vmem:[#allocation212_spill] sm:$0xff]  ;;  %v7391_v52 = vld [vmem:[#allocation43_spill] sm:$0xff] }
 0xc09   :  { %v2124_v32 = vadd.f32 %v2100_v56, %v1960_v44  ;;  %v2428_v10 = vmul.f32 %v6326_v60, %v7381_v49  ;;  %v1964_v1 = vadd.f32 %v1940_v4, %v1800_v23  ;;  %v2104_v31 = vmul.f32 %v7359_v59, %v7382_v58  ;;  %v7389_v44 = vld [vmem:[#allocation155_spill] sm:$0xff] }
 0xc0a   :  { %v2615_v11 = vadd.f32 %v2591_v54, %v2451_v62  ;;  %v3083_v13 = vmul.f32 %v6378_v3, %v7383_v43  ;;  %v7384_v54 = vld [vmem:[#allocation135_spill] sm:$0xff]  ;;  %v2266_v61 = vmul.f32 %v7363_v42, %v7385_v14  ;;  %v2592_v56 = vmul.f32 %v6339_v17, %v7386_v41  ;;  %v7387_v62 = vld [vmem:[#allocation148_spill] sm:$0xff] }
 0xc0b   :  { %v2106_v28 = vmul.f32 %v7359_v59, %v7384_v54  ;;  %v2288_v34 = vadd.f32 %v2264_v53, %v2124_v32  ;;  %v1966_v2 = vadd.f32 %v1942_v51, %v1802_v24  ;;  %v2268_v4 = vmul.f32 %v7363_v42, %v7387_v62  ;;  %v7390_v53 = vld [vmem:[#allocation180_spill] sm:$0xff]  ;;  %v7395_v54 = vld [vmem:[#allocation157_spill] sm:$0xff] }
 0xc0c   :  { %v2779_v48 = vadd.f32 %v2755_v45, %v2615_v11  ;;  %v3247_v45 = vmul.f32 %v6391_v40, %v7388_v8  ;;  %v2126_v23 = vadd.f32 %v2102_v20, %v1962_v33  ;;  %v2430_v12 = vmul.f32 %v6326_v60, %v7389_v44  ;;  %v6696_v33 = vld [vmem:[%s6940_s2 + $0x15] ss:$0 sm:$0xff]  ;;  %v7399_v44 = vld [vmem:[#allocation172_spill] sm:$0xff] }
 0xc0d   :  { %v2452_v59 = vadd.f32 %v2428_v10, %v2288_v34  ;;  %v2756_v9 = vmul.f32 %v6354_v37, %v7390_v53  ;;  %v2128_v11 = vadd.f32 %v2104_v31, %v1964_v1  ;;  %v3411_v24 = vmul.f32 %v6414_v25, %v7391_v52  ;;  %v7393_v10 = vld [vmem:[#allocation150_spill] sm:$0xff]  ;;  %v7394_v1 = vld [vmem:[#allocation192_spill] sm:$0xff]  ;;  %v7396_v34 = vld [vmem:[#allocation179_spill] sm:$0xff] }
 0xc0e   :  { %v2943_v55 = vadd.f32 %v2919_v47, %v2779_v48  ;;  %v2130_v51 = vadd.f32 %v2106_v28, %v1966_v2  ;;  %v2290_v32 = vadd.f32 %v2266_v61, %v2126_v23  ;;  %v7392_v47 = vld [vmem:[#allocation170_spill] sm:$0xff]  ;;  %v2270_v48 = vmul.f32 %v7363_v42, %v7393_v10  ;;  %v7397_v2 = vld [vmem:[#allocation203_spill] sm:$0xff]  ;;  %v7402_v52 = vld [vmem:[#allocation44_spill] sm:$0xff] }
 0xc0f   :  { %v2616_v49 = vadd.f32 %v2592_v56, %v2452_v59  ;;  %v2594_v58 = vmul.f32 %v6339_v17, %v7392_v47  ;;  %v2292_v20 = vadd.f32 %v2268_v4, %v2128_v11  ;;  %v2920_v31 = vmul.f32 %v6367_v18, %v7394_v1  ;;  %v7398_v8 = vld [vmem:[#allocation159_spill] sm:$0xff]  ;;  %v7400_v59 = vld [vmem:[#allocation194_spill] sm:$0xff]  ;;  %v7403_v10 = vld [vmem:[#allocation181_spill] sm:$0xff] }
 0xc10   :  { %v3107_v36 = vadd.f32 %v3083_v13, %v2943_v55  ;;  %v2454_v13 = vadd.f32 %v2430_v12, %v2290_v32  ;;  %v2432_v28 = vmul.f32 %v6326_v60, %v7395_v54  ;;  %v2758_v14 = vmul.f32 %v6354_v37, %v7396_v34  ;;  %v7401_v11 = vld [vmem:[#allocation214_spill] sm:$0xff]  ;;  %v7405_v54 = vld [vmem:[#allocation47_spill] sm:$0xff] }
 0xc11   :  { %v2780_v61 = vadd.f32 %v2756_v9, %v2616_v49  ;;  %v3084_v62 = vmul.f32 %v6378_v3, %v7397_v2  ;;  %v2596_v12 = vmul.f32 %v6339_v17, %v7399_v44  ;;  %v2922_v53 = vmul.f32 %v6367_v18, %v7400_v59  ;;  %v7407_v2 = vld [vmem:[#allocation196_spill] sm:$0xff] }
 0xc12   :  { %v3271_v43 = vadd.f32 %v3247_v45, %v3107_v36  ;;  %v2434_v45 = vmul.f32 %v6326_v60, %v7398_v8  ;;  %v2618_v23 = vadd.f32 %v2594_v58, %v2454_v13  ;;  %v3248_v36 = vmul.f32 %v6391_v40, %v7401_v11  ;;  %v7404_v58 = vld [vmem:[#allocation202_spill] sm:$0xff]  ;;  %v7409_v8 = vld [vmem:[#allocation183_spill] sm:$0xff] }
 0xc13   :  { %v2944_v9 = vadd.f32 %v2920_v31, %v2780_v61  ;;  %v2456_v49 = vadd.f32 %v2432_v28, %v2292_v20  ;;  %v2760_v60 = vmul.f32 %v6354_v37, %v7403_v10  ;;  %v3086_v1 = vmul.f32 %v6378_v3, %v7404_v58  ;;  %v7406_v61 = vld [vmem:[#allocation174_spill] sm:$0xff] }
 0xc14   :  { %v3435_v4 = vadd.f32 %v3411_v24, %v3271_v43  ;;  %v2782_v47 = vadd.f32 %v2758_v14, %v2618_v23  ;;  %v2294_v43 = vadd.f32 %v2270_v48, %v2130_v51  ;;  %v3412_v31 = vmul.f32 %v6414_v25, %v7405_v54 }
 0xc15   :  { %v3108_v13 = vadd.f32 %v3084_v62, %v2944_v9  ;;  %v2620_v34 = vadd.f32 %v2596_v12, %v2456_v49  ;;  %v2924_v20 = vmul.f32 %v6367_v18, %v7407_v2  ;;  %v2762_v51 = vmul.f32 %v6354_v37, %v7409_v8  ;;  %v7410_v62 = vld [vmem:[#allocation204_spill] sm:$0xff] }
 0xc16   :  { %v2458_v28 = vadd.f32 %v2434_v45, %v2294_v43  ;;  %v3088_v23 = vmul.f32 %v6378_v3, %v7410_v62 }
 0xc17   :  { %v3272_v14 = vadd.f32 %v3248_v36, %v3108_v13  ;;  %v7414_v13 = vld [vmem:[#allocation206_spill] sm:$0xff] }
 0xc18   :  { %v3090_v54 = vmul.f32 %v6378_v3, %v7414_v13 }
 0xc4c   :  { %v3511_v41 = vpop.permute.xlu0 %3510  ;;  %v3516_v56 = vpop.permute.xlu1 %3515 }
 0xc4d   :  { %v3574_v42 = vmul.f32 %v6696_v33, %v3511_v41  ;;  %v3575_v55 = vmul.f32 %v6696_v33, %v3516_v56  ;;  %v2598_v41 = vmul.f32 %v6339_v17, %v7406_v61  ;;  %v2946_v56 = vadd.f32 %v2922_v53, %v2782_v47  ;;  %v7411_v17 = vld [vmem:[#allocation45_spill] sm:$0xff]  ;;  %v7413_v47 = vld [vmem:[#allocation218_spill] sm:$0xff] }
 0xc4e   :  { %v3414_v59 = vmul.f32 %v6414_v25, %v7411_v17  ;;  %v3436_v53 = vadd.f32 %v3412_v31, %v3272_v14  ;;  %v3252_v10 = vmul.f32 %v6391_v40, %v7413_v47 }
 0xc4f   :  { %v6719_v24 = vadd.f32 %v3574_v42, %v7402_v52  ;;  %v6721_v32 = vadd.f32 %v3575_v55, %v3435_v4  ;;  %v7408_v4 = vld [vmem:[#allocation216_spill] sm:$0xff]  ;;  %v2784_v55 = vadd.f32 %v2760_v60, %v2620_v34  ;;  %v3110_v48 = vadd.f32 %v3086_v1, %v2946_v56  ;;  %v7412_v52 = vld [vmem:[#allocation198_spill] sm:$0xff] }
 0xc50   :  { %v3250_v42 = vmul.f32 %v6391_v40, %v7408_v4  ;;  %v2622_v11 = vadd.f32 %v2598_v41, %v2458_v28  ;;  %v2926_v49 = vmul.f32 %v6367_v18, %v7412_v52  ;;  %v3416_v18 = vmul.f32 %v6414_v25, %v6463_v63 }
 0xc51   :  { %v2948_v36 = vadd.f32 %v2924_v20, %v2784_v55  ;;  %v7415_v20 = vld [vmem:[#allocation220_spill] sm:$0xff]  ;;  %v3418_v63 = vmul.f32 %v6414_v25, %v6480_v26 }
 0xc52   :  { %v3274_v37 = vadd.f32 %v3250_v42, %v3110_v48  ;;  %v2786_v1 = vadd.f32 %v2762_v51, %v2622_v11  ;;  %v3254_v28 = vmul.f32 %v6391_v40, %v7415_v20 }
 0xc53   :  { %v3112_v43 = vadd.f32 %v3088_v23, %v2948_v36 }
 0xc54   :  { %v3526_v44 = vpop.permute.xlu0 %3525  ;;  %v3521_v12 = vpop.permute.xlu1 %3520  ;;  %v3438_v61 = vadd.f32 %v3414_v59, %v3274_v37  ;;  %v2950_v2 = vadd.f32 %v2926_v49, %v2786_v1 }
 0xc55   :  { %v3577_v45 = vmul.f32 %v6696_v33, %v3526_v44  ;;  %v3576_v9 = vmul.f32 %v6696_v33, %v3521_v12 }
 0xc56   :  { %v3114_v3 = vadd.f32 %v3090_v54, %v2950_v2 }
 0xc57   :  { %v6748_v60 = vadd.f32 %v3577_v45, %v6474_v21  ;;  %v6750_v58 = vadd.f32 %v3576_v9, %v3436_v53  ;;  %v3276_v21 = vadd.f32 %v3252_v10, %v3112_v43 }
 0xc58   :  { %v3536_v31 = vpop.permute.xlu0 %3535  ;;  %v3531_v34 = vpop.permute.xlu1 %3530  ;;  %v3278_v62 = vadd.f32 %v3254_v28, %v3114_v3 }
 0xc59   :  { %v3579_v41 = vmul.f32 %v6696_v33, %v3536_v31  ;;  %v3578_v56 = vmul.f32 %v6696_v33, %v3531_v34  ;;  %v3440_v8 = vadd.f32 %v3416_v18, %v3276_v21 }
 0xc5a   :  { %v3442_v12 = vadd.f32 %v3418_v63, %v3278_v62 }
 0xc5b   :  { %v6761_v14 = vadd.f32 %v3579_v41, %v6491_v0  ;;  %v6763_v4 = vadd.f32 %v3578_v56, %v3438_v61 }
 0xc5c   :  { %v3546_v42 = vpop.permute.xlu0 %3545  ;;  %v3541_v55 = vpop.permute.xlu1 %3540 }
 0xc5d   :  { %v3581_v51 = vmul.f32 %v6696_v33, %v3546_v42  ;;  %v3580_v48 = vmul.f32 %v6696_v33, %v3541_v55 }
 0xc5f   :  { %v6770_v23 = vadd.f32 %v3581_v51, %v6503_v29  ;;  %v6772_v40 = vadd.f32 %v3580_v48, %v3440_v8  ;;  %v7416_v48 = vld [vmem:[#allocation7_spill] sm:$0xff] }
 0xc60   :  { %v3556_v0 = vpop.permute.xlu0 %3555  ;;  %v3551_v44 = vpop.permute.xlu1 %3550 }
 0xc61   :  { %v3583_v17 = vmul.f32 %v6696_v33, %v3556_v0  ;;  %v3582_v59 = vmul.f32 %v6696_v33, %v3551_v44  ;;  %v5128_v0 = vmov 23   ;;  %v7417_v44 = vld [vmem:[#allocation10_spill] sm:$0xff] }
 0xc63   :  { %v6777_v53 = vadd.f32 %v3583_v17, %v6510_v15  ;;  %v6779_v25 = vadd.f32 %v3582_v59, %v3442_v12  ;;  %v7418_v12 = vld [vmem:[#allocation8_spill] sm:$0xff]  ;;  %v7420_v59 = vld [vmem:[#allocation9_spill] sm:$0xff] }
 0xc64   :  { %v3566_v26 = vpop.permute.xlu0 %3565  ;;  %v3561_v45 = vpop.permute.xlu1 %3560  ;;  %v7419_v17 = vld [vmem:[#allocation12_spill] sm:$0xff] }
 0xc65   :  { %v3585_v9 = vmul.f32 %v6696_v33, %v3566_v26  ;;  %v3584_v29 = vmul.f32 %v6696_v33, %v3561_v45  ;;  %v7421_v26 = vld [vmem:[#allocation11_spill] sm:$0xff] }
 0xc66   :  { %v4174_v45 = vld [vmem:[%s6940_s2 + $0x16] ss:$0 sm:$0xff] }
 0xc67   :  { %v6784_v11 = vadd.f32 %v3585_v9, %v6513_v39  ;;  %v6787_v36 = vadd.f32 %v3584_v29, %v6501_v57 }
 0xc68   :  { %v4964_v52 = vpop.permute.xlu1 %4963  ;;  %v4969_v49 = vpop.permute.xlu0 %4968 }
 0xc69   :  { %v4966_v37 = vunpack.i.h.bf16 %v4964_v52  ;;  %v4965_v47 = vunpack.i.l.bf16 %v4964_v52  ;;  %v4970_v15 = vunpack.i.l.bf16 %v4969_v49  ;;  %v4971_v31 = vunpack.i.h.bf16 %v4969_v49 }
 0xc6b   :  { %v3659_v10 = vmul.f32 %v4966_v37, %v7305_v5  ;;  %v3658_v1 = vmul.f32 %v4965_v47, %v7306_v16  ;;  %v3660_v54 = vmul.f32 %v4970_v15, %v5168_v6  ;;  %v3661_v56 = vmul.f32 %v4971_v31, %v5170_v7 }
 0xc6c   :  { %v4974_v43 = vpop.permute.xlu1 %4973  ;;  %v4979_v13 = vpop.permute.xlu0 %4978 }
 0xc6d   :  { %v4975_v33 = vunpack.i.l.bf16 %v4974_v43  ;;  %3679 = vperm.xlu0 %4993, %v3659_v10   ;;  %3674 = vperm.xlu1 %4992, %v3658_v1   ;;  %v4980_v39 = vunpack.i.l.bf16 %v4979_v13  ;;  %v4976_v2 = vunpack.i.h.bf16 %v4974_v43  ;;  %v4981_v3 = vunpack.i.h.bf16 %v4979_v13 }
 0xc6f   :  { %v3662_v57 = vmul.f32 %v4975_v33, %v5193_v22  ;;  %v3664_v61 = vmul.f32 %v4980_v39, %v5205_v30  ;;  %v3663_v28 = vmul.f32 %v4976_v2, %v5190_v19  ;;  %v3665_v55 = vmul.f32 %v4981_v3, %v5202_v27 }
 0xc70   :  { %v4984_v34 = vpop.permute.xlu1 %4983  ;;  %v4989_v41 = vpop.permute.xlu0 %4988 }
 0xc71   :  { %3694 = vperm.xlu0 %4993, %v3662_v57   ;;  %3684 = vperm.xlu1 %4992, %v3660_v54   ;;  %v4985_v18 = vunpack.i.l.bf16 %v4984_v34  ;;  %v4990_v20 = vunpack.i.l.bf16 %v4989_v41  ;;  %v4986_v8 = vunpack.i.h.bf16 %v4984_v34  ;;  %v4991_v51 = vunpack.i.h.bf16 %v4989_v41 }
 0xc73   :  { %v3666_v21 = vmul.f32 %v4985_v18, %v5217_v38  ;;  %v3668_v42 = vmul.f32 %v4990_v20, %v5229_v46  ;;  %v3667_v63 = vmul.f32 %v4986_v8, %v5214_v35  ;;  %v3669_v62 = vmul.f32 %v4991_v51, %v7416_v48 }
 0xc75   :  { %3704 = vperm.xlu0 %4993, %v3664_v61   ;;  %3689 = vperm.xlu1 %4992, %v3661_v56  }
 0xc79   :  { %3714 = vperm.xlu0 %4993, %v3666_v21   ;;  %3699 = vperm.xlu1 %4992, %v3663_v28  }
 0xc7d   :  { %3724 = vperm.xlu0 %4993, %v3668_v42   ;;  %3709 = vperm.xlu1 %4992, %v3665_v55  }
 0xc81   :  { %3719 = vperm.xlu1 %4992, %v3667_v63   ;;  %4995 = vrot.lane.b32.xlu0 %v5235_v50, %s5127_s17 }
 0xc82   :  { %5054 = vset.pattern.permute.xlu0 %v5128_v0 }
 0xc85   :  { %3729 = vperm.xlu1 %4992, %v3669_v62   ;;  %5005 = vrot.lane.b32.xlu0 %v7417_v44, %s5127_s17 }
 0xc89   :  { %5000 = vrot.lane.b32.xlu1 %v7418_v12, %s5127_s17  ;;  %5015 = vrot.lane.b32.xlu0 %v7419_v17, %s5127_s17 }
 0xc8a   :  { %5055 = vset.pattern.permute.xlu1 %v5128_v0 }
 0xc8d   :  { %5010 = vrot.lane.b32.xlu1 %v7420_v59, %s5127_s17  ;;  %5025 = vrot.lane.b32.xlu0 %v5235_v50, %s5129_s18 }
 0xc91   :  { %5020 = vrot.lane.b32.xlu1 %v7421_v26, %s5127_s17  ;;  %5035 = vrot.lane.b32.xlu0 %v7417_v44, %s5129_s18 }
 0xc95   :  { %5030 = vrot.lane.b32.xlu1 %v7418_v12, %s5129_s18  ;;  %5045 = vrot.lane.b32.xlu0 %v7419_v17, %s5129_s18 }
 0xc99   :  { %5040 = vrot.lane.b32.xlu1 %v7420_v59, %s5129_s18 }
 0xc9d   :  { %5050 = vrot.lane.b32.xlu1 %v7421_v26, %s5129_s18 }
 0xcec   :  { %v3680_v9 = vpop.permute.xlu0 %3679  ;;  %v3675_v29 = vpop.permute.xlu1 %3674 }
 0xced   :  { %v3739_v52 = vmul.f32 %v4174_v45, %v3680_v9  ;;  %v3738_v50 = vmul.f32 %v4174_v45, %v3675_v29 }
 0xcef   :  { %v6817_v49 = vadd.f32 %v3739_v52, %v6721_v32  ;;  %v6820_v37 = vadd.f32 %v3738_v50, %v6719_v24 }
 0xcf0   :  { %v3695_v47 = vpop.permute.xlu0 %3694  ;;  %v3685_v15 = vpop.permute.xlu1 %3684 }
 0xcf1   :  { %v3742_v10 = vmul.f32 %v4174_v45, %v3695_v47  ;;  %v3740_v1 = vmul.f32 %v4174_v45, %v3685_v15 }
 0xcf3   :  { %v6823_v43 = vadd.f32 %v3742_v10, %v6763_v4  ;;  %v6826_v13 = vadd.f32 %v3740_v1, %v6750_v58 }
 0xcf4   :  { %v3705_v54 = vpop.permute.xlu0 %3704  ;;  %v3690_v33 = vpop.permute.xlu1 %3689 }
 0xcf5   :  { %v3744_v39 = vmul.f32 %v4174_v45, %v3705_v54  ;;  %v3741_v31 = vmul.f32 %v4174_v45, %v3690_v33 }
 0xcf7   :  { %v6829_v32 = vadd.f32 %v3744_v39, %v6772_v40  ;;  %v6832_v24 = vadd.f32 %v3741_v31, %v6748_v60 }
 0xcf8   :  { %v3715_v57 = vpop.permute.xlu0 %3714  ;;  %v3700_v34 = vpop.permute.xlu1 %3699 }
 0xcf9   :  { %v3746_v61 = vmul.f32 %v4174_v45, %v3715_v57  ;;  %v3743_v18 = vmul.f32 %v4174_v45, %v3700_v34 }
 0xcfb   :  { %v6835_v4 = vadd.f32 %v3746_v61, %v6779_v25  ;;  %v6838_v58 = vadd.f32 %v3743_v18, %v6761_v14 }
 0xcfc   :  { %v3725_v41 = vpop.permute.xlu0 %3724  ;;  %v3710_v56 = vpop.permute.xlu1 %3709 }
 0xcfd   :  { %v3748_v2 = vmul.f32 %v4174_v45, %v3725_v41  ;;  %v3745_v21 = vmul.f32 %v4174_v45, %v3710_v56 }
 0xcff   :  { %v6841_v40 = vadd.f32 %v3748_v2, %v6787_v36  ;;  %v6844_v60 = vadd.f32 %v3745_v21, %v6770_v23 }
 0xd00   :  { %v4996_v20 = vpop.permute.xlu0 %4995  ;;  %v3720_v28 = vpop.permute.xlu1 %3719 }
 0xd01   :  { %v4998_v3 = vunpack.i.h.bf16 %v4996_v20  ;;  %v4997_v42 = vunpack.i.l.bf16 %v4996_v20  ;;  %v3747_v55 = vmul.f32 %v4174_v45, %v3720_v28 }
 0xd03   :  { %v3823_v25 = vmul.f32 %v4998_v3, %v7305_v5  ;;  %v3822_v14 = vmul.f32 %v4997_v42, %v7306_v16  ;;  %v6849_v8 = vadd.f32 %v3747_v55, %v6777_v53  ;;  %v5130_v55 = vmov 24  }
 0xd04   :  { %v3730_v63 = vpop.permute.xlu1 %3729  ;;  %v5006_v36 = vpop.permute.xlu0 %5005 }
 0xd05   :  { %v3749_v51 = vmul.f32 %v4174_v45, %v3730_v63  ;;  %3838 = vperm.xlu0 %5054, %v3822_v14   ;;  %3843 = vperm.xlu1 %5055, %v3823_v25   ;;  %v5008_v12 = vunpack.i.h.bf16 %v5006_v36  ;;  %v5007_v17 = vunpack.i.l.bf16 %v5006_v36 }
 0xd07   :  { %v6852_v23 = vadd.f32 %v3749_v51, %v6784_v11  ;;  %v3827_v53 = vmul.f32 %v5008_v12, %v5190_v19  ;;  %v3826_v45 = vmul.f32 %v5007_v17, %v5193_v22 }
 0xd08   :  { %v5001_v62 = vpop.permute.xlu1 %5000  ;;  %v5016_v11 = vpop.permute.xlu0 %5015 }
 0xd09   :  { %v5003_v0 = vunpack.i.h.bf16 %v5001_v62  ;;  %v5002_v44 = vunpack.i.l.bf16 %v5001_v62  ;;  %v5018_v15 = vunpack.i.h.bf16 %v5016_v11  ;;  %v5017_v10 = vunpack.i.l.bf16 %v5016_v11 }
 0xd0b   :  { %v3825_v59 = vmul.f32 %v5003_v0, %v5170_v7  ;;  %v3824_v26 = vmul.f32 %v5002_v44, %v5168_v6  ;;  %v3831_v54 = vmul.f32 %v5018_v15, %v5214_v35  ;;  %v3830_v33 = vmul.f32 %v5017_v10, %v5217_v38 }
 0xd0c   :  { %v5011_v9 = vpop.permute.xlu1 %5010  ;;  %v5026_v57 = vpop.permute.xlu0 %5025 }
 0xd0d   :  { %3853 = vperm.xlu0 %5054, %v3825_v59   ;;  %3848 = vperm.xlu1 %5055, %v3824_v26   ;;  %v5013_v29 = vunpack.i.h.bf16 %v5011_v9  ;;  %v5012_v52 = vunpack.i.l.bf16 %v5011_v9  ;;  %v5028_v41 = vunpack.i.h.bf16 %v5026_v57  ;;  %v5027_v56 = vunpack.i.l.bf16 %v5026_v57 }
 0xd0f   :  { %v3829_v50 = vmul.f32 %v5013_v29, %v5202_v27  ;;  %v3828_v47 = vmul.f32 %v5012_v52, %v5205_v30  ;;  %v3987_v21 = vmul.f32 %v5028_v41, %v7305_v5  ;;  %v3986_v20 = vmul.f32 %v5027_v56, %v7306_v16 }
 0xd10   :  { %v5021_v1 = vpop.permute.xlu1 %5020  ;;  %v5036_v2 = vpop.permute.xlu0 %5035 }
 0xd11   :  { %3863 = vperm.xlu0 %5054, %v3827_v53   ;;  %3858 = vperm.xlu1 %5055, %v3826_v45   ;;  %v5023_v39 = vunpack.i.h.bf16 %v5021_v1  ;;  %v5022_v31 = vunpack.i.l.bf16 %v5021_v1  ;;  %v5037_v28 = vunpack.i.l.bf16 %v5036_v2  ;;  %v5038_v62 = vunpack.i.h.bf16 %v5036_v2 }
 0xd13   :  { %v3833_v34 = vmul.f32 %v5023_v39, %v7416_v48  ;;  %v3832_v61 = vmul.f32 %v5022_v31, %v5229_v46  ;;  %v3990_v25 = vmul.f32 %v5037_v28, %v5193_v22  ;;  %v3991_v12 = vmul.f32 %v5038_v62, %v5190_v19 }
 0xd14   :  { %v5031_v18 = vpop.permute.xlu1 %5030  ;;  %v5046_v51 = vpop.permute.xlu0 %5045 }
 0xd15   :  { %3873 = vperm.xlu0 %5054, %v3829_v50   ;;  %3868 = vperm.xlu1 %5055, %v3828_v47   ;;  %v5032_v3 = vunpack.i.l.bf16 %v5031_v18  ;;  %v5033_v36 = vunpack.i.h.bf16 %v5031_v18  ;;  %v5047_v16 = vunpack.i.l.bf16 %v5046_v51  ;;  %v5048_v26 = vunpack.i.h.bf16 %v5046_v51 }
 0xd17   :  { %v3988_v14 = vmul.f32 %v5032_v3, %v5168_v6  ;;  %v3989_v44 = vmul.f32 %v5033_v36, %v5170_v7  ;;  %v3994_v22 = vmul.f32 %v5047_v16, %v5217_v38 }
 0xd18   :  { %v5041_v42 = vpop.permute.xlu1 %5040 }
 0xd19   :  { %3883 = vperm.xlu0 %5054, %v3831_v54   ;;  %3878 = vperm.xlu1 %5055, %v3830_v33   ;;  %v5042_v63 = vunpack.i.l.bf16 %v5041_v42  ;;  %v5043_v17 = vunpack.i.h.bf16 %v5041_v42  ;;  %v6888_v54 = vld [vmem:[%s6940_s2 + $0x18] ss:$0 sm:$0xff] }
 0xd1b   :  { %v3992_v5 = vmul.f32 %v5042_v63, %v5205_v30  ;;  %v3993_v59 = vmul.f32 %v5043_v17, %v5202_v27  ;;  %v3995_v30 = vmul.f32 %v5048_v26, %v5214_v35  ;;  %v6879_v35 = vld [vmem:[%s6940_s2 + $0x17] ss:$0 sm:$0xff]  ;;  %s5131_s2 = smov [#allocation2]  }
 0xd1c   :  { %v5051_v0 = vpop.permute.xlu1 %5050  ;;  %s4119_s25 = sshll.u32 %s5131_s2, 4  ;;  %s4120_s25 = int_to_ptr.vmem [resolvable:$true] %s4119_s25 }
 0xd1d   :  { %3893 = vperm.xlu0 %5054, %v3833_v34   ;;  %3888 = vperm.xlu1 %5055, %v3832_v61   ;;  %v5052_v6 = vunpack.i.l.bf16 %v5051_v0  ;;  %v5053_v53 = vunpack.i.h.bf16 %v5051_v0  ;;  %s5058_s26 = scalar_lea.vmem %s4120_s25, 1536  ;;  %p5063_p1 = scmp.lt.s32.totalorder %s4120_s25, %s4120_s25 }
 0xd1e   :  { %p5059_p0 = scmp.ne.s32.totalorder %s4120_s25, %s5058_s26  ;;  %p5064_p2 = scmp.lt.s32.totalorder %s5058_s26, %s5058_s26 }
 0xd1f   :  { %v3996_v9 = vmul.f32 %v5052_v6, %v5229_v46  ;;  %v3997_v7 = vmul.f32 %v5053_v53, %v7416_v48 }
 0xd20   :  { %p5065_p3 = por %p5064_p2, %p5063_p1 }
 0xd21   :  { %5057 = vset.pattern.permute.xlu0 %v5130_v55  ;;  %5056 = vset.pattern.permute.xlu1 %v5130_v55 }
 0xd22   :  { %4007 = vperm.xlu0 %5057, %v3987_v21   ;;  %4002 = vperm.xlu1 %5056, %v3986_v20   ;;  %p5066_p4 = pnand %p5065_p3, %p5059_p0 }
 0xd26   :  { %4022 = vperm.xlu0 %5057, %v3990_v25   ;;  %4012 = vperm.xlu1 %5056, %v3988_v14  }
 0xd2a   :  { %4032 = vperm.xlu0 %5057, %v3992_v5   ;;  %4017 = vperm.xlu1 %5056, %v3989_v44  }
 0xd2e   :  { %4042 = vperm.xlu0 %5057, %v3994_v22   ;;  %4027 = vperm.xlu1 %5056, %v3991_v12  }
 0xd32   :  { %4052 = vperm.xlu0 %5057, %v3996_v9   ;;  %4037 = vperm.xlu1 %5056, %v3993_v59  }
 0xd36   :  { %4047 = vperm.xlu1 %5056, %v3995_v30  }
 0xd3a   :  { %4057 = vperm.xlu1 %5056, %v3997_v7  }
 0xd84   :  { %v3839_v19 = vpop.permute.xlu0 %3838  ;;  %v3844_v38 = vpop.permute.xlu1 %3843 }
 0xd85   :  { %v3902_v10 = vmul.f32 %v6879_v35, %v3839_v19  ;;  %v3903_v1 = vmul.f32 %v6879_v35, %v3844_v38 }
 0xd87   :  { %v3926_v33 = vadd.f32 %v3902_v10, %v6820_v37  ;;  %v3927_v34 = vadd.f32 %v3903_v1, %v6817_v49 }
 0xd8c   :  { %v3854_v45 = vpop.permute.xlu0 %3853  ;;  %v3849_v29 = vpop.permute.xlu1 %3848 }
 0xd8d   :  { %v3904_v39 = vmul.f32 %v6879_v35, %v3849_v29  ;;  %v3905_v21 = vmul.f32 %v6879_v35, %v3854_v45 }
 0xd8f   :  { %v3928_v20 = vadd.f32 %v3904_v39, %v6826_v13  ;;  %v3929_v63 = vadd.f32 %v3905_v21, %v6832_v24 }
 0xd90   :  { %v3864_v52 = vpop.permute.xlu0 %3863  ;;  %v3859_v27 = vpop.permute.xlu1 %3858 }
 0xd91   :  { %v3906_v61 = vmul.f32 %v6879_v35, %v3859_v27  ;;  %v3907_v51 = vmul.f32 %v6879_v35, %v3864_v52 }
 0xd93   :  { %v3930_v3 = vadd.f32 %v3906_v61, %v6823_v43  ;;  %v3931_v12 = vadd.f32 %v3907_v51, %v6838_v58 }
 0xd94   :  { %v3874_v11 = vpop.permute.xlu0 %3873  ;;  %v3869_v50 = vpop.permute.xlu1 %3868 }
 0xd95   :  { %v3908_v42 = vmul.f32 %v6879_v35, %v3869_v50  ;;  %v3909_v24 = vmul.f32 %v6879_v35, %v3874_v11 }
 0xd97   :  { %v3932_v62 = vadd.f32 %v3908_v42, %v6829_v32  ;;  %v3933_v53 = vadd.f32 %v3909_v24, %v6844_v60 }
 0xd98   :  { %v3884_v46 = vpop.permute.xlu0 %3883  ;;  %v3879_v47 = vpop.permute.xlu1 %3878 }
 0xd99   :  { %v3910_v43 = vmul.f32 %v6879_v35, %v3879_v47  ;;  %v3911_v19 = vmul.f32 %v6879_v35, %v3884_v46 }
 0xd9b   :  { %v3934_v6 = vadd.f32 %v3910_v43, %v6835_v4  ;;  %v3935_v11 = vadd.f32 %v3911_v19, %v6849_v8 }
 0xd9c   :  { %v6881_v15 = vpop.permute.xlu0 %3893  ;;  %v3889_v48 = vpop.permute.xlu1 %3888 }
 0xd9d   :  { %v3912_v32 = vmul.f32 %v6879_v35, %v3889_v48  ;;  %v3913_v60 = vmul.f32 %v6879_v35, %v6881_v15 }
 0xd9f   :  { %v3936_v38 = vadd.f32 %v3912_v32, %v6841_v40  ;;  %v3937_v47 = vadd.f32 %v3913_v60, %v6852_v23 }
 0xda1   :  { %v4008_v31 = vpop.permute.xlu0 %4007  ;;  %v4003_v57 = vpop.permute.xlu1 %4002 }
 0xda2   :  { %v4067_v18 = vmul.f32 %v6888_v54, %v4008_v31  ;;  %v4066_v41 = vmul.f32 %v6888_v54, %v4003_v57 }
 0xda4   :  { %v4091_v56 = vadd.f32 %v4067_v18, %v3927_v34  ;;  %v4090_v2 = vadd.f32 %v4066_v41, %v3926_v33 }
 0xda5   :  { %v4023_v28 = vpop.permute.xlu0 %4022  ;;  %v4013_v37 = vpop.permute.xlu1 %4012 }
 0xda6   :  { %4103 = vst [vmem:[#allocation2 + $0x8] sm:$0xff] %v4091_v56  ;;  %4102 = vst [vmem:[#allocation2] sm:$0xff] %v4090_v2  ;;  %v4070_v49 = vmul.f32 %v6888_v54, %v4023_v28  ;;  %v4068_v55 = vmul.f32 %v6888_v54, %v4013_v37 }
 0xda8   :  { %v4094_v25 = vadd.f32 %v4070_v49, %v3930_v3  ;;  %v4092_v14 = vadd.f32 %v4068_v55, %v3928_v20 }
 0xda9   :  { %v4033_v36 = vpop.permute.xlu0 %4032  ;;  %v4018_v13 = vpop.permute.xlu1 %4017 }
 0xdaa   :  { %4106 = vst [vmem:[#allocation2 + $0x20] sm:$0xff] %v4094_v25  ;;  %4104 = vst [vmem:[#allocation2 + $0x10] sm:$0xff] %v4092_v14  ;;  %v4072_v5 = vmul.f32 %v6888_v54, %v4033_v36  ;;  %v4069_v16 = vmul.f32 %v6888_v54, %v4018_v13 }
 0xdac   :  { %v4096_v0 = vadd.f32 %v4072_v5, %v3932_v62  ;;  %v4093_v44 = vadd.f32 %v4069_v16, %v3929_v63 }
 0xdad   :  { %v4043_v17 = vpop.permute.xlu0 %4042  ;;  %v4028_v22 = vpop.permute.xlu1 %4027 }
 0xdae   :  { %4108 = vst [vmem:[#allocation2 + $0x30] sm:$0xff] %v4096_v0  ;;  %4105 = vst [vmem:[#allocation2 + $0x18] sm:$0xff] %v4093_v44  ;;  %v4074_v59 = vmul.f32 %v6888_v54, %v4043_v17  ;;  %v4071_v26 = vmul.f32 %v6888_v54, %v4028_v22 }
 0xdb0   :  { %v4098_v9 = vadd.f32 %v4074_v59, %v3934_v6  ;;  %v4095_v30 = vadd.f32 %v4071_v26, %v3931_v12 }
 0xdb1   :  { %v4053_v7 = vpop.permute.xlu0 %4052  ;;  %v4038_v58 = vpop.permute.xlu1 %4037 }
 0xdb2   :  { %4110 = vst [vmem:[#allocation2 + $0x40] sm:$0xff] %v4098_v9  ;;  %4107 = vst [vmem:[#allocation2 + $0x28] sm:$0xff] %v4095_v30  ;;  %v4076_v4 = vmul.f32 %v6888_v54, %v4053_v7  ;;  %v4073_v45 = vmul.f32 %v6888_v54, %v4038_v58 }
 0xdb4   :  { %v4100_v29 = vadd.f32 %v4076_v4, %v3936_v38  ;;  %v4097_v52 = vadd.f32 %v4073_v45, %v3933_v53 }
 0xdb5   :  { %v4048_v27 = vpop.permute.xlu1 %4047 }
 0xdb6   :  { %4112 = vst [vmem:[#allocation2 + $0x50] sm:$0xff] %v4100_v29  ;;  %4109 = vst [vmem:[#allocation2 + $0x38] sm:$0xff] %v4097_v52  ;;  %v4075_v50 = vmul.f32 %v6888_v54, %v4048_v27 }
 0xdb8   :  { %v4099_v46 = vadd.f32 %v4075_v50, %v3935_v11 }
 0xdb9   :  { %v4058_v40 = vpop.permute.xlu1 %4057 }
 0xdba   :  { %4111 = vst [vmem:[#allocation2 + $0x48] sm:$0xff] %v4099_v46  ;;  %v4077_v48 = vmul.f32 %v6888_v54, %v4058_v40 }
 0xdbc   :  { %v4101_v10 = vadd.f32 %v4077_v48, %v3937_v47 }
 0xdbe   :  { %4113 = vst [vmem:[#allocation2 + $0x58] sm:$0xff] %v4101_v10 }
 0xdbf   :  { %5069 = shalt.err (!%p5066_p4)
}
 0xdc0   :  { %s5070_s29 = scalar_lea.hbm %s6941_s3, 1536 }
 0xdc1   :  { %p5071_p5 = scmp.ne.s32.totalorder %s6941_s3, %s5070_s29  ;;  %p5074_p6 = scmp.lt.u32.totalorder %s5070_s29, %s6941_s3 }
 0xdc3   :  { %p5076_p7 = pnand %p5074_p6, %p5071_p5 }
 0xdc5   :  { %5079 = shalt.err (!%p5076_p7)
}
 0xdc6   :  { %s5132_s7 = smov 128  }
 0xdc7   :  { %4125 = dma.vmem_to_hbm [thread:$0]  %s4120_s25, 1536, %s6941_s3, [#allocation3], %s5132_s7, %s5132_s7, %s5097_s14  }
 0xdc8   :  { %5080 = dma.done.wait [#allocation3], 1536  }
 0xdc9   :  { %5081 = vsyncadd [#allocation3], 4294965760 }
 0xdca   :  { %4129 = vsyncpa [#allocation3], 1 }

</bundles_post_ra>
